<compile_context>
chip_gen: v7x
topology: tpu7x:2x2x1
jax: 0.10.0
libtpu: 0.0.40
codegen_flags: <defaults>
</compile_context>

<pallas_src>
import functools
import math

import jax
import jax.numpy as jnp
from jax.experimental import pallas as pl
from jax.experimental.pallas import tpu as pltpu

WINDOW_SIZE = 4  # default window_size in attentions.Encoder


@functools.lru_cache()
def _vmem_limit_bytes():
    try:
        cap = int(pltpu.get_tpu_info().vmem_capacity_bytes)
    except Exception:
        cap = 64 * 1024 * 1024
    # leave headroom; 48 MiB on v7x (64 MiB parts), up to 96 MiB on v5e/v6e.
    return min(cap * 3 // 4, 96 * 1024 * 1024)


def _cparams(n_grid_axes=1):
    return pltpu.CompilerParams(
        dimension_semantics=("parallel",) * n_grid_axes,
        vmem_limit_bytes=_vmem_limit_bytes())


# ----------------------------------------------------------------------------
# Fused attention block: QKV proj + rel-pos MHA + output proj + residual + LN1
# ----------------------------------------------------------------------------

def _attn_block_kernel(len_ref, x_ref, wqkv_ref, bqkv_ref, wo_ref, bo_ref,
                       ek_ref, ev_ref, g_ref, beta_ref, o_ref,
                       *, n_heads, window, scale, eps, mask_input):
    b = pl.program_id(0)
    L = len_ref[b]
    T, H = x_ref.shape[1], x_ref.shape[2]
    d = H // n_heads
    R = 2 * window + 1

    row = jax.lax.broadcasted_iota(jnp.int32, (T, T), 0)
    col = jax.lax.broadcasted_iota(jnp.int32, (T, T), 1)
    rel = col - row
    valid = (row < L) & (col < L)
    # one-hot diagonal masks (|j-i| <= W), shared by both rel-pos paths & heads
    band = [rel == (r - window) for r in range(R)]

    x_res = x_ref[0]
    if mask_input:  # encoder masks the input once before the first layer
        rowmask = jax.lax.broadcasted_iota(jnp.int32, (T, 1), 0) < L
        x_res = jnp.where(rowmask, x_res, 0.0)
    x_bf = x_res.astype(jnp.bfloat16)

    # fused QKV projection (1x1 convs), bf16 MXU operands, f32 accumulate
    qkv = jnp.dot(x_bf, wqkv_ref[...], preferred_element_type=jnp.float32)
    qkv = qkv + bqkv_ref[...]                                   # (T, 3H)

    y = jnp.zeros((T, H), jnp.float32)
    for h in range(n_heads):
        q = (qkv[:, h * d:(h + 1) * d] * scale).astype(jnp.bfloat16)
        k = qkv[:, H + h * d:H + (h + 1) * d].astype(jnp.bfloat16)
        v = qkv[:, 2 * H + h * d:2 * H + (h + 1) * d].astype(jnp.bfloat16)

        # content scores (MXU)
        scores = jax.lax.dot_general(q, k, (((1,), (1,)), ((), ())),
                                     preferred_element_type=jnp.float32)   # (T,T)
        # relative-key logits against the 2W+1 window embeddings (MXU)
        rl = jnp.dot(q, ek_ref[...], preferred_element_type=jnp.float32)   # (T,R)

        # banded relative-key bias: select-chain placement on the diagonals
        # TODO(synk): single strided pltpu.roll skew instead of the R selects.
        bias = jnp.zeros((T, T), jnp.float32)
        for r in range(R):
            bias = jnp.where(band[r], rl[:, r:r + 1], bias)
        scores = jnp.where(valid, scores + bias, -1e4)

        # softmax (f32 stats; reciprocal on EUP)
        m = jnp.max(scores, axis=-1, keepdims=True)
        e = jnp.exp(scores - m)
        p = e * pl.reciprocal(jnp.sum(e, axis=-1, keepdims=True), approx=True)

        out_h = jnp.dot(p.astype(jnp.bfloat16), v,
                        preferred_element_type=jnp.float32)                # (T,d)

        # banded relative-value contribution: gather the 2W+1 diagonals of p,
        # then a tiny (T,R)@(R,d) matmul on the MXU.
        wr = jnp.concatenate(
            [jnp.sum(jnp.where(band[r], p, 0.0), axis=-1, keepdims=True)
             for r in range(R)], axis=-1)                                  # (T,R)
        out_h = out_h + jnp.dot(wr.astype(jnp.bfloat16), ev_ref[...],
                                preferred_element_type=jnp.float32)

        # fused output projection, accumulated per head (no head concat/transpose)
        y = y + jnp.dot(out_h.astype(jnp.bfloat16), wo_ref[h],
                        preferred_element_type=jnp.float32)
    y = y + bo_ref[...]

    # residual + LayerNorm (channel axis), lane-dense (T, H) output
    xr = x_res + y
    mean = jnp.mean(xr, axis=-1, keepdims=True)
    var = jnp.mean(jnp.square(xr - mean), axis=-1, keepdims=True)
    o_ref[0] = ((xr - mean) * jax.lax.rsqrt(var + eps)) * g_ref[...] + beta_ref[...]


def attn_block(x, lp, lengths, *, n_heads, window, mask_input, eps=1e-5):
    B, T, H = x.shape
    d = H // n_heads
    R = 2 * window + 1
    grid_spec = pltpu.PrefetchScalarGridSpec(
        num_scalar_prefetch=1,
        grid=(B,),
        in_specs=[
            pl.BlockSpec((1, T, H), lambda b, lens: (b, 0, 0)),
            pl.BlockSpec((H, 3 * H), lambda b, lens: (0, 0)),
            pl.BlockSpec((1, 3 * H), lambda b, lens: (0, 0)),
            pl.BlockSpec((n_heads, d, H), lambda b, lens: (0, 0, 0)),
            pl.BlockSpec((1, H), lambda b, lens: (0, 0)),
            pl.BlockSpec((d, R), lambda b, lens: (0, 0)),
            pl.BlockSpec((R, d), lambda b, lens: (0, 0)),
            pl.BlockSpec((1, H), lambda b, lens: (0, 0)),
            pl.BlockSpec((1, H), lambda b, lens: (0, 0)),
        ],
        out_specs=pl.BlockSpec((1, T, H), lambda b, lens: (b, 0, 0)),
    )
    kernel = functools.partial(_attn_block_kernel, n_heads=n_heads, window=window,
                               scale=1.0 / math.sqrt(d), eps=eps,
                               mask_input=mask_input)
    return pl.pallas_call(
        kernel,
        grid_spec=grid_spec,
        out_shape=jax.ShapeDtypeStruct((B, T, H), jnp.float32),
        compiler_params=_cparams(1),
    )(lengths, x, lp['wqkv'], lp['bqkv'], lp['wo'], lp['bo'],
      lp['ek'], lp['ev'], lp['ln1_g'], lp['ln1_b'])


# ----------------------------------------------------------------------------
# Fused FFN block: mask -> conv1 -> ReLU -> mask -> conv2 -> mask -> +res -> LN2
# ----------------------------------------------------------------------------

def _ffn_block_kernel(len_ref, x_ref, w1_ref, b1_ref, w2_ref, b2_ref,
                      g_ref, beta_ref, o_ref, *, kernel_size, eps):
    b = pl.program_id(0)
    L = len_ref[b]
    T, H = x_ref.shape[1], x_ref.shape[2]
    Fc = w1_ref.shape[2]
    K = kernel_size
    pad_l = (K - 1) // 2
    pad_r = K - 1 - pad_l

    rowmask = jax.lax.broadcasted_iota(jnp.int32, (T, 1), 0) < L
    x_res = x_ref[0]

    def same_conv(inp, w_taps_ref, bias_row, n_out):
        # pad ONCE, then each tap is a static slice feeding a bf16 MXU matmul.
        cin = inp.shape[1]
        if pad_l + pad_r > 0:
            xp = jnp.concatenate(
                [jnp.zeros((pad_l, cin), jnp.float32), inp,
                 jnp.zeros((pad_r, cin), jnp.float32)], axis=0)
        else:
            xp = inp
        acc = jnp.zeros((T, n_out), jnp.float32) + bias_row
        for j in range(K):
            acc = acc + jnp.dot(xp[j:j + T].astype(jnp.bfloat16), w_taps_ref[j],
                                preferred_element_type=jnp.float32)
        return acc

    xm = jnp.where(rowmask, x_res, 0.0)                       # x * x_mask
    a1 = same_conv(xm, w1_ref, b1_ref[...], Fc)
    y1 = jnp.where(rowmask, jnp.maximum(a1, 0.0), 0.0)        # ReLU (+ mask); dropout = id
    a2 = same_conv(y1, w2_ref, b2_ref[...], H)
    y = jnp.where(rowmask, a2, 0.0)                           # FFN output * x_mask

    xr = x_res + y                                            # residual + LayerNorm2
    mean = jnp.mean(xr, axis=-1, keepdims=True)
    var = jnp.mean(jnp.square(xr - mean), axis=-1, keepdims=True)
    o_ref[0] = ((xr - mean) * jax.lax.rsqrt(var + eps)) * g_ref[...] + beta_ref[...]


def ffn_block(x, lp, lengths, *, kernel_size, eps=1e-5):
    B, T, H = x.shape
    K, _, Fc = lp['ffn_w1'].shape
    grid_spec = pltpu.PrefetchScalarGridSpec(
        num_scalar_prefetch=1,
        grid=(B,),
        in_specs=[
            pl.BlockSpec((1, T, H), lambda b, lens: (b, 0, 0)),
            pl.BlockSpec((K, H, Fc), lambda b, lens: (0, 0, 0)),
            pl.BlockSpec((1, Fc), lambda b, lens: (0, 0)),
            pl.BlockSpec((K, Fc, H), lambda b, lens: (0, 0, 0)),
            pl.BlockSpec((1, H), lambda b, lens: (0, 0)),
            pl.BlockSpec((1, H), lambda b, lens: (0, 0)),
            pl.BlockSpec((1, H), lambda b, lens: (0, 0)),
        ],
        out_specs=pl.BlockSpec((1, T, H), lambda b, lens: (b, 0, 0)),
    )
    return pl.pallas_call(
        functools.partial(_ffn_block_kernel, kernel_size=kernel_size, eps=eps),
        grid_spec=grid_spec,
        out_shape=jax.ShapeDtypeStruct((B, T, H), jnp.float32),
        compiler_params=_cparams(1),
    )(lengths, x, lp['ffn_w1'], lp['ffn_b1'], lp['ffn_w2'], lp['ffn_b2'],
      lp['ln2_g'], lp['ln2_b'])


# ----------------------------------------------------------------------------
# Final block: x*mask, proj (1x1 conv), split m/logs, emit in (B, C, T) layout
# ----------------------------------------------------------------------------

def _proj_kernel(len_ref, x_ref, wp_ref, bp_ref, xo_ref, m_ref, logs_ref, *, out_ch):
    b = pl.program_id(0)
    L = len_ref[b]
    T = x_ref.shape[1]
    rowmask = jax.lax.broadcasted_iota(jnp.int32, (T, 1), 0) < L

    xm = jnp.where(rowmask, x_ref[0], 0.0)                    # encoder output * x_mask
    xo_ref[0] = jnp.transpose(xm)                             # (H, T), PyTorch layout

    stats = jnp.dot(xm.astype(jnp.bfloat16), wp_ref[...],
                    preferred_element_type=jnp.float32) + bp_ref[...]
    stats = jnp.where(rowmask, stats, 0.0)                    # proj(x) * x_mask
    st = jnp.transpose(stats)                                 # (2*out, T)
    m_ref[0] = st[:out_ch]
    logs_ref[0] = st[out_ch:]


def proj_block(x, wp, bp, lengths, out_ch):
    B, T, H = x.shape
    grid_spec = pltpu.PrefetchScalarGridSpec(
        num_scalar_prefetch=1,
        grid=(B,),
        in_specs=[
            pl.BlockSpec((1, T, H), lambda b, lens: (b, 0, 0)),
            pl.BlockSpec((H, 2 * out_ch), lambda b, lens: (0, 0)),
            pl.BlockSpec((1, 2 * out_ch), lambda b, lens: (0, 0)),
        ],
        out_specs=[
            pl.BlockSpec((1, H, T), lambda b, lens: (b, 0, 0)),
            pl.BlockSpec((1, out_ch, T), lambda b, lens: (b, 0, 0)),
            pl.BlockSpec((1, out_ch, T), lambda b, lens: (b, 0, 0)),
        ],
    )
    return pl.pallas_call(
        functools.partial(_proj_kernel, out_ch=out_ch),
        grid_spec=grid_spec,
        out_shape=(jax.ShapeDtypeStruct((B, H, T), jnp.float32),
                   jax.ShapeDtypeStruct((B, out_ch, T), jnp.float32),
                   jax.ShapeDtypeStruct((B, out_ch, T), jnp.float32)),
        compiler_params=_cparams(1),
    )(lengths, x, wp, bp)


# ----------------------------------------------------------------------------
# TextEncoder forward
# ----------------------------------------------------------------------------

def text_encoder_forward(prep, tokens, lengths, *, cfg):
    nh = cfg['n_heads']
    out_ch = cfg['out_channels']
    B, T = tokens.shape
    lengths = lengths.astype(jnp.int32)

    # embedding lookup (XLA gather); sqrt(H) scale pre-folded into the table
    h = prep['emb'][tokens]                                           # (B, T, H) f32

    for li, lp in enumerate(prep['layers']):
        # attention sub-block (input masking fused into the first layer's kernel)
        h = attn_block(h, lp, lengths, n_heads=nh, window=WINDOW_SIZE,
                       mask_input=(li == 0))
        # feed-forward sub-block
        h = ffn_block(h, lp, lengths, kernel_size=cfg['kernel_size'])

    x_t, m, logs = proj_block(h, prep['proj_w'], prep['proj_b'], lengths, out_ch)
    x_mask = (jnp.arange(T)[None, :] < lengths[:, None]).astype(jnp.float32)
    return x_t, m, logs, x_mask[:, None, :]


# ----------------------------------------------------------------------------
# Parameters: torch-like layout -> one-time kernel-ready layout (bf16, packed)
# ----------------------------------------------------------------------------

def init_params(key, cfg):
    """Synthetic params with the PyTorch module's shapes (Conv1d: (Cout,Cin,K))."""
    H, Fc = cfg['hidden_channels'], cfg['filter_channels']
    nh, K = cfg['n_heads'], cfg['kernel_size']
    d = H // nh
    W = WINDOW_SIZE
    keys = iter(jax.random.split(key, 4 + 8 * cfg['n_layers']))

    def nrm(shape, scale):
        return scale * jax.random.normal(next(keys), shape, jnp.float32)

    raw = {'emb': nrm((cfg['n_vocab'], H), H ** -0.5)}
    layers = []
    for _ in range(cfg['n_layers']):
        layers.append({
            'conv_q_w': nrm((H, H, 1), H ** -0.5), 'conv_q_b': jnp.zeros((H,), jnp.float32),
            'conv_k_w': nrm((H, H, 1), H ** -0.5), 'conv_k_b': jnp.zeros((H,), jnp.float32),
            'conv_v_w': nrm((H, H, 1), H ** -0.5), 'conv_v_b': jnp.zeros((H,), jnp.float32),
            'conv_o_w': nrm((H, H, 1), H ** -0.5), 'conv_o_b': jnp.zeros((H,), jnp.float32),
            'emb_rel_k': nrm((1, 2 * W + 1, d), d ** -0.5),
            'emb_rel_v': nrm((1, 2 * W + 1, d), d ** -0.5),
            'ln1_g': jnp.ones((H,), jnp.float32), 'ln1_b': jnp.zeros((H,), jnp.float32),
            'ffn_w1': nrm((Fc, H, K), (H * K) ** -0.5), 'ffn_b1': jnp.zeros((Fc,), jnp.float32),
            'ffn_w2': nrm((H, Fc, K), (Fc * K) ** -0.5), 'ffn_b2': jnp.zeros((H,), jnp.float32),
            'ln2_g': jnp.ones((H,), jnp.float32), 'ln2_b': jnp.zeros((H,), jnp.float32),
        })
    raw['layers'] = layers
    raw['proj_w'] = nrm((2 * cfg['out_channels'], H, 1), H ** -0.5)
    raw['proj_b'] = jnp.zeros((2 * cfg['out_channels'],), jnp.float32)
    return raw


def prepare_params(raw, cfg):
    """One-time layout/dtype prep (hoisted out of the forward per review)."""
    H = cfg['hidden_channels']
    nh = cfg['n_heads']
    d = H // nh
    prep = {'emb': raw['emb'] * math.sqrt(H)}                 # fold sqrt(H) scale
    layers = []
    for lp in raw['layers']:
        wq = lp['conv_q_w'][:, :, 0].T
        wk = lp['conv_k_w'][:, :, 0].T
        wv = lp['conv_v_w'][:, :, 0].T
        layers.append({
            'wqkv': jnp.concatenate([wq, wk, wv], axis=1).astype(jnp.bfloat16),  # (H,3H)
            'bqkv': jnp.concatenate([lp['conv_q_b'], lp['conv_k_b'],
                                     lp['conv_v_b']]).reshape(1, 3 * H),
            'wo': lp['conv_o_w'][:, :, 0].T.reshape(nh, d, H).astype(jnp.bfloat16),
            'bo': lp['conv_o_b'].reshape(1, H),
            'ek': lp['emb_rel_k'][0].T.astype(jnp.bfloat16),                      # (d,2W+1)
            'ev': lp['emb_rel_v'][0].astype(jnp.bfloat16),                        # (2W+1,d)
            'ln1_g': lp['ln1_g'].reshape(1, H), 'ln1_b': lp['ln1_b'].reshape(1, H),
            'ffn_w1': jnp.transpose(lp['ffn_w1'], (2, 1, 0)).astype(jnp.bfloat16),  # (K,H,Fc)
            'ffn_b1': lp['ffn_b1'].reshape(1, -1),
            'ffn_w2': jnp.transpose(lp['ffn_w2'], (2, 1, 0)).astype(jnp.bfloat16),  # (K,Fc,H)
            'ffn_b2': lp['ffn_b2'].reshape(1, H),
            'ln2_g': lp['ln2_g'].reshape(1, H), 'ln2_b': lp['ln2_b'].reshape(1, H),
        })
    prep['layers'] = layers
    prep['proj_w'] = raw['proj_w'][:, :, 0].T.astype(jnp.bfloat16)                # (H,2*out)
    prep['proj_b'] = raw['proj_b'].reshape(1, -1)
    return prep


# ----------------------------------------------------------------------------

if __name__ == "__main__":
    cfg = dict(n_vocab=50, out_channels=6, hidden_channels=32, filter_channels=64,
               n_heads=2, n_layers=2, kernel_size=3, p_dropout=0.1, gin_channels=0)
    B, T = 2, 8

    key = jax.random.PRNGKey(0)
    pkey, tkey = jax.random.split(key)
    raw_params = init_params(pkey, cfg)
    prep_params = prepare_params(raw_params, cfg)   # one-time weight prep
    tokens = jax.random.randint(tkey, (B, T), 0, cfg['n_vocab'], dtype=jnp.int32)
    x_lengths = jnp.array([8, 5], dtype=jnp.int32)

    fwd = jax.jit(functools.partial(text_encoder_forward, cfg=cfg))
    x, m, logs, x_mask = fwd(prep_params, tokens, x_lengths)
    jax.block_until_ready((x, m, logs, x_mask))

    assert x.shape == (B, cfg['hidden_channels'], T)
    assert m.shape == (B, cfg['out_channels'], T)
    assert logs.shape == (B, cfg['out_channels'], T)
    assert x_mask.shape == (B, 1, T)
    assert bool(jnp.all(jnp.isfinite(x))) and bool(jnp.all(jnp.isfinite(m)))
    assert bool(jnp.all(jnp.isfinite(logs)))
    print("KERNEL_OK")
</pallas_src>

<mosaic_0001>
module attributes {stable_mosaic.version = 11 : i64} {
  func.func @_ffn_block_kernel(%arg0: i32, %arg1: memref<2xi32, #tpu.memory_space<smem>>, %arg2: memref<1x8x32xf32, #tpu.memory_space<vmem>>, %arg3: memref<3x32x64xbf16, #tpu.memory_space<vmem>>, %arg4: memref<1x64xf32, #tpu.memory_space<vmem>>, %arg5: memref<3x64x32xbf16, #tpu.memory_space<vmem>>, %arg6: memref<1x32xf32, #tpu.memory_space<vmem>>, %arg7: memref<1x32xf32, #tpu.memory_space<vmem>>, %arg8: memref<1x32xf32, #tpu.memory_space<vmem>>, %arg9: memref<1x8x32xf32, #tpu.memory_space<vmem>>) attributes {dimension_semantics = [#tpu.dimension_semantics<parallel>], iteration_bounds = array<i64: 2>, scalar_prefetch = 1 : i64, scratch_operands = 0 : i64, tpu.core_type = #tpu.core_type<tc>, window_params = [{transform_indices = @transform_0, window_bounds = array<i64: 1, 8, 32>}, {pipeline_mode = #tpu.pipeline_mode<synchronous>, transform_indices = @transform_1, window_bounds = array<i64: 3, 32, 64>}, {pipeline_mode = #tpu.pipeline_mode<synchronous>, transform_indices = @transform_2, window_bounds = array<i64: 1, 64>}, {pipeline_mode = #tpu.pipeline_mode<synchronous>, transform_indices = @transform_3, window_bounds = array<i64: 3, 64, 32>}, {pipeline_mode = #tpu.pipeline_mode<synchronous>, transform_indices = @transform_4, window_bounds = array<i64: 1, 32>}, {pipeline_mode = #tpu.pipeline_mode<synchronous>, transform_indices = @transform_5, window_bounds = array<i64: 1, 32>}, {pipeline_mode = #tpu.pipeline_mode<synchronous>, transform_indices = @transform_6, window_bounds = array<i64: 1, 32>}, {transform_indices = @transform_7, window_bounds = array<i64: 1, 8, 32>}]} {
    %0 = arith.index_cast %arg0 : i32 to index
    %1 = memref.load %arg1[%0] : memref<2xi32, #tpu.memory_space<smem>>
    %2 = tpu.iota {dimensions = array<i32: 0>} : vector<8x1xi32>
    %3 = vector.broadcast %1 : i32 to vector<8x1xi32>
    %4 = arith.cmpi slt, %2, %3 : vector<8x1xi32>
    %c0 = arith.constant 0 : index
    %c0_0 = arith.constant 0 : index
    %c0_1 = arith.constant 0 : index
    %5 = vector.load %arg2[%c0, %c0_0, %c0_1] : memref<1x8x32xf32, #tpu.memory_space<vmem>>, vector<1x8x32xf32>
    %6 = vector.shape_cast %5 : vector<1x8x32xf32> to vector<8x32xf32>
    %cst = arith.constant 0.000000e+00 : f32
    %7 = vector.shape_cast %4 : vector<8x1xi1> to vector<8x1xi1>
    %8 = vector.broadcast %7 : vector<8x1xi1> to vector<8x32xi1>
    %9 = vector.broadcast %cst : f32 to vector<8x32xf32>
    %10 = arith.select %8, %6, %9 : vector<8x32xi1>, vector<8x32xf32>
    %c0_2 = arith.constant 0 : index
    %c0_3 = arith.constant 0 : index
    %11 = vector.load %arg4[%c0_2, %c0_3] : memref<1x64xf32, #tpu.memory_space<vmem>>, vector<1x64xf32>
    %cst_4 = arith.constant 0.000000e+00 : f32
    %12 = vector.broadcast %cst_4 : f32 to vector<1x32xf32>
    %cst_5 = arith.constant 0.000000e+00 : f32
    %13 = vector.broadcast %cst_5 : f32 to vector<1x32xf32>
    %14 = tpu.concatenate %12, %10, %13 in 0 : vector<1x32xf32>, vector<8x32xf32>, vector<1x32xf32> -> vector<10x32xf32>
    %cst_6 = arith.constant 0.000000e+00 : f32
    %15 = vector.broadcast %cst_6 : f32 to vector<8x64xf32>
    %16 = vector.broadcast %11 : vector<1x64xf32> to vector<8x64xf32>
    %17 = arith.addf %15, %16 : vector<8x64xf32>
    %18 = vector.extract_strided_slice %14 {offsets = [0, 0], sizes = [8, 32], strides = [1, 1]} : vector<10x32xf32> to vector<8x32xf32>
    %19 = arith.truncf %18 : vector<8x32xf32> to vector<8x32xbf16>
    %c0_7 = arith.constant 0 : index
    %c0_8 = arith.constant 0 : index
    %c0_9 = arith.constant 0 : index
    %20 = vector.load %arg3[%c0_7, %c0_8, %c0_9] : memref<3x32x64xbf16, #tpu.memory_space<vmem>>, vector<1x32x64xbf16>
    %21 = vector.shape_cast %20 : vector<1x32x64xbf16> to vector<32x64xbf16>
    %cst_10 = arith.constant dense<0.000000e+00> : vector<8x64xf32>
    %22 = tpu.matmul %19, %21, %cst_10 {dimension_numbers = #tpu.dot_dimension_numbers<[1], [0], [0], [1], [0, 0, 1, 1], [], []>} : vector<8x32xbf16>, vector<32x64xbf16>, vector<8x64xf32> -> vector<8x64xf32>
    %23 = arith.addf %17, %22 : vector<8x64xf32>
    %24 = vector.extract_strided_slice %14 {offsets = [1, 0], sizes = [8, 32], strides = [1, 1]} : vector<10x32xf32> to vector<8x32xf32>
    %25 = arith.truncf %24 : vector<8x32xf32> to vector<8x32xbf16>
    %c1 = arith.constant 1 : index
    %c0_11 = arith.constant 0 : index
    %c0_12 = arith.constant 0 : index
    %26 = vector.load %arg3[%c1, %c0_11, %c0_12] : memref<3x32x64xbf16, #tpu.memory_space<vmem>>, vector<1x32x64xbf16>
    %27 = vector.shape_cast %26 : vector<1x32x64xbf16> to vector<32x64xbf16>
    %cst_13 = arith.constant dense<0.000000e+00> : vector<8x64xf32>
    %28 = tpu.matmul %25, %27, %cst_13 {dimension_numbers = #tpu.dot_dimension_numbers<[1], [0], [0], [1], [0, 0, 1, 1], [], []>} : vector<8x32xbf16>, vector<32x64xbf16>, vector<8x64xf32> -> vector<8x64xf32>
    %29 = arith.addf %23, %28 : vector<8x64xf32>
    %30 = vector.extract_strided_slice %14 {offsets = [2, 0], sizes = [8, 32], strides = [1, 1]} : vector<10x32xf32> to vector<8x32xf32>
    %31 = arith.truncf %30 : vector<8x32xf32> to vector<8x32xbf16>
    %c2 = arith.constant 2 : index
    %c0_14 = arith.constant 0 : index
    %c0_15 = arith.constant 0 : index
    %32 = vector.load %arg3[%c2, %c0_14, %c0_15] : memref<3x32x64xbf16, #tpu.memory_space<vmem>>, vector<1x32x64xbf16>
    %33 = vector.shape_cast %32 : vector<1x32x64xbf16> to vector<32x64xbf16>
    %cst_16 = arith.constant dense<0.000000e+00> : vector<8x64xf32>
    %34 = tpu.matmul %31, %33, %cst_16 {dimension_numbers = #tpu.dot_dimension_numbers<[1], [0], [0], [1], [0, 0, 1, 1], [], []>} : vector<8x32xbf16>, vector<32x64xbf16>, vector<8x64xf32> -> vector<8x64xf32>
    %35 = arith.addf %29, %34 : vector<8x64xf32>
    %cst_17 = arith.constant 0.000000e+00 : f32
    %36 = vector.broadcast %cst_17 : f32 to vector<8x64xf32>
    %37 = arith.maximumf %35, %36 : vector<8x64xf32>
    %cst_18 = arith.constant 0.000000e+00 : f32
    %38 = vector.shape_cast %4 : vector<8x1xi1> to vector<8x1xi1>
    %39 = vector.broadcast %38 : vector<8x1xi1> to vector<8x64xi1>
    %40 = vector.broadcast %cst_18 : f32 to vector<8x64xf32>
    %41 = arith.select %39, %37, %40 : vector<8x64xi1>, vector<8x64xf32>
    %c0_19 = arith.constant 0 : index
    %c0_20 = arith.constant 0 : index
    %42 = vector.load %arg6[%c0_19, %c0_20] : memref<1x32xf32, #tpu.memory_space<vmem>>, vector<1x32xf32>
    %cst_21 = arith.constant 0.000000e+00 : f32
    %43 = vector.broadcast %cst_21 : f32 to vector<1x64xf32>
    %cst_22 = arith.constant 0.000000e+00 : f32
    %44 = vector.broadcast %cst_22 : f32 to vector<1x64xf32>
    %45 = tpu.concatenate %43, %41, %44 in 0 : vector<1x64xf32>, vector<8x64xf32>, vector<1x64xf32> -> vector<10x64xf32>
    %cst_23 = arith.constant 0.000000e+00 : f32
    %46 = vector.broadcast %cst_23 : f32 to vector<8x32xf32>
    %47 = vector.broadcast %42 : vector<1x32xf32> to vector<8x32xf32>
    %48 = arith.addf %46, %47 : vector<8x32xf32>
    %49 = vector.extract_strided_slice %45 {offsets = [0, 0], sizes = [8, 64], strides = [1, 1]} : vector<10x64xf32> to vector<8x64xf32>
    %50 = arith.truncf %49 : vector<8x64xf32> to vector<8x64xbf16>
    %c0_24 = arith.constant 0 : index
    %c0_25 = arith.constant 0 : index
    %c0_26 = arith.constant 0 : index
    %51 = vector.load %arg5[%c0_24, %c0_25, %c0_26] : memref<3x64x32xbf16, #tpu.memory_space<vmem>>, vector<1x64x32xbf16>
    %52 = vector.shape_cast %51 : vector<1x64x32xbf16> to vector<64x32xbf16>
    %cst_27 = arith.constant dense<0.000000e+00> : vector<8x32xf32>
    %53 = tpu.matmul %50, %52, %cst_27 {dimension_numbers = #tpu.dot_dimension_numbers<[1], [0], [0], [1], [0, 0, 1, 1], [], []>} : vector<8x64xbf16>, vector<64x32xbf16>, vector<8x32xf32> -> vector<8x32xf32>
    %54 = arith.addf %48, %53 : vector<8x32xf32>
    %55 = vector.extract_strided_slice %45 {offsets = [1, 0], sizes = [8, 64], strides = [1, 1]} : vector<10x64xf32> to vector<8x64xf32>
    %56 = arith.truncf %55 : vector<8x64xf32> to vector<8x64xbf16>
    %c1_28 = arith.constant 1 : index
    %c0_29 = arith.constant 0 : index
    %c0_30 = arith.constant 0 : index
    %57 = vector.load %arg5[%c1_28, %c0_29, %c0_30] : memref<3x64x32xbf16, #tpu.memory_space<vmem>>, vector<1x64x32xbf16>
    %58 = vector.shape_cast %57 : vector<1x64x32xbf16> to vector<64x32xbf16>
    %cst_31 = arith.constant dense<0.000000e+00> : vector<8x32xf32>
    %59 = tpu.matmul %56, %58, %cst_31 {dimension_numbers = #tpu.dot_dimension_numbers<[1], [0], [0], [1], [0, 0, 1, 1], [], []>} : vector<8x64xbf16>, vector<64x32xbf16>, vector<8x32xf32> -> vector<8x32xf32>
    %60 = arith.addf %54, %59 : vector<8x32xf32>
    %61 = vector.extract_strided_slice %45 {offsets = [2, 0], sizes = [8, 64], strides = [1, 1]} : vector<10x64xf32> to vector<8x64xf32>
    %62 = arith.truncf %61 : vector<8x64xf32> to vector<8x64xbf16>
    %c2_32 = arith.constant 2 : index
    %c0_33 = arith.constant 0 : index
    %c0_34 = arith.constant 0 : index
    %63 = vector.load %arg5[%c2_32, %c0_33, %c0_34] : memref<3x64x32xbf16, #tpu.memory_space<vmem>>, vector<1x64x32xbf16>
    %64 = vector.shape_cast %63 : vector<1x64x32xbf16> to vector<64x32xbf16>
    %cst_35 = arith.constant dense<0.000000e+00> : vector<8x32xf32>
    %65 = tpu.matmul %62, %64, %cst_35 {dimension_numbers = #tpu.dot_dimension_numbers<[1], [0], [0], [1], [0, 0, 1, 1], [], []>} : vector<8x64xbf16>, vector<64x32xbf16>, vector<8x32xf32> -> vector<8x32xf32>
    %66 = arith.addf %60, %65 : vector<8x32xf32>
    %cst_36 = arith.constant 0.000000e+00 : f32
    %67 = vector.shape_cast %4 : vector<8x1xi1> to vector<8x1xi1>
    %68 = vector.broadcast %67 : vector<8x1xi1> to vector<8x32xi1>
    %69 = vector.broadcast %cst_36 : f32 to vector<8x32xf32>
    %70 = arith.select %68, %66, %69 : vector<8x32xi1>, vector<8x32xf32>
    %71 = arith.addf %6, %70 : vector<8x32xf32>
    %cst_37 = arith.constant dense<0.000000e+00> : vector<8xf32>
    %72 = vector.multi_reduction <add>, %71, %cst_37 [1] : vector<8x32xf32> to vector<8xf32>
    %73 = vector.shape_cast %72 : vector<8xf32> to vector<8x1xf32>
    %cst_38 = arith.constant 3.200000e+01 : f32
    %74 = vector.broadcast %cst_38 : f32 to vector<8x1xf32>
    %75 = arith.divf %73, %74 : vector<8x1xf32>
    %76 = vector.broadcast %75 : vector<8x1xf32> to vector<8x32xf32>
    %77 = arith.subf %71, %76 : vector<8x32xf32>
    %78 = arith.mulf %77, %77 : vector<8x32xf32>
    %cst_39 = arith.constant dense<0.000000e+00> : vector<8xf32>
    %79 = vector.multi_reduction <add>, %78, %cst_39 [1] : vector<8x32xf32> to vector<8xf32>
    %80 = vector.shape_cast %79 : vector<8xf32> to vector<8x1xf32>
    %cst_40 = arith.constant 3.200000e+01 : f32
    %81 = vector.broadcast %cst_40 : f32 to vector<8x1xf32>
    %82 = arith.divf %80, %81 : vector<8x1xf32>
    %83 = vector.broadcast %75 : vector<8x1xf32> to vector<8x32xf32>
    %84 = arith.subf %71, %83 : vector<8x32xf32>
    %cst_41 = arith.constant 9.99999974E-6 : f32
    %85 = vector.broadcast %cst_41 : f32 to vector<8x1xf32>
    %86 = arith.addf %82, %85 : vector<8x1xf32>
    %87 = math.rsqrt %86 : vector<8x1xf32>
    %88 = vector.broadcast %87 : vector<8x1xf32> to vector<8x32xf32>
    %89 = arith.mulf %84, %88 : vector<8x32xf32>
    %c0_42 = arith.constant 0 : index
    %c0_43 = arith.constant 0 : index
    %90 = vector.load %arg7[%c0_42, %c0_43] : memref<1x32xf32, #tpu.memory_space<vmem>>, vector<1x32xf32>
    %91 = vector.broadcast %90 : vector<1x32xf32> to vector<8x32xf32>
    %92 = arith.mulf %89, %91 : vector<8x32xf32>
    %c0_44 = arith.constant 0 : index
    %c0_45 = arith.constant 0 : index
    %93 = vector.load %arg8[%c0_44, %c0_45] : memref<1x32xf32, #tpu.memory_space<vmem>>, vector<1x32xf32>
    %94 = vector.broadcast %93 : vector<1x32xf32> to vector<8x32xf32>
    %95 = arith.addf %92, %94 : vector<8x32xf32>
    %c0_46 = arith.constant 0 : index
    %c0_47 = arith.constant 0 : index
    %c0_48 = arith.constant 0 : index
    %96 = vector.load %arg9[%c0_46, %c0_47, %c0_48] : memref<1x8x32xf32, #tpu.memory_space<vmem>>, vector<1x8x32xf32>
    %97 = vector.shape_cast %96 : vector<1x8x32xf32> to vector<8x32xf32>
    %98 = vector.shape_cast %95 : vector<8x32xf32> to vector<1x8x32xf32>
    tpu.vector_store %arg9[%c0_46, %c0_47, %c0_48], %98 {strides = array<i32>} : memref<1x8x32xf32, #tpu.memory_space<vmem>>, vector<1x8x32xf32>,
    return
  }
  func.func @transform_0(%arg0: i32, %arg1: memref<2xi32, #tpu.memory_space<smem>>) -> (i32, i32, i32) {
    %c0_i32 = arith.constant 0 : i32
    %c0_i32_0 = arith.constant 0 : i32
    %c0_i32_1 = arith.constant 0 : i32
    return %arg0, %c0_i32, %c0_i32_0 : i32, i32, i32
  }
  func.func @transform_1(%arg0: i32, %arg1: memref<2xi32, #tpu.memory_space<smem>>) -> (i32, i32, i32) {
    %c0_i32 = arith.constant 0 : i32
    %c0_i32_0 = arith.constant 0 : i32
    %c0_i32_1 = arith.constant 0 : i32
    %c0_i32_2 = arith.constant 0 : i32
    return %c0_i32, %c0_i32_0, %c0_i32_1 : i32, i32, i32
  }
  func.func @transform_2(%arg0: i32, %arg1: memref<2xi32, #tpu.memory_space<smem>>) -> (i32, i32) {
    %c0_i32 = arith.constant 0 : i32
    %c0_i32_0 = arith.constant 0 : i32
    %c0_i32_1 = arith.constant 0 : i32
    return %c0_i32, %c0_i32_0 : i32, i32
  }
  func.func @transform_3(%arg0: i32, %arg1: memref<2xi32, #tpu.memory_space<smem>>) -> (i32, i32, i32) {
    %c0_i32 = arith.constant 0 : i32
    %c0_i32_0 = arith.constant 0 : i32
    %c0_i32_1 = arith.constant 0 : i32
    %c0_i32_2 = arith.constant 0 : i32
    return %c0_i32, %c0_i32_0, %c0_i32_1 : i32, i32, i32
  }
  func.func @transform_4(%arg0: i32, %arg1: memref<2xi32, #tpu.memory_space<smem>>) -> (i32, i32) {
    %c0_i32 = arith.constant 0 : i32
    %c0_i32_0 = arith.constant 0 : i32
    %c0_i32_1 = arith.constant 0 : i32
    return %c0_i32, %c0_i32_0 : i32, i32
  }
  func.func @transform_5(%arg0: i32, %arg1: memref<2xi32, #tpu.memory_space<smem>>) -> (i32, i32) {
    %c0_i32 = arith.constant 0 : i32
    %c0_i32_0 = arith.constant 0 : i32
    %c0_i32_1 = arith.constant 0 : i32
    return %c0_i32, %c0_i32_0 : i32, i32
  }
  func.func @transform_6(%arg0: i32, %arg1: memref<2xi32, #tpu.memory_space<smem>>) -> (i32, i32) {
    %c0_i32 = arith.constant 0 : i32
    %c0_i32_0 = arith.constant 0 : i32
    %c0_i32_1 = arith.constant 0 : i32
    return %c0_i32, %c0_i32_0 : i32, i32
  }
  func.func @transform_7(%arg0: i32, %arg1: memref<2xi32, #tpu.memory_space<smem>>) -> (i32, i32, i32) {
    %c0_i32 = arith.constant 0 : i32
    %c0_i32_0 = arith.constant 0 : i32
    %c0_i32_1 = arith.constant 0 : i32
    return %arg0, %c0_i32, %c0_i32_0 : i32, i32, i32
  }
}

module attributes {stable_mosaic.version = 11 : i64} {
  func.func @_attn_block_kernel(%arg0: i32, %arg1: memref<2xi32, #tpu.memory_space<smem>>, %arg2: memref<1x8x32xf32, #tpu.memory_space<vmem>>, %arg3: memref<32x96xbf16, #tpu.memory_space<vmem>>, %arg4: memref<1x96xf32, #tpu.memory_space<vmem>>, %arg5: memref<2x16x32xbf16, #tpu.memory_space<vmem>>, %arg6: memref<1x32xf32, #tpu.memory_space<vmem>>, %arg7: memref<16x9xbf16, #tpu.memory_space<vmem>>, %arg8: memref<9x16xbf16, #tpu.memory_space<vmem>>, %arg9: memref<1x32xf32, #tpu.memory_space<vmem>>, %arg10: memref<1x32xf32, #tpu.memory_space<vmem>>, %arg11: memref<1x8x32xf32, #tpu.memory_space<vmem>>) attributes {dimension_semantics = [#tpu.dimension_semantics<parallel>], iteration_bounds = array<i64: 2>, scalar_prefetch = 1 : i64, scratch_operands = 0 : i64, tpu.core_type = #tpu.core_type<tc>, window_params = [{transform_indices = @transform_0, window_bounds = array<i64: 1, 8, 32>}, {pipeline_mode = #tpu.pipeline_mode<synchronous>, transform_indices = @transform_1, window_bounds = array<i64: 32, 96>}, {pipeline_mode = #tpu.pipeline_mode<synchronous>, transform_indices = @transform_2, window_bounds = array<i64: 1, 96>}, {pipeline_mode = #tpu.pipeline_mode<synchronous>, transform_indices = @transform_3, window_bounds = array<i64: 2, 16, 32>}, {pipeline_mode = #tpu.pipeline_mode<synchronous>, transform_indices = @transform_4, window_bounds = array<i64: 1, 32>}, {pipeline_mode = #tpu.pipeline_mode<synchronous>, transform_indices = @transform_5, window_bounds = array<i64: 16, 9>}, {pipeline_mode = #tpu.pipeline_mode<synchronous>, transform_indices = @transform_6, window_bounds = array<i64: 9, 16>}, {pipeline_mode = #tpu.pipeline_mode<synchronous>, transform_indices = @transform_7, window_bounds = array<i64: 1, 32>}, {pipeline_mode = #tpu.pipeline_mode<synchronous>, transform_indices = @transform_8, window_bounds = array<i64: 1, 32>}, {transform_indices = @transform_9, window_bounds = array<i64: 1, 8, 32>}]} {
    %0 = arith.index_cast %arg0 : i32 to index
    %1 = memref.load %arg1[%0] : memref<2xi32, #tpu.memory_space<smem>>
    %2 = tpu.iota {dimensions = array<i32: 0>} : vector<8x8xi32>
    %3 = tpu.iota {dimensions = array<i32: 1>} : vector<8x8xi32>
    %4 = arith.subi %3, %2 : vector<8x8xi32>
    %5 = vector.broadcast %1 : i32 to vector<8x8xi32>
    %6 = arith.cmpi slt, %2, %5 : vector<8x8xi32>
    %7 = vector.broadcast %1 : i32 to vector<8x8xi32>
    %8 = arith.cmpi slt, %3, %7 : vector<8x8xi32>
    %9 = arith.andi %6, %8 : vector<8x8xi1>
    %c-4_i32 = arith.constant -4 : i32
    %10 = vector.broadcast %c-4_i32 : i32 to vector<8x8xi32>
    %11 = arith.cmpi eq, %4, %10 : vector<8x8xi32>
    %c-3_i32 = arith.constant -3 : i32
    %12 = vector.broadcast %c-3_i32 : i32 to vector<8x8xi32>
    %13 = arith.cmpi eq, %4, %12 : vector<8x8xi32>
    %c-2_i32 = arith.constant -2 : i32
    %14 = vector.broadcast %c-2_i32 : i32 to vector<8x8xi32>
    %15 = arith.cmpi eq, %4, %14 : vector<8x8xi32>
    %c-1_i32 = arith.constant -1 : i32
    %16 = vector.broadcast %c-1_i32 : i32 to vector<8x8xi32>
    %17 = arith.cmpi eq, %4, %16 : vector<8x8xi32>
    %c0_i32 = arith.constant 0 : i32
    %18 = vector.broadcast %c0_i32 : i32 to vector<8x8xi32>
    %19 = arith.cmpi eq, %4, %18 : vector<8x8xi32>
    %c1_i32 = arith.constant 1 : i32
    %20 = vector.broadcast %c1_i32 : i32 to vector<8x8xi32>
    %21 = arith.cmpi eq, %4, %20 : vector<8x8xi32>
    %c2_i32 = arith.constant 2 : i32
    %22 = vector.broadcast %c2_i32 : i32 to vector<8x8xi32>
    %23 = arith.cmpi eq, %4, %22 : vector<8x8xi32>
    %c3_i32 = arith.constant 3 : i32
    %24 = vector.broadcast %c3_i32 : i32 to vector<8x8xi32>
    %25 = arith.cmpi eq, %4, %24 : vector<8x8xi32>
    %c4_i32 = arith.constant 4 : i32
    %26 = vector.broadcast %c4_i32 : i32 to vector<8x8xi32>
    %27 = arith.cmpi eq, %4, %26 : vector<8x8xi32>
    %c0 = arith.constant 0 : index
    %c0_0 = arith.constant 0 : index
    %c0_1 = arith.constant 0 : index
    %28 = vector.load %arg2[%c0, %c0_0, %c0_1] : memref<1x8x32xf32, #tpu.memory_space<vmem>>, vector<1x8x32xf32>
    %29 = vector.shape_cast %28 : vector<1x8x32xf32> to vector<8x32xf32>
    %30 = tpu.iota {dimensions = array<i32: 0>} : vector<8x1xi32>
    %31 = vector.broadcast %1 : i32 to vector<8x1xi32>
    %32 = arith.cmpi slt, %30, %31 : vector<8x1xi32>
    %cst = arith.constant 0.000000e+00 : f32
    %33 = vector.shape_cast %32 : vector<8x1xi1> to vector<8x1xi1>
    %34 = vector.broadcast %33 : vector<8x1xi1> to vector<8x32xi1>
    %35 = vector.broadcast %cst : f32 to vector<8x32xf32>
    %36 = arith.select %34, %29, %35 : vector<8x32xi1>, vector<8x32xf32>
    %37 = arith.truncf %36 : vector<8x32xf32> to vector<8x32xbf16>
    %c0_2 = arith.constant 0 : index
    %c0_3 = arith.constant 0 : index
    %38 = vector.load %arg3[%c0_2, %c0_3] : memref<32x96xbf16, #tpu.memory_space<vmem>>, vector<32x96xbf16>
    %cst_4 = arith.constant dense<0.000000e+00> : vector<8x96xf32>
    %39 = tpu.matmul %37, %38, %cst_4 {dimension_numbers = #tpu.dot_dimension_numbers<[1], [0], [0], [1], [0, 0, 1, 1], [], []>} : vector<8x32xbf16>, vector<32x96xbf16>, vector<8x96xf32> -> vector<8x96xf32>
    %c0_5 = arith.constant 0 : index
    %c0_6 = arith.constant 0 : index
    %40 = vector.load %arg4[%c0_5, %c0_6] : memref<1x96xf32, #tpu.memory_space<vmem>>, vector<1x96xf32>
    %41 = vector.broadcast %40 : vector<1x96xf32> to vector<8x96xf32>
    %42 = arith.addf %39, %41 : vector<8x96xf32>
    %cst_7 = arith.constant 0.000000e+00 : f32
    %43 = vector.broadcast %cst_7 : f32 to vector<8x32xf32>
    %44 = vector.extract_strided_slice %42 {offsets = [0, 0], sizes = [8, 16], strides = [1, 1]} : vector<8x96xf32> to vector<8x16xf32>
    %cst_8 = arith.constant 2.500000e-01 : f32
    %45 = vector.broadcast %cst_8 : f32 to vector<8x16xf32>
    %46 = arith.mulf %44, %45 : vector<8x16xf32>
    %47 = arith.truncf %46 : vector<8x16xf32> to vector<8x16xbf16>
    %48 = vector.extract_strided_slice %42 {offsets = [0, 32], sizes = [8, 16], strides = [1, 1]} : vector<8x96xf32> to vector<8x16xf32>
    %49 = arith.truncf %48 : vector<8x16xf32> to vector<8x16xbf16>
    %50 = vector.extract_strided_slice %42 {offsets = [0, 64], sizes = [8, 16], strides = [1, 1]} : vector<8x96xf32> to vector<8x16xf32>
    %51 = arith.truncf %50 : vector<8x16xf32> to vector<8x16xbf16>
    %cst_9 = arith.constant dense<0.000000e+00> : vector<8x8xf32>
    %52 = tpu.matmul %47, %49, %cst_9 {dimension_numbers = #tpu.dot_dimension_numbers<[1], [1], [0], [0], [0, 0, 1, 0], [], []>} : vector<8x16xbf16>, vector<8x16xbf16>, vector<8x8xf32> -> vector<8x8xf32>
    %c0_10 = arith.constant 0 : index
    %c0_11 = arith.constant 0 : index
    %53 = vector.load %arg7[%c0_10, %c0_11] : memref<16x9xbf16, #tpu.memory_space<vmem>>, vector<16x9xbf16>
    %cst_12 = arith.constant dense<0.000000e+00> : vector<8x9xf32>
    %54 = tpu.matmul %47, %53, %cst_12 {dimension_numbers = #tpu.dot_dimension_numbers<[1], [0], [0], [1], [0, 0, 1, 1], [], []>} : vector<8x16xbf16>, vector<16x9xbf16>, vector<8x9xf32> -> vector<8x9xf32>
    %cst_13 = arith.constant 0.000000e+00 : f32
    %55 = vector.broadcast %cst_13 : f32 to vector<8x8xf32>
    %56 = vector.extract_strided_slice %54 {offsets = [0, 0], sizes = [8, 1], strides = [1, 1]} : vector<8x9xf32> to vector<8x1xf32>
    %57 = vector.shape_cast %56 : vector<8x1xf32> to vector<8x1xf32>
    %58 = vector.broadcast %57 : vector<8x1xf32> to vector<8x8xf32>
    %59 = arith.select %11, %58, %55 : vector<8x8xi1>, vector<8x8xf32>
    %60 = vector.extract_strided_slice %54 {offsets = [0, 1], sizes = [8, 1], strides = [1, 1]} : vector<8x9xf32> to vector<8x1xf32>
    %61 = vector.shape_cast %60 : vector<8x1xf32> to vector<8x1xf32>
    %62 = vector.broadcast %61 : vector<8x1xf32> to vector<8x8xf32>
    %63 = arith.select %13, %62, %59 : vector<8x8xi1>, vector<8x8xf32>
    %64 = vector.extract_strided_slice %54 {offsets = [0, 2], sizes = [8, 1], strides = [1, 1]} : vector<8x9xf32> to vector<8x1xf32>
    %65 = vector.shape_cast %64 : vector<8x1xf32> to vector<8x1xf32>
    %66 = vector.broadcast %65 : vector<8x1xf32> to vector<8x8xf32>
    %67 = arith.select %15, %66, %63 : vector<8x8xi1>, vector<8x8xf32>
    %68 = vector.extract_strided_slice %54 {offsets = [0, 3], sizes = [8, 1], strides = [1, 1]} : vector<8x9xf32> to vector<8x1xf32>
    %69 = vector.shape_cast %68 : vector<8x1xf32> to vector<8x1xf32>
    %70 = vector.broadcast %69 : vector<8x1xf32> to vector<8x8xf32>
    %71 = arith.select %17, %70, %67 : vector<8x8xi1>, vector<8x8xf32>
    %72 = vector.extract_strided_slice %54 {offsets = [0, 4], sizes = [8, 1], strides = [1, 1]} : vector<8x9xf32> to vector<8x1xf32>
    %73 = vector.shape_cast %72 : vector<8x1xf32> to vector<8x1xf32>
    %74 = vector.broadcast %73 : vector<8x1xf32> to vector<8x8xf32>
    %75 = arith.select %19, %74, %71 : vector<8x8xi1>, vector<8x8xf32>
    %76 = vector.extract_strided_slice %54 {offsets = [0, 5], sizes = [8, 1], strides = [1, 1]} : vector<8x9xf32> to vector<8x1xf32>
    %77 = vector.shape_cast %76 : vector<8x1xf32> to vector<8x1xf32>
    %78 = vector.broadcast %77 : vector<8x1xf32> to vector<8x8xf32>
    %79 = arith.select %21, %78, %75 : vector<8x8xi1>, vector<8x8xf32>
    %80 = vector.extract_strided_slice %54 {offsets = [0, 6], sizes = [8, 1], strides = [1, 1]} : vector<8x9xf32> to vector<8x1xf32>
    %81 = vector.shape_cast %80 : vector<8x1xf32> to vector<8x1xf32>
    %82 = vector.broadcast %81 : vector<8x1xf32> to vector<8x8xf32>
    %83 = arith.select %23, %82, %79 : vector<8x8xi1>, vector<8x8xf32>
    %84 = vector.extract_strided_slice %54 {offsets = [0, 7], sizes = [8, 1], strides = [1, 1]} : vector<8x9xf32> to vector<8x1xf32>
    %85 = vector.shape_cast %84 : vector<8x1xf32> to vector<8x1xf32>
    %86 = vector.broadcast %85 : vector<8x1xf32> to vector<8x8xf32>
    %87 = arith.select %25, %86, %83 : vector<8x8xi1>, vector<8x8xf32>
    %88 = vector.extract_strided_slice %54 {offsets = [0, 8], sizes = [8, 1], strides = [1, 1]} : vector<8x9xf32> to vector<8x1xf32>
    %89 = vector.shape_cast %88 : vector<8x1xf32> to vector<8x1xf32>
    %90 = vector.broadcast %89 : vector<8x1xf32> to vector<8x8xf32>
    %91 = arith.select %27, %90, %87 : vector<8x8xi1>, vector<8x8xf32>
    %92 = arith.addf %52, %91 : vector<8x8xf32>
    %cst_14 = arith.constant -1.000000e+04 : f32
    %93 = vector.broadcast %cst_14 : f32 to vector<8x8xf32>
    %94 = arith.select %9, %92, %93 : vector<8x8xi1>, vector<8x8xf32>
    %cst_15 = arith.constant dense<0xFF800000> : vector<8xf32>
    %95 = vector.multi_reduction <maximumf>, %94, %cst_15 [1] : vector<8x8xf32> to vector<8xf32>
    %96 = vector.shape_cast %95 : vector<8xf32> to vector<8x1xf32>
    %97 = vector.broadcast %96 : vector<8x1xf32> to vector<8x8xf32>
    %98 = arith.subf %94, %97 : vector<8x8xf32>
    %99 = math.exp %98 : vector<8x8xf32>
    %cst_16 = arith.constant dense<0.000000e+00> : vector<8xf32>
    %100 = vector.multi_reduction <add>, %99, %cst_16 [1] : vector<8x8xf32> to vector<8xf32>
    %101 = vector.shape_cast %100 : vector<8xf32> to vector<8x1xf32>
    %102 = tpu.reciprocal %101 {approx = true} : vector<8x1xf32> -> vector<8x1xf32>
    %103 = vector.broadcast %102 : vector<8x1xf32> to vector<8x8xf32>
    %104 = arith.mulf %99, %103 : vector<8x8xf32>
    %105 = arith.truncf %104 : vector<8x8xf32> to vector<8x8xbf16>
    %cst_17 = arith.constant dense<0.000000e+00> : vector<8x16xf32>
    %106 = tpu.matmul %105, %51, %cst_17 {dimension_numbers = #tpu.dot_dimension_numbers<[1], [0], [0], [1], [0, 0, 1, 1], [], []>} : vector<8x8xbf16>, vector<8x16xbf16>, vector<8x16xf32> -> vector<8x16xf32>
    %cst_18 = arith.constant 0.000000e+00 : f32
    %107 = vector.broadcast %cst_18 : f32 to vector<8x8xf32>
    %108 = arith.select %11, %104, %107 : vector<8x8xi1>, vector<8x8xf32>
    %cst_19 = arith.constant dense<0.000000e+00> : vector<8xf32>
    %109 = vector.multi_reduction <add>, %108, %cst_19 [1] : vector<8x8xf32> to vector<8xf32>
    %110 = vector.shape_cast %109 : vector<8xf32> to vector<8x1xf32>
    %cst_20 = arith.constant 0.000000e+00 : f32
    %111 = vector.broadcast %cst_20 : f32 to vector<8x8xf32>
    %112 = arith.select %13, %104, %111 : vector<8x8xi1>, vector<8x8xf32>
    %cst_21 = arith.constant dense<0.000000e+00> : vector<8xf32>
    %113 = vector.multi_reduction <add>, %112, %cst_21 [1] : vector<8x8xf32> to vector<8xf32>
    %114 = vector.shape_cast %113 : vector<8xf32> to vector<8x1xf32>
    %cst_22 = arith.constant 0.000000e+00 : f32
    %115 = vector.broadcast %cst_22 : f32 to vector<8x8xf32>
    %116 = arith.select %15, %104, %115 : vector<8x8xi1>, vector<8x8xf32>
    %cst_23 = arith.constant dense<0.000000e+00> : vector<8xf32>
    %117 = vector.multi_reduction <add>, %116, %cst_23 [1] : vector<8x8xf32> to vector<8xf32>
    %118 = vector.shape_cast %117 : vector<8xf32> to vector<8x1xf32>
    %cst_24 = arith.constant 0.000000e+00 : f32
    %119 = vector.broadcast %cst_24 : f32 to vector<8x8xf32>
    %120 = arith.select %17, %104, %119 : vector<8x8xi1>, vector<8x8xf32>
    %cst_25 = arith.constant dense<0.000000e+00> : vector<8xf32>
    %121 = vector.multi_reduction <add>, %120, %cst_25 [1] : vector<8x8xf32> to vector<8xf32>
    %122 = vector.shape_cast %121 : vector<8xf32> to vector<8x1xf32>
    %cst_26 = arith.constant 0.000000e+00 : f32
    %123 = vector.broadcast %cst_26 : f32 to vector<8x8xf32>
    %124 = arith.select %19, %104, %123 : vector<8x8xi1>, vector<8x8xf32>
    %cst_27 = arith.constant dense<0.000000e+00> : vector<8xf32>
    %125 = vector.multi_reduction <add>, %124, %cst_27 [1] : vector<8x8xf32> to vector<8xf32>
    %126 = vector.shape_cast %125 : vector<8xf32> to vector<8x1xf32>
    %cst_28 = arith.constant 0.000000e+00 : f32
    %127 = vector.broadcast %cst_28 : f32 to vector<8x8xf32>
    %128 = arith.select %21, %104, %127 : vector<8x8xi1>, vector<8x8xf32>
    %cst_29 = arith.constant dense<0.000000e+00> : vector<8xf32>
    %129 = vector.multi_reduction <add>, %128, %cst_29 [1] : vector<8x8xf32> to vector<8xf32>
    %130 = vector.shape_cast %129 : vector<8xf32> to vector<8x1xf32>
    %cst_30 = arith.constant 0.000000e+00 : f32
    %131 = vector.broadcast %cst_30 : f32 to vector<8x8xf32>
    %132 = arith.select %23, %104, %131 : vector<8x8xi1>, vector<8x8xf32>
    %cst_31 = arith.constant dense<0.000000e+00> : vector<8xf32>
    %133 = vector.multi_reduction <add>, %132, %cst_31 [1] : vector<8x8xf32> to vector<8xf32>
    %134 = vector.shape_cast %133 : vector<8xf32> to vector<8x1xf32>
    %cst_32 = arith.constant 0.000000e+00 : f32
    %135 = vector.broadcast %cst_32 : f32 to vector<8x8xf32>
    %136 = arith.select %25, %104, %135 : vector<8x8xi1>, vector<8x8xf32>
    %cst_33 = arith.constant dense<0.000000e+00> : vector<8xf32>
    %137 = vector.multi_reduction <add>, %136, %cst_33 [1] : vector<8x8xf32> to vector<8xf32>
    %138 = vector.shape_cast %137 : vector<8xf32> to vector<8x1xf32>
    %cst_34 = arith.constant 0.000000e+00 : f32
    %139 = vector.broadcast %cst_34 : f32 to vector<8x8xf32>
    %140 = arith.select %27, %104, %139 : vector<8x8xi1>, vector<8x8xf32>
    %cst_35 = arith.constant dense<0.000000e+00> : vector<8xf32>
    %141 = vector.multi_reduction <add>, %140, %cst_35 [1] : vector<8x8xf32> to vector<8xf32>
    %142 = vector.shape_cast %141 : vector<8xf32> to vector<8x1xf32>
    %143 = tpu.concatenate %110, %114, %118, %122, %126, %130, %134, %138, %142 in 1 : vector<8x1xf32>, vector<8x1xf32>, vector<8x1xf32>, vector<8x1xf32>, vector<8x1xf32>, vector<8x1xf32>, vector<8x1xf32>, vector<8x1xf32>, vector<8x1xf32> -> vector<8x9xf32>
    %144 = arith.truncf %143 : vector<8x9xf32> to vector<8x9xbf16>
    %c0_36 = arith.constant 0 : index
    %c0_37 = arith.constant 0 : index
    %145 = vector.load %arg8[%c0_36, %c0_37] : memref<9x16xbf16, #tpu.memory_space<vmem>>, vector<9x16xbf16>
    %cst_38 = arith.constant dense<0.000000e+00> : vector<8x16xf32>
    %146 = tpu.matmul %144, %145, %cst_38 {dimension_numbers = #tpu.dot_dimension_numbers<[1], [0], [0], [1], [0, 0, 1, 1], [], []>} : vector<8x9xbf16>, vector<9x16xbf16>, vector<8x16xf32> -> vector<8x16xf32>
    %147 = arith.addf %106, %146 : vector<8x16xf32>
    %148 = arith.truncf %147 : vector<8x16xf32> to vector<8x16xbf16>
    %c0_39 = arith.constant 0 : index
    %c0_40 = arith.constant 0 : index
    %c0_41 = arith.constant 0 : index
    %149 = vector.load %arg5[%c0_39, %c0_40, %c0_41] : memref<2x16x32xbf16, #tpu.memory_space<vmem>>, vector<1x16x32xbf16>
    %150 = vector.shape_cast %149 : vector<1x16x32xbf16> to vector<16x32xbf16>
    %cst_42 = arith.constant dense<0.000000e+00> : vector<8x32xf32>
    %151 = tpu.matmul %148, %150, %cst_42 {dimension_numbers = #tpu.dot_dimension_numbers<[1], [0], [0], [1], [0, 0, 1, 1], [], []>} : vector<8x16xbf16>, vector<16x32xbf16>, vector<8x32xf32> -> vector<8x32xf32>
    %152 = arith.addf %43, %151 : vector<8x32xf32>
    %153 = vector.extract_strided_slice %42 {offsets = [0, 16], sizes = [8, 16], strides = [1, 1]} : vector<8x96xf32> to vector<8x16xf32>
    %cst_43 = arith.constant 2.500000e-01 : f32
    %154 = vector.broadcast %cst_43 : f32 to vector<8x16xf32>
    %155 = arith.mulf %153, %154 : vector<8x16xf32>
    %156 = arith.truncf %155 : vector<8x16xf32> to vector<8x16xbf16>
    %157 = vector.extract_strided_slice %42 {offsets = [0, 48], sizes = [8, 16], strides = [1, 1]} : vector<8x96xf32> to vector<8x16xf32>
    %158 = arith.truncf %157 : vector<8x16xf32> to vector<8x16xbf16>
    %159 = vector.extract_strided_slice %42 {offsets = [0, 80], sizes = [8, 16], strides = [1, 1]} : vector<8x96xf32> to vector<8x16xf32>
    %160 = arith.truncf %159 : vector<8x16xf32> to vector<8x16xbf16>
    %cst_44 = arith.constant dense<0.000000e+00> : vector<8x8xf32>
    %161 = tpu.matmul %156, %158, %cst_44 {dimension_numbers = #tpu.dot_dimension_numbers<[1], [1], [0], [0], [0, 0, 1, 0], [], []>} : vector<8x16xbf16>, vector<8x16xbf16>, vector<8x8xf32> -> vector<8x8xf32>
    %c0_45 = arith.constant 0 : index
    %c0_46 = arith.constant 0 : index
    %162 = vector.load %arg7[%c0_45, %c0_46] : memref<16x9xbf16, #tpu.memory_space<vmem>>, vector<16x9xbf16>
    %cst_47 = arith.constant dense<0.000000e+00> : vector<8x9xf32>
    %163 = tpu.matmul %156, %162, %cst_47 {dimension_numbers = #tpu.dot_dimension_numbers<[1], [0], [0], [1], [0, 0, 1, 1], [], []>} : vector<8x16xbf16>, vector<16x9xbf16>, vector<8x9xf32> -> vector<8x9xf32>
    %cst_48 = arith.constant 0.000000e+00 : f32
    %164 = vector.broadcast %cst_48 : f32 to vector<8x8xf32>
    %165 = vector.extract_strided_slice %163 {offsets = [0, 0], sizes = [8, 1], strides = [1, 1]} : vector<8x9xf32> to vector<8x1xf32>
    %166 = vector.shape_cast %165 : vector<8x1xf32> to vector<8x1xf32>
    %167 = vector.broadcast %166 : vector<8x1xf32> to vector<8x8xf32>
    %168 = arith.select %11, %167, %164 : vector<8x8xi1>, vector<8x8xf32>
    %169 = vector.extract_strided_slice %163 {offsets = [0, 1], sizes = [8, 1], strides = [1, 1]} : vector<8x9xf32> to vector<8x1xf32>
    %170 = vector.shape_cast %169 : vector<8x1xf32> to vector<8x1xf32>
    %171 = vector.broadcast %170 : vector<8x1xf32> to vector<8x8xf32>
    %172 = arith.select %13, %171, %168 : vector<8x8xi1>, vector<8x8xf32>
    %173 = vector.extract_strided_slice %163 {offsets = [0, 2], sizes = [8, 1], strides = [1, 1]} : vector<8x9xf32> to vector<8x1xf32>
    %174 = vector.shape_cast %173 : vector<8x1xf32> to vector<8x1xf32>
    %175 = vector.broadcast %174 : vector<8x1xf32> to vector<8x8xf32>
    %176 = arith.select %15, %175, %172 : vector<8x8xi1>, vector<8x8xf32>
    %177 = vector.extract_strided_slice %163 {offsets = [0, 3], sizes = [8, 1], strides = [1, 1]} : vector<8x9xf32> to vector<8x1xf32>
    %178 = vector.shape_cast %177 : vector<8x1xf32> to vector<8x1xf32>
    %179 = vector.broadcast %178 : vector<8x1xf32> to vector<8x8xf32>
    %180 = arith.select %17, %179, %176 : vector<8x8xi1>, vector<8x8xf32>
    %181 = vector.extract_strided_slice %163 {offsets = [0, 4], sizes = [8, 1], strides = [1, 1]} : vector<8x9xf32> to vector<8x1xf32>
    %182 = vector.shape_cast %181 : vector<8x1xf32> to vector<8x1xf32>
    %183 = vector.broadcast %182 : vector<8x1xf32> to vector<8x8xf32>
    %184 = arith.select %19, %183, %180 : vector<8x8xi1>, vector<8x8xf32>
    %185 = vector.extract_strided_slice %163 {offsets = [0, 5], sizes = [8, 1], strides = [1, 1]} : vector<8x9xf32> to vector<8x1xf32>
    %186 = vector.shape_cast %185 : vector<8x1xf32> to vector<8x1xf32>
    %187 = vector.broadcast %186 : vector<8x1xf32> to vector<8x8xf32>
    %188 = arith.select %21, %187, %184 : vector<8x8xi1>, vector<8x8xf32>
    %189 = vector.extract_strided_slice %163 {offsets = [0, 6], sizes = [8, 1], strides = [1, 1]} : vector<8x9xf32> to vector<8x1xf32>
    %190 = vector.shape_cast %189 : vector<8x1xf32> to vector<8x1xf32>
    %191 = vector.broadcast %190 : vector<8x1xf32> to vector<8x8xf32>
    %192 = arith.select %23, %191, %188 : vector<8x8xi1>, vector<8x8xf32>
    %193 = vector.extract_strided_slice %163 {offsets = [0, 7], sizes = [8, 1], strides = [1, 1]} : vector<8x9xf32> to vector<8x1xf32>
    %194 = vector.shape_cast %193 : vector<8x1xf32> to vector<8x1xf32>
    %195 = vector.broadcast %194 : vector<8x1xf32> to vector<8x8xf32>
    %196 = arith.select %25, %195, %192 : vector<8x8xi1>, vector<8x8xf32>
    %197 = vector.extract_strided_slice %163 {offsets = [0, 8], sizes = [8, 1], strides = [1, 1]} : vector<8x9xf32> to vector<8x1xf32>
    %198 = vector.shape_cast %197 : vector<8x1xf32> to vector<8x1xf32>
    %199 = vector.broadcast %198 : vector<8x1xf32> to vector<8x8xf32>
    %200 = arith.select %27, %199, %196 : vector<8x8xi1>, vector<8x8xf32>
    %201 = arith.addf %161, %200 : vector<8x8xf32>
    %cst_49 = arith.constant -1.000000e+04 : f32
    %202 = vector.broadcast %cst_49 : f32 to vector<8x8xf32>
    %203 = arith.select %9, %201, %202 : vector<8x8xi1>, vector<8x8xf32>
    %cst_50 = arith.constant dense<0xFF800000> : vector<8xf32>
    %204 = vector.multi_reduction <maximumf>, %203, %cst_50 [1] : vector<8x8xf32> to vector<8xf32>
    %205 = vector.shape_cast %204 : vector<8xf32> to vector<8x1xf32>
    %206 = vector.broadcast %205 : vector<8x1xf32> to vector<8x8xf32>
    %207 = arith.subf %203, %206 : vector<8x8xf32>
    %208 = math.exp %207 : vector<8x8xf32>
    %cst_51 = arith.constant dense<0.000000e+00> : vector<8xf32>
    %209 = vector.multi_reduction <add>, %208, %cst_51 [1] : vector<8x8xf32> to vector<8xf32>
    %210 = vector.shape_cast %209 : vector<8xf32> to vector<8x1xf32>
    %211 = tpu.reciprocal %210 {approx = true} : vector<8x1xf32> -> vector<8x1xf32>
    %212 = vector.broadcast %211 : vector<8x1xf32> to vector<8x8xf32>
    %213 = arith.mulf %208, %212 : vector<8x8xf32>
    %214 = arith.truncf %213 : vector<8x8xf32> to vector<8x8xbf16>
    %cst_52 = arith.constant dense<0.000000e+00> : vector<8x16xf32>
    %215 = tpu.matmul %214, %160, %cst_52 {dimension_numbers = #tpu.dot_dimension_numbers<[1], [0], [0], [1], [0, 0, 1, 1], [], []>} : vector<8x8xbf16>, vector<8x16xbf16>, vector<8x16xf32> -> vector<8x16xf32>
    %cst_53 = arith.constant 0.000000e+00 : f32
    %216 = vector.broadcast %cst_53 : f32 to vector<8x8xf32>
    %217 = arith.select %11, %213, %216 : vector<8x8xi1>, vector<8x8xf32>
    %cst_54 = arith.constant dense<0.000000e+00> : vector<8xf32>
    %218 = vector.multi_reduction <add>, %217, %cst_54 [1] : vector<8x8xf32> to vector<8xf32>
    %219 = vector.shape_cast %218 : vector<8xf32> to vector<8x1xf32>
    %cst_55 = arith.constant 0.000000e+00 : f32
    %220 = vector.broadcast %cst_55 : f32 to vector<8x8xf32>
    %221 = arith.select %13, %213, %220 : vector<8x8xi1>, vector<8x8xf32>
    %cst_56 = arith.constant dense<0.000000e+00> : vector<8xf32>
    %222 = vector.multi_reduction <add>, %221, %cst_56 [1] : vector<8x8xf32> to vector<8xf32>
    %223 = vector.shape_cast %222 : vector<8xf32> to vector<8x1xf32>
    %cst_57 = arith.constant 0.000000e+00 : f32
    %224 = vector.broadcast %cst_57 : f32 to vector<8x8xf32>
    %225 = arith.select %15, %213, %224 : vector<8x8xi1>, vector<8x8xf32>
    %cst_58 = arith.constant dense<0.000000e+00> : vector<8xf32>
    %226 = vector.multi_reduction <add>, %225, %cst_58 [1] : vector<8x8xf32> to vector<8xf32>
    %227 = vector.shape_cast %226 : vector<8xf32> to vector<8x1xf32>
    %cst_59 = arith.constant 0.000000e+00 : f32
    %228 = vector.broadcast %cst_59 : f32 to vector<8x8xf32>
    %229 = arith.select %17, %213, %228 : vector<8x8xi1>, vector<8x8xf32>
    %cst_60 = arith.constant dense<0.000000e+00> : vector<8xf32>
    %230 = vector.multi_reduction <add>, %229, %cst_60 [1] : vector<8x8xf32> to vector<8xf32>
    %231 = vector.shape_cast %230 : vector<8xf32> to vector<8x1xf32>
    %cst_61 = arith.constant 0.000000e+00 : f32
    %232 = vector.broadcast %cst_61 : f32 to vector<8x8xf32>
    %233 = arith.select %19, %213, %232 : vector<8x8xi1>, vector<8x8xf32>
    %cst_62 = arith.constant dense<0.000000e+00> : vector<8xf32>
    %234 = vector.multi_reduction <add>, %233, %cst_62 [1] : vector<8x8xf32> to vector<8xf32>
    %235 = vector.shape_cast %234 : vector<8xf32> to vector<8x1xf32>
    %cst_63 = arith.constant 0.000000e+00 : f32
    %236 = vector.broadcast %cst_63 : f32 to vector<8x8xf32>
    %237 = arith.select %21, %213, %236 : vector<8x8xi1>, vector<8x8xf32>
    %cst_64 = arith.constant dense<0.000000e+00> : vector<8xf32>
    %238 = vector.multi_reduction <add>, %237, %cst_64 [1] : vector<8x8xf32> to vector<8xf32>
    %239 = vector.shape_cast %238 : vector<8xf32> to vector<8x1xf32>
    %cst_65 = arith.constant 0.000000e+00 : f32
    %240 = vector.broadcast %cst_65 : f32 to vector<8x8xf32>
    %241 = arith.select %23, %213, %240 : vector<8x8xi1>, vector<8x8xf32>
    %cst_66 = arith.constant dense<0.000000e+00> : vector<8xf32>
    %242 = vector.multi_reduction <add>, %241, %cst_66 [1] : vector<8x8xf32> to vector<8xf32>
    %243 = vector.shape_cast %242 : vector<8xf32> to vector<8x1xf32>
    %cst_67 = arith.constant 0.000000e+00 : f32
    %244 = vector.broadcast %cst_67 : f32 to vector<8x8xf32>
    %245 = arith.select %25, %213, %244 : vector<8x8xi1>, vector<8x8xf32>
    %cst_68 = arith.constant dense<0.000000e+00> : vector<8xf32>
    %246 = vector.multi_reduction <add>, %245, %cst_68 [1] : vector<8x8xf32> to vector<8xf32>
    %247 = vector.shape_cast %246 : vector<8xf32> to vector<8x1xf32>
    %cst_69 = arith.constant 0.000000e+00 : f32
    %248 = vector.broadcast %cst_69 : f32 to vector<8x8xf32>
    %249 = arith.select %27, %213, %248 : vector<8x8xi1>, vector<8x8xf32>
    %cst_70 = arith.constant dense<0.000000e+00> : vector<8xf32>
    %250 = vector.multi_reduction <add>, %249, %cst_70 [1] : vector<8x8xf32> to vector<8xf32>
    %251 = vector.shape_cast %250 : vector<8xf32> to vector<8x1xf32>
    %252 = tpu.concatenate %219, %223, %227, %231, %235, %239, %243, %247, %251 in 1 : vector<8x1xf32>, vector<8x1xf32>, vector<8x1xf32>, vector<8x1xf32>, vector<8x1xf32>, vector<8x1xf32>, vector<8x1xf32>, vector<8x1xf32>, vector<8x1xf32> -> vector<8x9xf32>
    %253 = arith.truncf %252 : vector<8x9xf32> to vector<8x9xbf16>
    %c0_71 = arith.constant 0 : index
    %c0_72 = arith.constant 0 : index
    %254 = vector.load %arg8[%c0_71, %c0_72] : memref<9x16xbf16, #tpu.memory_space<vmem>>, vector<9x16xbf16>
    %cst_73 = arith.constant dense<0.000000e+00> : vector<8x16xf32>
    %255 = tpu.matmul %253, %254, %cst_73 {dimension_numbers = #tpu.dot_dimension_numbers<[1], [0], [0], [1], [0, 0, 1, 1], [], []>} : vector<8x9xbf16>, vector<9x16xbf16>, vector<8x16xf32> -> vector<8x16xf32>
    %256 = arith.addf %215, %255 : vector<8x16xf32>
    %257 = arith.truncf %256 : vector<8x16xf32> to vector<8x16xbf16>
    %c1 = arith.constant 1 : index
    %c0_74 = arith.constant 0 : index
    %c0_75 = arith.constant 0 : index
    %258 = vector.load %arg5[%c1, %c0_74, %c0_75] : memref<2x16x32xbf16, #tpu.memory_space<vmem>>, vector<1x16x32xbf16>
    %259 = vector.shape_cast %258 : vector<1x16x32xbf16> to vector<16x32xbf16>
    %cst_76 = arith.constant dense<0.000000e+00> : vector<8x32xf32>
    %260 = tpu.matmul %257, %259, %cst_76 {dimension_numbers = #tpu.dot_dimension_numbers<[1], [0], [0], [1], [0, 0, 1, 1], [], []>} : vector<8x16xbf16>, vector<16x32xbf16>, vector<8x32xf32> -> vector<8x32xf32>
    %261 = arith.addf %152, %260 : vector<8x32xf32>
    %c0_77 = arith.constant 0 : index
    %c0_78 = arith.constant 0 : index
    %262 = vector.load %arg6[%c0_77, %c0_78] : memref<1x32xf32, #tpu.memory_space<vmem>>, vector<1x32xf32>
    %263 = vector.broadcast %262 : vector<1x32xf32> to vector<8x32xf32>
    %264 = arith.addf %261, %263 : vector<8x32xf32>
    %265 = arith.addf %36, %264 : vector<8x32xf32>
    %cst_79 = arith.constant dense<0.000000e+00> : vector<8xf32>
    %266 = vector.multi_reduction <add>, %265, %cst_79 [1] : vector<8x32xf32> to vector<8xf32>
    %267 = vector.shape_cast %266 : vector<8xf32> to vector<8x1xf32>
    %cst_80 = arith.constant 3.200000e+01 : f32
    %268 = vector.broadcast %cst_80 : f32 to vector<8x1xf32>
    %269 = arith.divf %267, %268 : vector<8x1xf32>
    %270 = vector.broadcast %269 : vector<8x1xf32> to vector<8x32xf32>
    %271 = arith.subf %265, %270 : vector<8x32xf32>
    %272 = arith.mulf %271, %271 : vector<8x32xf32>
    %cst_81 = arith.constant dense<0.000000e+00> : vector<8xf32>
    %273 = vector.multi_reduction <add>, %272, %cst_81 [1] : vector<8x32xf32> to vector<8xf32>
    %274 = vector.shape_cast %273 : vector<8xf32> to vector<8x1xf32>
    %cst_82 = arith.constant 3.200000e+01 : f32
    %275 = vector.broadcast %cst_82 : f32 to vector<8x1xf32>
    %276 = arith.divf %274, %275 : vector<8x1xf32>
    %277 = vector.broadcast %269 : vector<8x1xf32> to vector<8x32xf32>
    %278 = arith.subf %265, %277 : vector<8x32xf32>
    %cst_83 = arith.constant 9.99999974E-6 : f32
    %279 = vector.broadcast %cst_83 : f32 to vector<8x1xf32>
    %280 = arith.addf %276, %279 : vector<8x1xf32>
    %281 = math.rsqrt %280 : vector<8x1xf32>
    %282 = vector.broadcast %281 : vector<8x1xf32> to vector<8x32xf32>
    %283 = arith.mulf %278, %282 : vector<8x32xf32>
    %c0_84 = arith.constant 0 : index
    %c0_85 = arith.constant 0 : index
    %284 = vector.load %arg9[%c0_84, %c0_85] : memref<1x32xf32, #tpu.memory_space<vmem>>, vector<1x32xf32>
    %285 = vector.broadcast %284 : vector<1x32xf32> to vector<8x32xf32>
    %286 = arith.mulf %283, %285 : vector<8x32xf32>
    %c0_86 = arith.constant 0 : index
    %c0_87 = arith.constant 0 : index
    %287 = vector.load %arg10[%c0_86, %c0_87] : memref<1x32xf32, #tpu.memory_space<vmem>>, vector<1x32xf32>
    %288 = vector.broadcast %287 : vector<1x32xf32> to vector<8x32xf32>
    %289 = arith.addf %286, %288 : vector<8x32xf32>
    %c0_88 = arith.constant 0 : index
    %c0_89 = arith.constant 0 : index
    %c0_90 = arith.constant 0 : index
    %290 = vector.load %arg11[%c0_88, %c0_89, %c0_90] : memref<1x8x32xf32, #tpu.memory_space<vmem>>, vector<1x8x32xf32>
    %291 = vector.shape_cast %290 : vector<1x8x32xf32> to vector<8x32xf32>
    %292 = vector.shape_cast %289 : vector<8x32xf32> to vector<1x8x32xf32>
    tpu.vector_store %arg11[%c0_88, %c0_89, %c0_90], %292 {strides = array<i32>} : memref<1x8x32xf32, #tpu.memory_space<vmem>>, vector<1x8x32xf32>,
    return
  }
  func.func @transform_0(%arg0: i32, %arg1: memref<2xi32, #tpu.memory_space<smem>>) -> (i32, i32, i32) {
    %c0_i32 = arith.constant 0 : i32
    %c0_i32_0 = arith.constant 0 : i32
    %c0_i32_1 = arith.constant 0 : i32
    return %arg0, %c0_i32, %c0_i32_0 : i32, i32, i32
  }
  func.func @transform_1(%arg0: i32, %arg1: memref<2xi32, #tpu.memory_space<smem>>) -> (i32, i32) {
    %c0_i32 = arith.constant 0 : i32
    %c0_i32_0 = arith.constant 0 : i32
    %c0_i32_1 = arith.constant 0 : i32
    return %c0_i32, %c0_i32_0 : i32, i32
  }
  func.func @transform_2(%arg0: i32, %arg1: memref<2xi32, #tpu.memory_space<smem>>) -> (i32, i32) {
    %c0_i32 = arith.constant 0 : i32
    %c0_i32_0 = arith.constant 0 : i32
    %c0_i32_1 = arith.constant 0 : i32
    return %c0_i32, %c0_i32_0 : i32, i32
  }
  func.func @transform_3(%arg0: i32, %arg1: memref<2xi32, #tpu.memory_space<smem>>) -> (i32, i32, i32) {
    %c0_i32 = arith.constant 0 : i32
    %c0_i32_0 = arith.constant 0 : i32
    %c0_i32_1 = arith.constant 0 : i32
    %c0_i32_2 = arith.constant 0 : i32
    return %c0_i32, %c0_i32_0, %c0_i32_1 : i32, i32, i32
  }
  func.func @transform_4(%arg0: i32, %arg1: memref<2xi32, #tpu.memory_space<smem>>) -> (i32, i32) {
    %c0_i32 = arith.constant 0 : i32
    %c0_i32_0 = arith.constant 0 : i32
    %c0_i32_1 = arith.constant 0 : i32
    return %c0_i32, %c0_i32_0 : i32, i32
  }
  func.func @transform_5(%arg0: i32, %arg1: memref<2xi32, #tpu.memory_space<smem>>) -> (i32, i32) {
    %c0_i32 = arith.constant 0 : i32
    %c0_i32_0 = arith.constant 0 : i32
    %c0_i32_1 = arith.constant 0 : i32
    return %c0_i32, %c0_i32_0 : i32, i32
  }
  func.func @transform_6(%arg0: i32, %arg1: memref<2xi32, #tpu.memory_space<smem>>) -> (i32, i32) {
    %c0_i32 = arith.constant 0 : i32
    %c0_i32_0 = arith.constant 0 : i32
    %c0_i32_1 = arith.constant 0 : i32
    return %c0_i32, %c0_i32_0 : i32, i32
  }
  func.func @transform_7(%arg0: i32, %arg1: memref<2xi32, #tpu.memory_space<smem>>) -> (i32, i32) {
    %c0_i32 = arith.constant 0 : i32
    %c0_i32_0 = arith.constant 0 : i32
    %c0_i32_1 = arith.constant 0 : i32
    return %c0_i32, %c0_i32_0 : i32, i32
  }
  func.func @transform_8(%arg0: i32, %arg1: memref<2xi32, #tpu.memory_space<smem>>) -> (i32, i32) {
    %c0_i32 = arith.constant 0 : i32
    %c0_i32_0 = arith.constant 0 : i32
    %c0_i32_1 = arith.constant 0 : i32
    return %c0_i32, %c0_i32_0 : i32, i32
  }
  func.func @transform_9(%arg0: i32, %arg1: memref<2xi32, #tpu.memory_space<smem>>) -> (i32, i32, i32) {
    %c0_i32 = arith.constant 0 : i32
    %c0_i32_0 = arith.constant 0 : i32
    %c0_i32_1 = arith.constant 0 : i32
    return %arg0, %c0_i32, %c0_i32_0 : i32, i32, i32
  }
}

module attributes {stable_mosaic.version = 11 : i64} {
  func.func @_proj_kernel(%arg0: i32, %arg1: memref<2xi32, #tpu.memory_space<smem>>, %arg2: memref<1x8x32xf32, #tpu.memory_space<vmem>>, %arg3: memref<32x12xbf16, #tpu.memory_space<vmem>>, %arg4: memref<1x12xf32, #tpu.memory_space<vmem>>, %arg5: memref<1x32x8xf32, #tpu.memory_space<vmem>>, %arg6: memref<1x6x8xf32, #tpu.memory_space<vmem>>, %arg7: memref<1x6x8xf32, #tpu.memory_space<vmem>>) attributes {dimension_semantics = [#tpu.dimension_semantics<parallel>], iteration_bounds = array<i64: 2>, scalar_prefetch = 1 : i64, scratch_operands = 0 : i64, tpu.core_type = #tpu.core_type<tc>, window_params = [{transform_indices = @transform_0, window_bounds = array<i64: 1, 8, 32>}, {pipeline_mode = #tpu.pipeline_mode<synchronous>, transform_indices = @transform_1, window_bounds = array<i64: 32, 12>}, {pipeline_mode = #tpu.pipeline_mode<synchronous>, transform_indices = @transform_2, window_bounds = array<i64: 1, 12>}, {transform_indices = @transform_3, window_bounds = array<i64: 1, 32, 8>}, {transform_indices = @transform_4, window_bounds = array<i64: 1, 6, 8>}, {transform_indices = @transform_5, window_bounds = array<i64: 1, 6, 8>}]} {
    %0 = arith.index_cast %arg0 : i32 to index
    %1 = memref.load %arg1[%0] : memref<2xi32, #tpu.memory_space<smem>>
    %2 = tpu.iota {dimensions = array<i32: 0>} : vector<8x1xi32>
    %3 = vector.broadcast %1 : i32 to vector<8x1xi32>
    %4 = arith.cmpi slt, %2, %3 : vector<8x1xi32>
    %c0 = arith.constant 0 : index
    %c0_0 = arith.constant 0 : index
    %c0_1 = arith.constant 0 : index
    %5 = vector.load %arg2[%c0, %c0_0, %c0_1] : memref<1x8x32xf32, #tpu.memory_space<vmem>>, vector<1x8x32xf32>
    %6 = vector.shape_cast %5 : vector<1x8x32xf32> to vector<8x32xf32>
    %cst = arith.constant 0.000000e+00 : f32
    %7 = vector.shape_cast %4 : vector<8x1xi1> to vector<8x1xi1>
    %8 = vector.broadcast %7 : vector<8x1xi1> to vector<8x32xi1>
    %9 = vector.broadcast %cst : f32 to vector<8x32xf32>
    %10 = arith.select %8, %6, %9 : vector<8x32xi1>, vector<8x32xf32>
    %11 = tpu.transpose %10, [1, 0] : vector<8x32xf32> -> vector<32x8xf32>
    %c0_2 = arith.constant 0 : index
    %c0_3 = arith.constant 0 : index
    %c0_4 = arith.constant 0 : index
    %12 = vector.load %arg5[%c0_2, %c0_3, %c0_4] : memref<1x32x8xf32, #tpu.memory_space<vmem>>, vector<1x32x8xf32>
    %13 = vector.shape_cast %12 : vector<1x32x8xf32> to vector<32x8xf32>
    %14 = vector.shape_cast %11 : vector<32x8xf32> to vector<1x32x8xf32>
    tpu.vector_store %arg5[%c0_2, %c0_3, %c0_4], %14 {strides = array<i32>} : memref<1x32x8xf32, #tpu.memory_space<vmem>>, vector<1x32x8xf32>,
    %15 = arith.truncf %10 : vector<8x32xf32> to vector<8x32xbf16>
    %c0_5 = arith.constant 0 : index
    %c0_6 = arith.constant 0 : index
    %16 = vector.load %arg3[%c0_5, %c0_6] : memref<32x12xbf16, #tpu.memory_space<vmem>>, vector<32x12xbf16>
    %cst_7 = arith.constant dense<0.000000e+00> : vector<8x12xf32>
    %17 = tpu.matmul %15, %16, %cst_7 {dimension_numbers = #tpu.dot_dimension_numbers<[1], [0], [0], [1], [0, 0, 1, 1], [], []>} : vector<8x32xbf16>, vector<32x12xbf16>, vector<8x12xf32> -> vector<8x12xf32>
    %c0_8 = arith.constant 0 : index
    %c0_9 = arith.constant 0 : index
    %18 = vector.load %arg4[%c0_8, %c0_9] : memref<1x12xf32, #tpu.memory_space<vmem>>, vector<1x12xf32>
    %19 = vector.broadcast %18 : vector<1x12xf32> to vector<8x12xf32>
    %20 = arith.addf %17, %19 : vector<8x12xf32>
    %cst_10 = arith.constant 0.000000e+00 : f32
    %21 = vector.shape_cast %4 : vector<8x1xi1> to vector<8x1xi1>
    %22 = vector.broadcast %21 : vector<8x1xi1> to vector<8x12xi1>
    %23 = vector.broadcast %cst_10 : f32 to vector<8x12xf32>
    %24 = arith.select %22, %20, %23 : vector<8x12xi1>, vector<8x12xf32>
    %25 = tpu.transpose %24, [1, 0] : vector<8x12xf32> -> vector<12x8xf32>
    %26 = vector.extract_strided_slice %25 {offsets = [0, 0], sizes = [6, 8], strides = [1, 1]} : vector<12x8xf32> to vector<6x8xf32>
    %c0_11 = arith.constant 0 : index
    %c0_12 = arith.constant 0 : index
    %c0_13 = arith.constant 0 : index
    %27 = vector.load %arg6[%c0_11, %c0_12, %c0_13] : memref<1x6x8xf32, #tpu.memory_space<vmem>>, vector<1x6x8xf32>
    %28 = vector.shape_cast %27 : vector<1x6x8xf32> to vector<6x8xf32>
    %29 = vector.shape_cast %26 : vector<6x8xf32> to vector<1x6x8xf32>
    tpu.vector_store %arg6[%c0_11, %c0_12, %c0_13], %29 {strides = array<i32>} : memref<1x6x8xf32, #tpu.memory_space<vmem>>, vector<1x6x8xf32>,
    %30 = vector.extract_strided_slice %25 {offsets = [6, 0], sizes = [6, 8], strides = [1, 1]} : vector<12x8xf32> to vector<6x8xf32>
    %c0_14 = arith.constant 0 : index
    %c0_15 = arith.constant 0 : index
    %c0_16 = arith.constant 0 : index
    %31 = vector.load %arg7[%c0_14, %c0_15, %c0_16] : memref<1x6x8xf32, #tpu.memory_space<vmem>>, vector<1x6x8xf32>
    %32 = vector.shape_cast %31 : vector<1x6x8xf32> to vector<6x8xf32>
    %33 = vector.shape_cast %30 : vector<6x8xf32> to vector<1x6x8xf32>
    tpu.vector_store %arg7[%c0_14, %c0_15, %c0_16], %33 {strides = array<i32>} : memref<1x6x8xf32, #tpu.memory_space<vmem>>, vector<1x6x8xf32>,
    return
  }
  func.func @transform_0(%arg0: i32, %arg1: memref<2xi32, #tpu.memory_space<smem>>) -> (i32, i32, i32) {
    %c0_i32 = arith.constant 0 : i32
    %c0_i32_0 = arith.constant 0 : i32
    %c0_i32_1 = arith.constant 0 : i32
    return %arg0, %c0_i32, %c0_i32_0 : i32, i32, i32
  }
  func.func @transform_1(%arg0: i32, %arg1: memref<2xi32, #tpu.memory_space<smem>>) -> (i32, i32) {
    %c0_i32 = arith.constant 0 : i32
    %c0_i32_0 = arith.constant 0 : i32
    %c0_i32_1 = arith.constant 0 : i32
    return %c0_i32, %c0_i32_0 : i32, i32
  }
  func.func @transform_2(%arg0: i32, %arg1: memref<2xi32, #tpu.memory_space<smem>>) -> (i32, i32) {
    %c0_i32 = arith.constant 0 : i32
    %c0_i32_0 = arith.constant 0 : i32
    %c0_i32_1 = arith.constant 0 : i32
    return %c0_i32, %c0_i32_0 : i32, i32
  }
  func.func @transform_3(%arg0: i32, %arg1: memref<2xi32, #tpu.memory_space<smem>>) -> (i32, i32, i32) {
    %c0_i32 = arith.constant 0 : i32
    %c0_i32_0 = arith.constant 0 : i32
    %c0_i32_1 = arith.constant 0 : i32
    return %arg0, %c0_i32, %c0_i32_0 : i32, i32, i32
  }
  func.func @transform_4(%arg0: i32, %arg1: memref<2xi32, #tpu.memory_space<smem>>) -> (i32, i32, i32) {
    %c0_i32 = arith.constant 0 : i32
    %c0_i32_0 = arith.constant 0 : i32
    %c0_i32_1 = arith.constant 0 : i32
    return %arg0, %c0_i32, %c0_i32_0 : i32, i32, i32
  }
  func.func @transform_5(%arg0: i32, %arg1: memref<2xi32, #tpu.memory_space<smem>>) -> (i32, i32, i32) {
    %c0_i32 = arith.constant 0 : i32
    %c0_i32_0 = arith.constant 0 : i32
    %c0_i32_1 = arith.constant 0 : i32
    return %arg0, %c0_i32, %c0_i32_0 : i32, i32, i32
  }
}

module attributes {stable_mosaic.version = 11 : i64} {
  func.func @_attn_block_kernel(%arg0: i32, %arg1: memref<2xi32, #tpu.memory_space<smem>>, %arg2: memref<1x8x32xf32, #tpu.memory_space<vmem>>, %arg3: memref<32x96xbf16, #tpu.memory_space<vmem>>, %arg4: memref<1x96xf32, #tpu.memory_space<vmem>>, %arg5: memref<2x16x32xbf16, #tpu.memory_space<vmem>>, %arg6: memref<1x32xf32, #tpu.memory_space<vmem>>, %arg7: memref<16x9xbf16, #tpu.memory_space<vmem>>, %arg8: memref<9x16xbf16, #tpu.memory_space<vmem>>, %arg9: memref<1x32xf32, #tpu.memory_space<vmem>>, %arg10: memref<1x32xf32, #tpu.memory_space<vmem>>, %arg11: memref<1x8x32xf32, #tpu.memory_space<vmem>>) attributes {dimension_semantics = [#tpu.dimension_semantics<parallel>], iteration_bounds = array<i64: 2>, scalar_prefetch = 1 : i64, scratch_operands = 0 : i64, tpu.core_type = #tpu.core_type<tc>, window_params = [{transform_indices = @transform_0, window_bounds = array<i64: 1, 8, 32>}, {pipeline_mode = #tpu.pipeline_mode<synchronous>, transform_indices = @transform_1, window_bounds = array<i64: 32, 96>}, {pipeline_mode = #tpu.pipeline_mode<synchronous>, transform_indices = @transform_2, window_bounds = array<i64: 1, 96>}, {pipeline_mode = #tpu.pipeline_mode<synchronous>, transform_indices = @transform_3, window_bounds = array<i64: 2, 16, 32>}, {pipeline_mode = #tpu.pipeline_mode<synchronous>, transform_indices = @transform_4, window_bounds = array<i64: 1, 32>}, {pipeline_mode = #tpu.pipeline_mode<synchronous>, transform_indices = @transform_5, window_bounds = array<i64: 16, 9>}, {pipeline_mode = #tpu.pipeline_mode<synchronous>, transform_indices = @transform_6, window_bounds = array<i64: 9, 16>}, {pipeline_mode = #tpu.pipeline_mode<synchronous>, transform_indices = @transform_7, window_bounds = array<i64: 1, 32>}, {pipeline_mode = #tpu.pipeline_mode<synchronous>, transform_indices = @transform_8, window_bounds = array<i64: 1, 32>}, {transform_indices = @transform_9, window_bounds = array<i64: 1, 8, 32>}]} {
    %0 = arith.index_cast %arg0 : i32 to index
    %1 = memref.load %arg1[%0] : memref<2xi32, #tpu.memory_space<smem>>
    %2 = tpu.iota {dimensions = array<i32: 0>} : vector<8x8xi32>
    %3 = tpu.iota {dimensions = array<i32: 1>} : vector<8x8xi32>
    %4 = arith.subi %3, %2 : vector<8x8xi32>
    %5 = vector.broadcast %1 : i32 to vector<8x8xi32>
    %6 = arith.cmpi slt, %2, %5 : vector<8x8xi32>
    %7 = vector.broadcast %1 : i32 to vector<8x8xi32>
    %8 = arith.cmpi slt, %3, %7 : vector<8x8xi32>
    %9 = arith.andi %6, %8 : vector<8x8xi1>
    %c-4_i32 = arith.constant -4 : i32
    %10 = vector.broadcast %c-4_i32 : i32 to vector<8x8xi32>
    %11 = arith.cmpi eq, %4, %10 : vector<8x8xi32>
    %c-3_i32 = arith.constant -3 : i32
    %12 = vector.broadcast %c-3_i32 : i32 to vector<8x8xi32>
    %13 = arith.cmpi eq, %4, %12 : vector<8x8xi32>
    %c-2_i32 = arith.constant -2 : i32
    %14 = vector.broadcast %c-2_i32 : i32 to vector<8x8xi32>
    %15 = arith.cmpi eq, %4, %14 : vector<8x8xi32>
    %c-1_i32 = arith.constant -1 : i32
    %16 = vector.broadcast %c-1_i32 : i32 to vector<8x8xi32>
    %17 = arith.cmpi eq, %4, %16 : vector<8x8xi32>
    %c0_i32 = arith.constant 0 : i32
    %18 = vector.broadcast %c0_i32 : i32 to vector<8x8xi32>
    %19 = arith.cmpi eq, %4, %18 : vector<8x8xi32>
    %c1_i32 = arith.constant 1 : i32
    %20 = vector.broadcast %c1_i32 : i32 to vector<8x8xi32>
    %21 = arith.cmpi eq, %4, %20 : vector<8x8xi32>
    %c2_i32 = arith.constant 2 : i32
    %22 = vector.broadcast %c2_i32 : i32 to vector<8x8xi32>
    %23 = arith.cmpi eq, %4, %22 : vector<8x8xi32>
    %c3_i32 = arith.constant 3 : i32
    %24 = vector.broadcast %c3_i32 : i32 to vector<8x8xi32>
    %25 = arith.cmpi eq, %4, %24 : vector<8x8xi32>
    %c4_i32 = arith.constant 4 : i32
    %26 = vector.broadcast %c4_i32 : i32 to vector<8x8xi32>
    %27 = arith.cmpi eq, %4, %26 : vector<8x8xi32>
    %c0 = arith.constant 0 : index
    %c0_0 = arith.constant 0 : index
    %c0_1 = arith.constant 0 : index
    %28 = vector.load %arg2[%c0, %c0_0, %c0_1] : memref<1x8x32xf32, #tpu.memory_space<vmem>>, vector<1x8x32xf32>
    %29 = vector.shape_cast %28 : vector<1x8x32xf32> to vector<8x32xf32>
    %30 = arith.truncf %29 : vector<8x32xf32> to vector<8x32xbf16>
    %c0_2 = arith.constant 0 : index
    %c0_3 = arith.constant 0 : index
    %31 = vector.load %arg3[%c0_2, %c0_3] : memref<32x96xbf16, #tpu.memory_space<vmem>>, vector<32x96xbf16>
    %cst = arith.constant dense<0.000000e+00> : vector<8x96xf32>
    %32 = tpu.matmul %30, %31, %cst {dimension_numbers = #tpu.dot_dimension_numbers<[1], [0], [0], [1], [0, 0, 1, 1], [], []>} : vector<8x32xbf16>, vector<32x96xbf16>, vector<8x96xf32> -> vector<8x96xf32>
    %c0_4 = arith.constant 0 : index
    %c0_5 = arith.constant 0 : index
    %33 = vector.load %arg4[%c0_4, %c0_5] : memref<1x96xf32, #tpu.memory_space<vmem>>, vector<1x96xf32>
    %34 = vector.broadcast %33 : vector<1x96xf32> to vector<8x96xf32>
    %35 = arith.addf %32, %34 : vector<8x96xf32>
    %cst_6 = arith.constant 0.000000e+00 : f32
    %36 = vector.broadcast %cst_6 : f32 to vector<8x32xf32>
    %37 = vector.extract_strided_slice %35 {offsets = [0, 0], sizes = [8, 16], strides = [1, 1]} : vector<8x96xf32> to vector<8x16xf32>
    %cst_7 = arith.constant 2.500000e-01 : f32
    %38 = vector.broadcast %cst_7 : f32 to vector<8x16xf32>
    %39 = arith.mulf %37, %38 : vector<8x16xf32>
    %40 = arith.truncf %39 : vector<8x16xf32> to vector<8x16xbf16>
    %41 = vector.extract_strided_slice %35 {offsets = [0, 32], sizes = [8, 16], strides = [1, 1]} : vector<8x96xf32> to vector<8x16xf32>
    %42 = arith.truncf %41 : vector<8x16xf32> to vector<8x16xbf16>
    %43 = vector.extract_strided_slice %35 {offsets = [0, 64], sizes = [8, 16], strides = [1, 1]} : vector<8x96xf32> to vector<8x16xf32>
    %44 = arith.truncf %43 : vector<8x16xf32> to vector<8x16xbf16>
    %cst_8 = arith.constant dense<0.000000e+00> : vector<8x8xf32>
    %45 = tpu.matmul %40, %42, %cst_8 {dimension_numbers = #tpu.dot_dimension_numbers<[1], [1], [0], [0], [0, 0, 1, 0], [], []>} : vector<8x16xbf16>, vector<8x16xbf16>, vector<8x8xf32> -> vector<8x8xf32>
    %c0_9 = arith.constant 0 : index
    %c0_10 = arith.constant 0 : index
    %46 = vector.load %arg7[%c0_9, %c0_10] : memref<16x9xbf16, #tpu.memory_space<vmem>>, vector<16x9xbf16>
    %cst_11 = arith.constant dense<0.000000e+00> : vector<8x9xf32>
    %47 = tpu.matmul %40, %46, %cst_11 {dimension_numbers = #tpu.dot_dimension_numbers<[1], [0], [0], [1], [0, 0, 1, 1], [], []>} : vector<8x16xbf16>, vector<16x9xbf16>, vector<8x9xf32> -> vector<8x9xf32>
    %cst_12 = arith.constant 0.000000e+00 : f32
    %48 = vector.broadcast %cst_12 : f32 to vector<8x8xf32>
    %49 = vector.extract_strided_slice %47 {offsets = [0, 0], sizes = [8, 1], strides = [1, 1]} : vector<8x9xf32> to vector<8x1xf32>
    %50 = vector.shape_cast %49 : vector<8x1xf32> to vector<8x1xf32>
    %51 = vector.broadcast %50 : vector<8x1xf32> to vector<8x8xf32>
    %52 = arith.select %11, %51, %48 : vector<8x8xi1>, vector<8x8xf32>
    %53 = vector.extract_strided_slice %47 {offsets = [0, 1], sizes = [8, 1], strides = [1, 1]} : vector<8x9xf32> to vector<8x1xf32>
    %54 = vector.shape_cast %53 : vector<8x1xf32> to vector<8x1xf32>
    %55 = vector.broadcast %54 : vector<8x1xf32> to vector<8x8xf32>
    %56 = arith.select %13, %55, %52 : vector<8x8xi1>, vector<8x8xf32>
    %57 = vector.extract_strided_slice %47 {offsets = [0, 2], sizes = [8, 1], strides = [1, 1]} : vector<8x9xf32> to vector<8x1xf32>
    %58 = vector.shape_cast %57 : vector<8x1xf32> to vector<8x1xf32>
    %59 = vector.broadcast %58 : vector<8x1xf32> to vector<8x8xf32>
    %60 = arith.select %15, %59, %56 : vector<8x8xi1>, vector<8x8xf32>
    %61 = vector.extract_strided_slice %47 {offsets = [0, 3], sizes = [8, 1], strides = [1, 1]} : vector<8x9xf32> to vector<8x1xf32>
    %62 = vector.shape_cast %61 : vector<8x1xf32> to vector<8x1xf32>
    %63 = vector.broadcast %62 : vector<8x1xf32> to vector<8x8xf32>
    %64 = arith.select %17, %63, %60 : vector<8x8xi1>, vector<8x8xf32>
    %65 = vector.extract_strided_slice %47 {offsets = [0, 4], sizes = [8, 1], strides = [1, 1]} : vector<8x9xf32> to vector<8x1xf32>
    %66 = vector.shape_cast %65 : vector<8x1xf32> to vector<8x1xf32>
    %67 = vector.broadcast %66 : vector<8x1xf32> to vector<8x8xf32>
    %68 = arith.select %19, %67, %64 : vector<8x8xi1>, vector<8x8xf32>
    %69 = vector.extract_strided_slice %47 {offsets = [0, 5], sizes = [8, 1], strides = [1, 1]} : vector<8x9xf32> to vector<8x1xf32>
    %70 = vector.shape_cast %69 : vector<8x1xf32> to vector<8x1xf32>
    %71 = vector.broadcast %70 : vector<8x1xf32> to vector<8x8xf32>
    %72 = arith.select %21, %71, %68 : vector<8x8xi1>, vector<8x8xf32>
    %73 = vector.extract_strided_slice %47 {offsets = [0, 6], sizes = [8, 1], strides = [1, 1]} : vector<8x9xf32> to vector<8x1xf32>
    %74 = vector.shape_cast %73 : vector<8x1xf32> to vector<8x1xf32>
    %75 = vector.broadcast %74 : vector<8x1xf32> to vector<8x8xf32>
    %76 = arith.select %23, %75, %72 : vector<8x8xi1>, vector<8x8xf32>
    %77 = vector.extract_strided_slice %47 {offsets = [0, 7], sizes = [8, 1], strides = [1, 1]} : vector<8x9xf32> to vector<8x1xf32>
    %78 = vector.shape_cast %77 : vector<8x1xf32> to vector<8x1xf32>
    %79 = vector.broadcast %78 : vector<8x1xf32> to vector<8x8xf32>
    %80 = arith.select %25, %79, %76 : vector<8x8xi1>, vector<8x8xf32>
    %81 = vector.extract_strided_slice %47 {offsets = [0, 8], sizes = [8, 1], strides = [1, 1]} : vector<8x9xf32> to vector<8x1xf32>
    %82 = vector.shape_cast %81 : vector<8x1xf32> to vector<8x1xf32>
    %83 = vector.broadcast %82 : vector<8x1xf32> to vector<8x8xf32>
    %84 = arith.select %27, %83, %80 : vector<8x8xi1>, vector<8x8xf32>
    %85 = arith.addf %45, %84 : vector<8x8xf32>
    %cst_13 = arith.constant -1.000000e+04 : f32
    %86 = vector.broadcast %cst_13 : f32 to vector<8x8xf32>
    %87 = arith.select %9, %85, %86 : vector<8x8xi1>, vector<8x8xf32>
    %cst_14 = arith.constant dense<0xFF800000> : vector<8xf32>
    %88 = vector.multi_reduction <maximumf>, %87, %cst_14 [1] : vector<8x8xf32> to vector<8xf32>
    %89 = vector.shape_cast %88 : vector<8xf32> to vector<8x1xf32>
    %90 = vector.broadcast %89 : vector<8x1xf32> to vector<8x8xf32>
    %91 = arith.subf %87, %90 : vector<8x8xf32>
    %92 = math.exp %91 : vector<8x8xf32>
    %cst_15 = arith.constant dense<0.000000e+00> : vector<8xf32>
    %93 = vector.multi_reduction <add>, %92, %cst_15 [1] : vector<8x8xf32> to vector<8xf32>
    %94 = vector.shape_cast %93 : vector<8xf32> to vector<8x1xf32>
    %95 = tpu.reciprocal %94 {approx = true} : vector<8x1xf32> -> vector<8x1xf32>
    %96 = vector.broadcast %95 : vector<8x1xf32> to vector<8x8xf32>
    %97 = arith.mulf %92, %96 : vector<8x8xf32>
    %98 = arith.truncf %97 : vector<8x8xf32> to vector<8x8xbf16>
    %cst_16 = arith.constant dense<0.000000e+00> : vector<8x16xf32>
    %99 = tpu.matmul %98, %44, %cst_16 {dimension_numbers = #tpu.dot_dimension_numbers<[1], [0], [0], [1], [0, 0, 1, 1], [], []>} : vector<8x8xbf16>, vector<8x16xbf16>, vector<8x16xf32> -> vector<8x16xf32>
    %cst_17 = arith.constant 0.000000e+00 : f32
    %100 = vector.broadcast %cst_17 : f32 to vector<8x8xf32>
    %101 = arith.select %11, %97, %100 : vector<8x8xi1>, vector<8x8xf32>
    %cst_18 = arith.constant dense<0.000000e+00> : vector<8xf32>
    %102 = vector.multi_reduction <add>, %101, %cst_18 [1] : vector<8x8xf32> to vector<8xf32>
    %103 = vector.shape_cast %102 : vector<8xf32> to vector<8x1xf32>
    %cst_19 = arith.constant 0.000000e+00 : f32
    %104 = vector.broadcast %cst_19 : f32 to vector<8x8xf32>
    %105 = arith.select %13, %97, %104 : vector<8x8xi1>, vector<8x8xf32>
    %cst_20 = arith.constant dense<0.000000e+00> : vector<8xf32>
    %106 = vector.multi_reduction <add>, %105, %cst_20 [1] : vector<8x8xf32> to vector<8xf32>
    %107 = vector.shape_cast %106 : vector<8xf32> to vector<8x1xf32>
    %cst_21 = arith.constant 0.000000e+00 : f32
    %108 = vector.broadcast %cst_21 : f32 to vector<8x8xf32>
    %109 = arith.select %15, %97, %108 : vector<8x8xi1>, vector<8x8xf32>
    %cst_22 = arith.constant dense<0.000000e+00> : vector<8xf32>
    %110 = vector.multi_reduction <add>, %109, %cst_22 [1] : vector<8x8xf32> to vector<8xf32>
    %111 = vector.shape_cast %110 : vector<8xf32> to vector<8x1xf32>
    %cst_23 = arith.constant 0.000000e+00 : f32
    %112 = vector.broadcast %cst_23 : f32 to vector<8x8xf32>
    %113 = arith.select %17, %97, %112 : vector<8x8xi1>, vector<8x8xf32>
    %cst_24 = arith.constant dense<0.000000e+00> : vector<8xf32>
    %114 = vector.multi_reduction <add>, %113, %cst_24 [1] : vector<8x8xf32> to vector<8xf32>
    %115 = vector.shape_cast %114 : vector<8xf32> to vector<8x1xf32>
    %cst_25 = arith.constant 0.000000e+00 : f32
    %116 = vector.broadcast %cst_25 : f32 to vector<8x8xf32>
    %117 = arith.select %19, %97, %116 : vector<8x8xi1>, vector<8x8xf32>
    %cst_26 = arith.constant dense<0.000000e+00> : vector<8xf32>
    %118 = vector.multi_reduction <add>, %117, %cst_26 [1] : vector<8x8xf32> to vector<8xf32>
    %119 = vector.shape_cast %118 : vector<8xf32> to vector<8x1xf32>
    %cst_27 = arith.constant 0.000000e+00 : f32
    %120 = vector.broadcast %cst_27 : f32 to vector<8x8xf32>
    %121 = arith.select %21, %97, %120 : vector<8x8xi1>, vector<8x8xf32>
    %cst_28 = arith.constant dense<0.000000e+00> : vector<8xf32>
    %122 = vector.multi_reduction <add>, %121, %cst_28 [1] : vector<8x8xf32> to vector<8xf32>
    %123 = vector.shape_cast %122 : vector<8xf32> to vector<8x1xf32>
    %cst_29 = arith.constant 0.000000e+00 : f32
    %124 = vector.broadcast %cst_29 : f32 to vector<8x8xf32>
    %125 = arith.select %23, %97, %124 : vector<8x8xi1>, vector<8x8xf32>
    %cst_30 = arith.constant dense<0.000000e+00> : vector<8xf32>
    %126 = vector.multi_reduction <add>, %125, %cst_30 [1] : vector<8x8xf32> to vector<8xf32>
    %127 = vector.shape_cast %126 : vector<8xf32> to vector<8x1xf32>
    %cst_31 = arith.constant 0.000000e+00 : f32
    %128 = vector.broadcast %cst_31 : f32 to vector<8x8xf32>
    %129 = arith.select %25, %97, %128 : vector<8x8xi1>, vector<8x8xf32>
    %cst_32 = arith.constant dense<0.000000e+00> : vector<8xf32>
    %130 = vector.multi_reduction <add>, %129, %cst_32 [1] : vector<8x8xf32> to vector<8xf32>
    %131 = vector.shape_cast %130 : vector<8xf32> to vector<8x1xf32>
    %cst_33 = arith.constant 0.000000e+00 : f32
    %132 = vector.broadcast %cst_33 : f32 to vector<8x8xf32>
    %133 = arith.select %27, %97, %132 : vector<8x8xi1>, vector<8x8xf32>
    %cst_34 = arith.constant dense<0.000000e+00> : vector<8xf32>
    %134 = vector.multi_reduction <add>, %133, %cst_34 [1] : vector<8x8xf32> to vector<8xf32>
    %135 = vector.shape_cast %134 : vector<8xf32> to vector<8x1xf32>
    %136 = tpu.concatenate %103, %107, %111, %115, %119, %123, %127, %131, %135 in 1 : vector<8x1xf32>, vector<8x1xf32>, vector<8x1xf32>, vector<8x1xf32>, vector<8x1xf32>, vector<8x1xf32>, vector<8x1xf32>, vector<8x1xf32>, vector<8x1xf32> -> vector<8x9xf32>
    %137 = arith.truncf %136 : vector<8x9xf32> to vector<8x9xbf16>
    %c0_35 = arith.constant 0 : index
    %c0_36 = arith.constant 0 : index
    %138 = vector.load %arg8[%c0_35, %c0_36] : memref<9x16xbf16, #tpu.memory_space<vmem>>, vector<9x16xbf16>
    %cst_37 = arith.constant dense<0.000000e+00> : vector<8x16xf32>
    %139 = tpu.matmul %137, %138, %cst_37 {dimension_numbers = #tpu.dot_dimension_numbers<[1], [0], [0], [1], [0, 0, 1, 1], [], []>} : vector<8x9xbf16>, vector<9x16xbf16>, vector<8x16xf32> -> vector<8x16xf32>
    %140 = arith.addf %99, %139 : vector<8x16xf32>
    %141 = arith.truncf %140 : vector<8x16xf32> to vector<8x16xbf16>
    %c0_38 = arith.constant 0 : index
    %c0_39 = arith.constant 0 : index
    %c0_40 = arith.constant 0 : index
    %142 = vector.load %arg5[%c0_38, %c0_39, %c0_40] : memref<2x16x32xbf16, #tpu.memory_space<vmem>>, vector<1x16x32xbf16>
    %143 = vector.shape_cast %142 : vector<1x16x32xbf16> to vector<16x32xbf16>
    %cst_41 = arith.constant dense<0.000000e+00> : vector<8x32xf32>
    %144 = tpu.matmul %141, %143, %cst_41 {dimension_numbers = #tpu.dot_dimension_numbers<[1], [0], [0], [1], [0, 0, 1, 1], [], []>} : vector<8x16xbf16>, vector<16x32xbf16>, vector<8x32xf32> -> vector<8x32xf32>
    %145 = arith.addf %36, %144 : vector<8x32xf32>
    %146 = vector.extract_strided_slice %35 {offsets = [0, 16], sizes = [8, 16], strides = [1, 1]} : vector<8x96xf32> to vector<8x16xf32>
    %cst_42 = arith.constant 2.500000e-01 : f32
    %147 = vector.broadcast %cst_42 : f32 to vector<8x16xf32>
    %148 = arith.mulf %146, %147 : vector<8x16xf32>
    %149 = arith.truncf %148 : vector<8x16xf32> to vector<8x16xbf16>
    %150 = vector.extract_strided_slice %35 {offsets = [0, 48], sizes = [8, 16], strides = [1, 1]} : vector<8x96xf32> to vector<8x16xf32>
    %151 = arith.truncf %150 : vector<8x16xf32> to vector<8x16xbf16>
    %152 = vector.extract_strided_slice %35 {offsets = [0, 80], sizes = [8, 16], strides = [1, 1]} : vector<8x96xf32> to vector<8x16xf32>
    %153 = arith.truncf %152 : vector<8x16xf32> to vector<8x16xbf16>
    %cst_43 = arith.constant dense<0.000000e+00> : vector<8x8xf32>
    %154 = tpu.matmul %149, %151, %cst_43 {dimension_numbers = #tpu.dot_dimension_numbers<[1], [1], [0], [0], [0, 0, 1, 0], [], []>} : vector<8x16xbf16>, vector<8x16xbf16>, vector<8x8xf32> -> vector<8x8xf32>
    %c0_44 = arith.constant 0 : index
    %c0_45 = arith.constant 0 : index
    %155 = vector.load %arg7[%c0_44, %c0_45] : memref<16x9xbf16, #tpu.memory_space<vmem>>, vector<16x9xbf16>
    %cst_46 = arith.constant dense<0.000000e+00> : vector<8x9xf32>
    %156 = tpu.matmul %149, %155, %cst_46 {dimension_numbers = #tpu.dot_dimension_numbers<[1], [0], [0], [1], [0, 0, 1, 1], [], []>} : vector<8x16xbf16>, vector<16x9xbf16>, vector<8x9xf32> -> vector<8x9xf32>
    %cst_47 = arith.constant 0.000000e+00 : f32
    %157 = vector.broadcast %cst_47 : f32 to vector<8x8xf32>
    %158 = vector.extract_strided_slice %156 {offsets = [0, 0], sizes = [8, 1], strides = [1, 1]} : vector<8x9xf32> to vector<8x1xf32>
    %159 = vector.shape_cast %158 : vector<8x1xf32> to vector<8x1xf32>
    %160 = vector.broadcast %159 : vector<8x1xf32> to vector<8x8xf32>
    %161 = arith.select %11, %160, %157 : vector<8x8xi1>, vector<8x8xf32>
    %162 = vector.extract_strided_slice %156 {offsets = [0, 1], sizes = [8, 1], strides = [1, 1]} : vector<8x9xf32> to vector<8x1xf32>
    %163 = vector.shape_cast %162 : vector<8x1xf32> to vector<8x1xf32>
    %164 = vector.broadcast %163 : vector<8x1xf32> to vector<8x8xf32>
    %165 = arith.select %13, %164, %161 : vector<8x8xi1>, vector<8x8xf32>
    %166 = vector.extract_strided_slice %156 {offsets = [0, 2], sizes = [8, 1], strides = [1, 1]} : vector<8x9xf32> to vector<8x1xf32>
    %167 = vector.shape_cast %166 : vector<8x1xf32> to vector<8x1xf32>
    %168 = vector.broadcast %167 : vector<8x1xf32> to vector<8x8xf32>
    %169 = arith.select %15, %168, %165 : vector<8x8xi1>, vector<8x8xf32>
    %170 = vector.extract_strided_slice %156 {offsets = [0, 3], sizes = [8, 1], strides = [1, 1]} : vector<8x9xf32> to vector<8x1xf32>
    %171 = vector.shape_cast %170 : vector<8x1xf32> to vector<8x1xf32>
    %172 = vector.broadcast %171 : vector<8x1xf32> to vector<8x8xf32>
    %173 = arith.select %17, %172, %169 : vector<8x8xi1>, vector<8x8xf32>
    %174 = vector.extract_strided_slice %156 {offsets = [0, 4], sizes = [8, 1], strides = [1, 1]} : vector<8x9xf32> to vector<8x1xf32>
    %175 = vector.shape_cast %174 : vector<8x1xf32> to vector<8x1xf32>
    %176 = vector.broadcast %175 : vector<8x1xf32> to vector<8x8xf32>
    %177 = arith.select %19, %176, %173 : vector<8x8xi1>, vector<8x8xf32>
    %178 = vector.extract_strided_slice %156 {offsets = [0, 5], sizes = [8, 1], strides = [1, 1]} : vector<8x9xf32> to vector<8x1xf32>
    %179 = vector.shape_cast %178 : vector<8x1xf32> to vector<8x1xf32>
    %180 = vector.broadcast %179 : vector<8x1xf32> to vector<8x8xf32>
    %181 = arith.select %21, %180, %177 : vector<8x8xi1>, vector<8x8xf32>
    %182 = vector.extract_strided_slice %156 {offsets = [0, 6], sizes = [8, 1], strides = [1, 1]} : vector<8x9xf32> to vector<8x1xf32>
    %183 = vector.shape_cast %182 : vector<8x1xf32> to vector<8x1xf32>
    %184 = vector.broadcast %183 : vector<8x1xf32> to vector<8x8xf32>
    %185 = arith.select %23, %184, %181 : vector<8x8xi1>, vector<8x8xf32>
    %186 = vector.extract_strided_slice %156 {offsets = [0, 7], sizes = [8, 1], strides = [1, 1]} : vector<8x9xf32> to vector<8x1xf32>
    %187 = vector.shape_cast %186 : vector<8x1xf32> to vector<8x1xf32>
    %188 = vector.broadcast %187 : vector<8x1xf32> to vector<8x8xf32>
    %189 = arith.select %25, %188, %185 : vector<8x8xi1>, vector<8x8xf32>
    %190 = vector.extract_strided_slice %156 {offsets = [0, 8], sizes = [8, 1], strides = [1, 1]} : vector<8x9xf32> to vector<8x1xf32>
    %191 = vector.shape_cast %190 : vector<8x1xf32> to vector<8x1xf32>
    %192 = vector.broadcast %191 : vector<8x1xf32> to vector<8x8xf32>
    %193 = arith.select %27, %192, %189 : vector<8x8xi1>, vector<8x8xf32>
    %194 = arith.addf %154, %193 : vector<8x8xf32>
    %cst_48 = arith.constant -1.000000e+04 : f32
    %195 = vector.broadcast %cst_48 : f32 to vector<8x8xf32>
    %196 = arith.select %9, %194, %195 : vector<8x8xi1>, vector<8x8xf32>
    %cst_49 = arith.constant dense<0xFF800000> : vector<8xf32>
    %197 = vector.multi_reduction <maximumf>, %196, %cst_49 [1] : vector<8x8xf32> to vector<8xf32>
    %198 = vector.shape_cast %197 : vector<8xf32> to vector<8x1xf32>
    %199 = vector.broadcast %198 : vector<8x1xf32> to vector<8x8xf32>
    %200 = arith.subf %196, %199 : vector<8x8xf32>
    %201 = math.exp %200 : vector<8x8xf32>
    %cst_50 = arith.constant dense<0.000000e+00> : vector<8xf32>
    %202 = vector.multi_reduction <add>, %201, %cst_50 [1] : vector<8x8xf32> to vector<8xf32>
    %203 = vector.shape_cast %202 : vector<8xf32> to vector<8x1xf32>
    %204 = tpu.reciprocal %203 {approx = true} : vector<8x1xf32> -> vector<8x1xf32>
    %205 = vector.broadcast %204 : vector<8x1xf32> to vector<8x8xf32>
    %206 = arith.mulf %201, %205 : vector<8x8xf32>
    %207 = arith.truncf %206 : vector<8x8xf32> to vector<8x8xbf16>
    %cst_51 = arith.constant dense<0.000000e+00> : vector<8x16xf32>
    %208 = tpu.matmul %207, %153, %cst_51 {dimension_numbers = #tpu.dot_dimension_numbers<[1], [0], [0], [1], [0, 0, 1, 1], [], []>} : vector<8x8xbf16>, vector<8x16xbf16>, vector<8x16xf32> -> vector<8x16xf32>
    %cst_52 = arith.constant 0.000000e+00 : f32
    %209 = vector.broadcast %cst_52 : f32 to vector<8x8xf32>
    %210 = arith.select %11, %206, %209 : vector<8x8xi1>, vector<8x8xf32>
    %cst_53 = arith.constant dense<0.000000e+00> : vector<8xf32>
    %211 = vector.multi_reduction <add>, %210, %cst_53 [1] : vector<8x8xf32> to vector<8xf32>
    %212 = vector.shape_cast %211 : vector<8xf32> to vector<8x1xf32>
    %cst_54 = arith.constant 0.000000e+00 : f32
    %213 = vector.broadcast %cst_54 : f32 to vector<8x8xf32>
    %214 = arith.select %13, %206, %213 : vector<8x8xi1>, vector<8x8xf32>
    %cst_55 = arith.constant dense<0.000000e+00> : vector<8xf32>
    %215 = vector.multi_reduction <add>, %214, %cst_55 [1] : vector<8x8xf32> to vector<8xf32>
    %216 = vector.shape_cast %215 : vector<8xf32> to vector<8x1xf32>
    %cst_56 = arith.constant 0.000000e+00 : f32
    %217 = vector.broadcast %cst_56 : f32 to vector<8x8xf32>
    %218 = arith.select %15, %206, %217 : vector<8x8xi1>, vector<8x8xf32>
    %cst_57 = arith.constant dense<0.000000e+00> : vector<8xf32>
    %219 = vector.multi_reduction <add>, %218, %cst_57 [1] : vector<8x8xf32> to vector<8xf32>
    %220 = vector.shape_cast %219 : vector<8xf32> to vector<8x1xf32>
    %cst_58 = arith.constant 0.000000e+00 : f32
    %221 = vector.broadcast %cst_58 : f32 to vector<8x8xf32>
    %222 = arith.select %17, %206, %221 : vector<8x8xi1>, vector<8x8xf32>
    %cst_59 = arith.constant dense<0.000000e+00> : vector<8xf32>
    %223 = vector.multi_reduction <add>, %222, %cst_59 [1] : vector<8x8xf32> to vector<8xf32>
    %224 = vector.shape_cast %223 : vector<8xf32> to vector<8x1xf32>
    %cst_60 = arith.constant 0.000000e+00 : f32
    %225 = vector.broadcast %cst_60 : f32 to vector<8x8xf32>
    %226 = arith.select %19, %206, %225 : vector<8x8xi1>, vector<8x8xf32>
    %cst_61 = arith.constant dense<0.000000e+00> : vector<8xf32>
    %227 = vector.multi_reduction <add>, %226, %cst_61 [1] : vector<8x8xf32> to vector<8xf32>
    %228 = vector.shape_cast %227 : vector<8xf32> to vector<8x1xf32>
    %cst_62 = arith.constant 0.000000e+00 : f32
    %229 = vector.broadcast %cst_62 : f32 to vector<8x8xf32>
    %230 = arith.select %21, %206, %229 : vector<8x8xi1>, vector<8x8xf32>
    %cst_63 = arith.constant dense<0.000000e+00> : vector<8xf32>
    %231 = vector.multi_reduction <add>, %230, %cst_63 [1] : vector<8x8xf32> to vector<8xf32>
    %232 = vector.shape_cast %231 : vector<8xf32> to vector<8x1xf32>
    %cst_64 = arith.constant 0.000000e+00 : f32
    %233 = vector.broadcast %cst_64 : f32 to vector<8x8xf32>
    %234 = arith.select %23, %206, %233 : vector<8x8xi1>, vector<8x8xf32>
    %cst_65 = arith.constant dense<0.000000e+00> : vector<8xf32>
    %235 = vector.multi_reduction <add>, %234, %cst_65 [1] : vector<8x8xf32> to vector<8xf32>
    %236 = vector.shape_cast %235 : vector<8xf32> to vector<8x1xf32>
    %cst_66 = arith.constant 0.000000e+00 : f32
    %237 = vector.broadcast %cst_66 : f32 to vector<8x8xf32>
    %238 = arith.select %25, %206, %237 : vector<8x8xi1>, vector<8x8xf32>
    %cst_67 = arith.constant dense<0.000000e+00> : vector<8xf32>
    %239 = vector.multi_reduction <add>, %238, %cst_67 [1] : vector<8x8xf32> to vector<8xf32>
    %240 = vector.shape_cast %239 : vector<8xf32> to vector<8x1xf32>
    %cst_68 = arith.constant 0.000000e+00 : f32
    %241 = vector.broadcast %cst_68 : f32 to vector<8x8xf32>
    %242 = arith.select %27, %206, %241 : vector<8x8xi1>, vector<8x8xf32>
    %cst_69 = arith.constant dense<0.000000e+00> : vector<8xf32>
    %243 = vector.multi_reduction <add>, %242, %cst_69 [1] : vector<8x8xf32> to vector<8xf32>
    %244 = vector.shape_cast %243 : vector<8xf32> to vector<8x1xf32>
    %245 = tpu.concatenate %212, %216, %220, %224, %228, %232, %236, %240, %244 in 1 : vector<8x1xf32>, vector<8x1xf32>, vector<8x1xf32>, vector<8x1xf32>, vector<8x1xf32>, vector<8x1xf32>, vector<8x1xf32>, vector<8x1xf32>, vector<8x1xf32> -> vector<8x9xf32>
    %246 = arith.truncf %245 : vector<8x9xf32> to vector<8x9xbf16>
    %c0_70 = arith.constant 0 : index
    %c0_71 = arith.constant 0 : index
    %247 = vector.load %arg8[%c0_70, %c0_71] : memref<9x16xbf16, #tpu.memory_space<vmem>>, vector<9x16xbf16>
    %cst_72 = arith.constant dense<0.000000e+00> : vector<8x16xf32>
    %248 = tpu.matmul %246, %247, %cst_72 {dimension_numbers = #tpu.dot_dimension_numbers<[1], [0], [0], [1], [0, 0, 1, 1], [], []>} : vector<8x9xbf16>, vector<9x16xbf16>, vector<8x16xf32> -> vector<8x16xf32>
    %249 = arith.addf %208, %248 : vector<8x16xf32>
    %250 = arith.truncf %249 : vector<8x16xf32> to vector<8x16xbf16>
    %c1 = arith.constant 1 : index
    %c0_73 = arith.constant 0 : index
    %c0_74 = arith.constant 0 : index
    %251 = vector.load %arg5[%c1, %c0_73, %c0_74] : memref<2x16x32xbf16, #tpu.memory_space<vmem>>, vector<1x16x32xbf16>
    %252 = vector.shape_cast %251 : vector<1x16x32xbf16> to vector<16x32xbf16>
    %cst_75 = arith.constant dense<0.000000e+00> : vector<8x32xf32>
    %253 = tpu.matmul %250, %252, %cst_75 {dimension_numbers = #tpu.dot_dimension_numbers<[1], [0], [0], [1], [0, 0, 1, 1], [], []>} : vector<8x16xbf16>, vector<16x32xbf16>, vector<8x32xf32> -> vector<8x32xf32>
    %254 = arith.addf %145, %253 : vector<8x32xf32>
    %c0_76 = arith.constant 0 : index
    %c0_77 = arith.constant 0 : index
    %255 = vector.load %arg6[%c0_76, %c0_77] : memref<1x32xf32, #tpu.memory_space<vmem>>, vector<1x32xf32>
    %256 = vector.broadcast %255 : vector<1x32xf32> to vector<8x32xf32>
    %257 = arith.addf %254, %256 : vector<8x32xf32>
    %258 = arith.addf %29, %257 : vector<8x32xf32>
    %cst_78 = arith.constant dense<0.000000e+00> : vector<8xf32>
    %259 = vector.multi_reduction <add>, %258, %cst_78 [1] : vector<8x32xf32> to vector<8xf32>
    %260 = vector.shape_cast %259 : vector<8xf32> to vector<8x1xf32>
    %cst_79 = arith.constant 3.200000e+01 : f32
    %261 = vector.broadcast %cst_79 : f32 to vector<8x1xf32>
    %262 = arith.divf %260, %261 : vector<8x1xf32>
    %263 = vector.broadcast %262 : vector<8x1xf32> to vector<8x32xf32>
    %264 = arith.subf %258, %263 : vector<8x32xf32>
    %265 = arith.mulf %264, %264 : vector<8x32xf32>
    %cst_80 = arith.constant dense<0.000000e+00> : vector<8xf32>
    %266 = vector.multi_reduction <add>, %265, %cst_80 [1] : vector<8x32xf32> to vector<8xf32>
    %267 = vector.shape_cast %266 : vector<8xf32> to vector<8x1xf32>
    %cst_81 = arith.constant 3.200000e+01 : f32
    %268 = vector.broadcast %cst_81 : f32 to vector<8x1xf32>
    %269 = arith.divf %267, %268 : vector<8x1xf32>
    %270 = vector.broadcast %262 : vector<8x1xf32> to vector<8x32xf32>
    %271 = arith.subf %258, %270 : vector<8x32xf32>
    %cst_82 = arith.constant 9.99999974E-6 : f32
    %272 = vector.broadcast %cst_82 : f32 to vector<8x1xf32>
    %273 = arith.addf %269, %272 : vector<8x1xf32>
    %274 = math.rsqrt %273 : vector<8x1xf32>
    %275 = vector.broadcast %274 : vector<8x1xf32> to vector<8x32xf32>
    %276 = arith.mulf %271, %275 : vector<8x32xf32>
    %c0_83 = arith.constant 0 : index
    %c0_84 = arith.constant 0 : index
    %277 = vector.load %arg9[%c0_83, %c0_84] : memref<1x32xf32, #tpu.memory_space<vmem>>, vector<1x32xf32>
    %278 = vector.broadcast %277 : vector<1x32xf32> to vector<8x32xf32>
    %279 = arith.mulf %276, %278 : vector<8x32xf32>
    %c0_85 = arith.constant 0 : index
    %c0_86 = arith.constant 0 : index
    %280 = vector.load %arg10[%c0_85, %c0_86] : memref<1x32xf32, #tpu.memory_space<vmem>>, vector<1x32xf32>
    %281 = vector.broadcast %280 : vector<1x32xf32> to vector<8x32xf32>
    %282 = arith.addf %279, %281 : vector<8x32xf32>
    %c0_87 = arith.constant 0 : index
    %c0_88 = arith.constant 0 : index
    %c0_89 = arith.constant 0 : index
    %283 = vector.load %arg11[%c0_87, %c0_88, %c0_89] : memref<1x8x32xf32, #tpu.memory_space<vmem>>, vector<1x8x32xf32>
    %284 = vector.shape_cast %283 : vector<1x8x32xf32> to vector<8x32xf32>
    %285 = vector.shape_cast %282 : vector<8x32xf32> to vector<1x8x32xf32>
    tpu.vector_store %arg11[%c0_87, %c0_88, %c0_89], %285 {strides = array<i32>} : memref<1x8x32xf32, #tpu.memory_space<vmem>>, vector<1x8x32xf32>,
    return
  }
  func.func @transform_0(%arg0: i32, %arg1: memref<2xi32, #tpu.memory_space<smem>>) -> (i32, i32, i32) {
    %c0_i32 = arith.constant 0 : i32
    %c0_i32_0 = arith.constant 0 : i32
    %c0_i32_1 = arith.constant 0 : i32
    return %arg0, %c0_i32, %c0_i32_0 : i32, i32, i32
  }
  func.func @transform_1(%arg0: i32, %arg1: memref<2xi32, #tpu.memory_space<smem>>) -> (i32, i32) {
    %c0_i32 = arith.constant 0 : i32
    %c0_i32_0 = arith.constant 0 : i32
    %c0_i32_1 = arith.constant 0 : i32
    return %c0_i32, %c0_i32_0 : i32, i32
  }
  func.func @transform_2(%arg0: i32, %arg1: memref<2xi32, #tpu.memory_space<smem>>) -> (i32, i32) {
    %c0_i32 = arith.constant 0 : i32
    %c0_i32_0 = arith.constant 0 : i32
    %c0_i32_1 = arith.constant 0 : i32
    return %c0_i32, %c0_i32_0 : i32, i32
  }
  func.func @transform_3(%arg0: i32, %arg1: memref<2xi32, #tpu.memory_space<smem>>) -> (i32, i32, i32) {
    %c0_i32 = arith.constant 0 : i32
    %c0_i32_0 = arith.constant 0 : i32
    %c0_i32_1 = arith.constant 0 : i32
    %c0_i32_2 = arith.constant 0 : i32
    return %c0_i32, %c0_i32_0, %c0_i32_1 : i32, i32, i32
  }
  func.func @transform_4(%arg0: i32, %arg1: memref<2xi32, #tpu.memory_space<smem>>) -> (i32, i32) {
    %c0_i32 = arith.constant 0 : i32
    %c0_i32_0 = arith.constant 0 : i32
    %c0_i32_1 = arith.constant 0 : i32
    return %c0_i32, %c0_i32_0 : i32, i32
  }
  func.func @transform_5(%arg0: i32, %arg1: memref<2xi32, #tpu.memory_space<smem>>) -> (i32, i32) {
    %c0_i32 = arith.constant 0 : i32
    %c0_i32_0 = arith.constant 0 : i32
    %c0_i32_1 = arith.constant 0 : i32
    return %c0_i32, %c0_i32_0 : i32, i32
  }
  func.func @transform_6(%arg0: i32, %arg1: memref<2xi32, #tpu.memory_space<smem>>) -> (i32, i32) {
    %c0_i32 = arith.constant 0 : i32
    %c0_i32_0 = arith.constant 0 : i32
    %c0_i32_1 = arith.constant 0 : i32
    return %c0_i32, %c0_i32_0 : i32, i32
  }
  func.func @transform_7(%arg0: i32, %arg1: memref<2xi32, #tpu.memory_space<smem>>) -> (i32, i32) {
    %c0_i32 = arith.constant 0 : i32
    %c0_i32_0 = arith.constant 0 : i32
    %c0_i32_1 = arith.constant 0 : i32
    return %c0_i32, %c0_i32_0 : i32, i32
  }
  func.func @transform_8(%arg0: i32, %arg1: memref<2xi32, #tpu.memory_space<smem>>) -> (i32, i32) {
    %c0_i32 = arith.constant 0 : i32
    %c0_i32_0 = arith.constant 0 : i32
    %c0_i32_1 = arith.constant 0 : i32
    return %c0_i32, %c0_i32_0 : i32, i32
  }
  func.func @transform_9(%arg0: i32, %arg1: memref<2xi32, #tpu.memory_space<smem>>) -> (i32, i32, i32) {
    %c0_i32 = arith.constant 0 : i32
    %c0_i32_0 = arith.constant 0 : i32
    %c0_i32_1 = arith.constant 0 : i32
    return %arg0, %c0_i32, %c0_i32_0 : i32, i32, i32
  }
}

</mosaic_0001>

<bundles_post_ra>
// kernel: text_encoder_forward.9
= control target key start
LH: loop header
LB: loop body
LE: loop exit
PB: predicated region body
PF: predicated region fallthrough
CT: control target
= control target key end

     0   :  { %s670_s0 = inlined_call_operand.vmem [shape: s32[2], index: 0, kind: input, shape index: {}]   ;;  %s671_s1 = inlined_call_operand.vmem [shape: f32[2,8,32], index: 1, kind: input, shape index: {}]   ;;  %s672_s2 = inlined_call_operand.vmem [shape: bf16[32,12], index: 2, kind: input, shape index: {}]   ;;  %s673_s3 = inlined_call_operand.vmem [shape: f32[1,12], index: 3, kind: input, shape index: {}]   ;;  %s674_s4 = inlined_call_operand.vmem [shape: f32[2,32,8], index: 4, kind: output, shape index: {0}]   ;;  %s675_s5 = inlined_call_operand.vmem [shape: f32[2,6,8], index: 5, kind: output, shape index: {1}]   ;;  %s676_s6 = inlined_call_operand.vmem [shape: f32[2,6,8], index: 6, kind: output, shape index: {2}]  }
   0x1   :  { %s12_s23 = sshll.u32 %s670_s0, 4  ;;  %s13_s23 = int_to_ptr.vmem [resolvable:$true] %s12_s23 }
   0x2   :  { %s562_s24 = scalar_lea.vmem %s13_s23, 16  ;;  %p567_p1 = scmp.lt.s32.totalorder %s13_s23, %s13_s23 }
   0x3   :  { %p563_p0 = scmp.ne.s32.totalorder %s13_s23, %s562_s24  ;;  %p568_p2 = scmp.lt.s32.totalorder %s562_s24, %s562_s24 }
   0x5   :  { %p569_p3 = por %p568_p2, %p567_p1 }
   0x7   :  { %p570_p4 = pnand %p569_p3, %p563_p0 }
   0x9   :  { %573 = shalt.err (!%p570_p4)  }
   0xa   :  { %s584_s25 = smov [#allocation3]  }
   0xb   :  { %15 = dma.vmem_to_smem %s13_s23, 16, %s584_s25, [#allocation2] }
   0xc   :  { %578 = dma.done.wait [#allocation2], 16 }
   0xd   :  { %579 = vsyncadd [#allocation2], 4294967280 }
   0xe   :  { %17 = sfence }
   0xf   :  { %s625_s26 = smov 0  }
  0x10 LB: > { %s521_s0 = sadd.s32 4294967295, %s582_s26   ;;  %p525_p5 = scmp.ge.s32.totalorder %s582_s26, 1  ;;  %s582_s26 = sphi %s625_s26, %s23_s26  }
  0x11   : > { %p198_p6 = scmp.lt.s32.totalorder %s582_s26, 3 }
  0x13   : > { %p199_p7 = pnand %p525_p5, %p198_p6 }
  0x14   : > { %v560_v0 = vld [vmem:[%s672_s2] sm:$0xff] (!%p199_p7)   ;;  %v585_v1 = vmov (!%p199_p7), 0.0   ;;  %v252_v2 = vlaneseq (!%p199_p7)  ;;  %v561_v3 = vld [vmem:[%s672_s2 + $0x8] sm:$0xff] (!%p199_p7)   ;;  %vm586_vm0 = vmmov (!%p199_p7), 0   ;;  %p233_p8 = scmp.lt.s32.totalorder (!%p199_p7), %s521_s0, 1  ;;  %s251_s7 = sld [smem:[#allocation3 + %s521_s0]] (!%p199_p7) }
  0x15   : > { %202 = sbr.rel (%p199_p7) target bundleno = 384 (0x180), region = 32  ;;  %541 = vmatprep.subr.bf16.mxu0 (!%p199_p7), %v585_v1  ;;  %545 = vmatprep.mubr.msk.bf16.mxu0 (!%p199_p7), %vm586_vm0, %v585_v1  ;;  %vm321_vm2 = vcmask (!%p199_p7), 261120   ;;  %vm292_vm3 = vcmask (!%p199_p7), 64512   ;;  %v531_v14 = vld [vmem:[%s673_s3] ss:$0 sm:$0xff] (!%p199_p7)  ;;  %vm398_vm4 = vcmask (!%p199_p7), 62464  }
  0x16   : > { %542 = vmatpush3.bf16.msra.mxu0 (!%p199_p7), %v560_v0  ;;  %v253_v4 = vshrl.u32 (!%p199_p7), %v252_v2, 7  ;;  %vm400_vm5 = vcmask (!%p199_p7), 64518   ;;  %vm402_vm6 = vcmask (!%p199_p7), 60416  }
  0x17   : > { %543 = vmatprep.subr.bf16.mxu0 (!%p199_p7), %v585_v1 }
  0x1a   : > { %544 = vmatpush3.bf16.msra.mxu0 (!%p199_p7), %v561_v3  ;;  %v254_v5 = vstv (!%p199_p7), %s251_s7 }
  0x1b   : > { %vm645_vm1 = vcmp.lt.s32.totalorder (!%p199_p7), %v253_v4, %v254_v5 }
  0x1c   : > { %s680_s0 = smov (!%p233_p8, %s521_s0), 1 }
  0x1d   : > { %s639_s8 = sshll.u32 %s680_s0, 3  ;;  %s537_s12 = sshll.u32 %s680_s0, 5 }
  0x1e   : > { %s236_s11 = scalar_lea.vmem %s671_s1, %s639_s8  ;;  %s241_s15 = scalar_lea.vmem %s674_s4, %s537_s12 }
  0x1f   : > { %v256_v6 = vld [vmem:[%s236_s11] sm:$0xff]  ;;  %s245_s20 = scalar_lea.vmem %s675_s5, %s639_s8  ;;  %s249_s23 = scalar_lea.vmem %s676_s6, %s639_s8 }
  0x20   : > { %v259_v8 = vsel %vm645_vm1, %v256_v6, 0.0 }
  0x21   : > { %v297_v9 = vpack.c.bf16 %v259_v8, %v259_v8  ;;  %260 = vxpose.xlu0.b32.start.end [1/1] (short) (narrow) %v259_v8, 32 }
  0x23   : > { %546 = vmatmul.mubr.msk.bf16.vlgmr.msra.gmra.mrb[0].mxu0 %vm321_vm2, %v297_v9 }
  0xa1   : > { %v276_v10 = vpop.trf.xlu0 }
  0xa2   : > { %293 = vst.msk [vmem:[%s241_s15] sm:$0xff] %vm292_vm3, %v276_v10 }
  0xa5   : > { %v277_v11 = vpop.trf.xlu0 }
  0xa6   : > { %294 = vst.msk [vmem:[%s241_s15 + $0x8] sm:$0xff] %vm292_vm3, %v277_v11 }
  0xa9   : > { %v278_v12 = vpop.trf.xlu0 }
  0xaa   : > { %295 = vst.msk [vmem:[%s241_s15 + $0x10] sm:$0xff] %vm292_vm3, %v278_v12 }
  0xad   : > { %v279_v13 = vpop.trf.xlu0 }
  0xae   : > { %296 = vst.msk [vmem:[%s241_s15 + $0x18] sm:$0xff] %vm292_vm3, %v279_v13 }
  0xf6   : > { %v359_v15 = vpop.f32.mrb[0].mxu0 }
  0xf7   : > { %v360_v16 = vadd.f32 %v531_v14, %v359_v15  ;;  %v547_v17 = vpop.f32.mrb[1].mxu0 }
  0xf8   : > { %v362_v18 = vpop.f32.mrb[2].mxu0 }
  0xf9   : > { %v548_v19 = vpop.f32.mrb[3].mxu0  ;;  %v365_v20 = vsel %vm645_vm1, %v360_v16, 0.0 }
  0xfa   : > { %366 = vxpose.xlu0.b32.start.end [1/1] (short) (narrow) %v365_v20, 16 }
 0x17a   : > { %v382_v21 = vpop.trf.xlu0 }
 0x17b   : > { %399 = vst.msk [vmem:[%s245_s20] sm:$0x3f] %vm398_vm4, %v382_v21 }
 0x17c   : > { %401 = vst.msk [vmem:[%s249_s23 - $0x6] sm:$0xc0] %vm400_vm5, %v382_v21 }
 0x17e   : > { %v383_v22 = vpop.trf.xlu0 }
 0x17f   : > { %403 = vst.msk [vmem:[%s249_s23 + $0x2] sm:$0xf] %vm402_vm6, %v383_v22 }
 0x180 PF: > { %s23_s26 = sadd.s32 1, %s582_s26  }
 0x181   : > { %p20_p9 = scmp.ge.s32.totalorder %s23_s26, 4  }
 0x183   :  { %22 = sbr.rel (!%p20_p9) target bundleno = 16 (0x10), region = 86 }

// kernel: text_encoder_forward.6
= control target key start
LH: loop header
LB: loop body
LE: loop exit
PB: predicated region body
PF: predicated region fallthrough
CT: control target
= control target key end

     0   :  { %s1253_s0 = inlined_call_operand.vmem [shape: s32[2], index: 0, kind: input, shape index: {}]   ;;  %s1254_s1 = inlined_call_operand.vmem [shape: f32[2,8,32], index: 1, kind: input, shape index: {}]   ;;  %s1255_s2 = inlined_call_operand.vmem [shape: bf16[3,32,64], index: 2, kind: input, shape index: {}]   ;;  %s1256_s3 = inlined_call_operand.vmem [shape: f32[1,64], index: 3, kind: input, shape index: {}]   ;;  %s1257_s4 = inlined_call_operand.vmem [shape: bf16[3,64,32], index: 4, kind: input, shape index: {}]   ;;  %s1258_s5 = inlined_call_operand.vmem [shape: f32[1,32], index: 5, kind: input, shape index: {}]   ;;  %s1259_s6 = inlined_call_operand.vmem [shape: f32[1,32], index: 6, kind: input, shape index: {}]   ;;  %s1260_s7 = inlined_call_operand.vmem [shape: f32[1,32], index: 7, kind: input, shape index: {}]   ;;  %s1261_s8 = inlined_call_operand.vmem [shape: f32[2,8,32], index: 8, kind: output, shape index: {}]  }
   0x1   :  { %s13_s29 = sshll.u32 %s1253_s0, 4  ;;  %s14_s29 = int_to_ptr.vmem [resolvable:$true] %s13_s29 }
   0x2   :  { %s1033_s30 = scalar_lea.vmem %s14_s29, 16  ;;  %p1038_p1 = scmp.lt.s32.totalorder %s14_s29, %s14_s29 }
   0x3   :  { %p1034_p0 = scmp.ne.s32.totalorder %s14_s29, %s1033_s30  ;;  %p1039_p2 = scmp.lt.s32.totalorder %s1033_s30, %s1033_s30 }
   0x5   :  { %p1040_p3 = por %p1039_p2, %p1038_p1 }
   0x7   :  { %p1041_p4 = pnand %p1040_p3, %p1034_p0 }
   0x9   :  { %1044 = shalt.err (!%p1041_p4)  }
   0xa   :  { %s1055_s9 = smov [#allocation3]  }
   0xb   :  { %16 = dma.vmem_to_smem %s14_s29, 16, %s1055_s9, [#allocation2] }
   0xc   :  { %1049 = dma.done.wait [#allocation2], 16 }
   0xd   :  { %1050 = vsyncadd [#allocation2], 4294967280 }
   0xe   :  { %18 = sfence }
   0xf   :  { %s1106_s10 = smov 0  }
  0x10 LB: > { %s842_s0 = sadd.s32 4294967295, %s1053_s10   ;;  %p846_p5 = scmp.ge.s32.totalorder %s1053_s10, 1  ;;  %s1053_s10 = sphi %s1106_s10, %s24_s10  }
  0x11   : > { %p243_p6 = scmp.lt.s32.totalorder %s1053_s10, 3 }
  0x13   : > { %p244_p7 = pnand %p846_p5, %p243_p6 }
  0x14   : > { %v1013_v0 = vld [vmem:[%s1255_s2] sm:$0xff] (!%p244_p7)   ;;  %v1056_v1 = vmov (!%p244_p7), 0.0   ;;  %v283_v2 = vlaneseq (!%p244_p7)  ;;  %v1014_v3 = vld [vmem:[%s1255_s2 + $0x8] sm:$0xff] (!%p244_p7)   ;;  %vm1057_vm0 = vmmov (!%p244_p7), 0   ;;  %p273_p8 = scmp.lt.s32.totalorder (!%p244_p7), %s842_s0, 1  ;;  %s282_s15 = sld [smem:[#allocation3 + %s842_s0]] (!%p244_p7) }
  0x15   : > { %247 = sbr.rel (%p244_p7) target bundleno = 837 (0x345), region = 48  ;;  %927 = vmatprep.subr.bf16.mxu0 (!%p244_p7), %v1056_v1  ;;  %963 = vmatprep.subr.bf16.mxu1 (!%p244_p7), %v1056_v1  ;;  %vm295_vm1 = vcmask (!%p244_p7), 1040384   ;;  %vm322_vm3 = vcmask (!%p244_p7), 261120   ;;  %v1015_v10 = vld [vmem:[%s1255_s2 + $0x10] sm:$0xff] (!%p244_p7)   ;;  %v1016_v16 = vld [vmem:[%s1255_s2 + $0x18] sm:$0xff] (!%p244_p7)   ;;  %v1017_v20 = vld [vmem:[%s1255_s2 + $0x20] sm:$0xff] (!%p244_p7)  }
  0x16   : > { %928 = vmatpush3.bf16.msra.mxu0 (!%p244_p7), %v1013_v0  ;;  %931 = vmatprep.mubr.msk.bf16.mxu0 (!%p244_p7), %vm1057_vm0, %v1056_v1  ;;  %v284_v4 = vshrl.u32 (!%p244_p7), %v283_v2, 7  ;;  %v1018_v21 = vld [vmem:[%s1255_s2 + $0x28] sm:$0xff] (!%p244_p7)   ;;  %v1019_v23 = vld [vmem:[%s1257_s4] sm:$0xff] (!%p244_p7)   ;;  %v1022_v26 = vld [vmem:[%s1257_s4 + $0x10] sm:$0xff] (!%p244_p7)   ;;  %vm547_vm4 = vcmask (!%p244_p7), 523264  }
  0x17   : > { %929 = vmatprep.subr.bf16.mxu0 (!%p244_p7), %v1056_v1  ;;  %971 = vmatprep.mubr.msk.bf16.mxu1 (!%p244_p7), %vm1057_vm0, %v1056_v1  ;;  %v1020_v24 = vld [vmem:[%s1257_s4 + $0x8] sm:$0xff] (!%p244_p7)   ;;  %v1021_v25 = vld [vmem:[%s1257_s4 + $0x20] sm:$0xff] (!%p244_p7)   ;;  %v1024_v28 = vld [vmem:[%s1257_s4 + $0x18] sm:$0xff] (!%p244_p7)  }
  0x18   : > { %964 = vmatpush3.bf16.msra.mxu1 (!%p244_p7), %v1021_v25  ;;  %v1023_v27 = vld [vmem:[%s1257_s4 + $0x28] sm:$0xff] (!%p244_p7)   ;;  %v1025_v29 = vld [vmem:[%s1257_s4 + $0x30] sm:$0xff] (!%p244_p7)   ;;  %v1026_v30 = vld [vmem:[%s1257_s4 + $0x38] sm:$0xff] (!%p244_p7)  }
  0x19   : > { %965 = vmatprep.subr.bf16.mxu1 (!%p244_p7), %v1056_v1  ;;  %v849_v31 = vld [vmem:[%s1256_s3] ss:$0 sm:$0xff] (!%p244_p7)  ;;  %v1028_v49 = vld [vmem:[%s1257_s4 + $0x48] sm:$0xff] (!%p244_p7)   ;;  %v1029_v50 = vld [vmem:[%s1257_s4 + $0x50] sm:$0xff] (!%p244_p7)  }
  0x1a   : > { %930 = vmatpush3.bf16.msra.mxu0 (!%p244_p7), %v1014_v3  ;;  %v285_v5 = vstv (!%p244_p7), %s282_s15  ;;  %v1027_v47 = vld [vmem:[%s1257_s4 + $0x40] sm:$0xff] (!%p244_p7)   ;;  %v1030_v51 = vld [vmem:[%s1257_s4 + $0x58] sm:$0xff] (!%p244_p7)  }
  0x1b   : > { %935 = vmatprep.subr.bf16.mxu0 (!%p244_p7), %v1056_v1  ;;  %vm1138_vm2 = vcmp.lt.s32.totalorder (!%p244_p7), %v284_v4, %v285_v5  ;;  %v867_v57 = vld [vmem:[%s1258_s5] ss:$0 sm:$0xff] (!%p244_p7) }
  0x1c   : > { %s1265_s0 = smov (!%p273_p8, %s842_s0), 1  ;;  %966 = vmatpush3.bf16.msra.mxu1 %v1023_v27 }
  0x1d   : > { %s847_s16 = sshll.u32 %s1265_s0, 3  ;;  %967 = vmatprep.subr.bf16.mxu1 %v1056_v1 }
  0x1e   : > { %s276_s19 = scalar_lea.vmem %s1254_s1, %s847_s16  ;;  %s280_s22 = scalar_lea.vmem %s1261_s8, %s847_s16 }
  0x1f   : > { %v1136_v6 = vld [vmem:[%s276_s19] sm:$0xff] }
  0x20   : > { %v290_v8 = vsel %vm1138_vm2, %v1136_v6, 0.0  ;;  %968 = vmatpush3.bf16.msra.mxu1 %v1025_v29 }
  0x21   : > { %v293_v9 = vrot.slane %v290_v8, 7  ;;  %969 = vmatprep.subr.bf16.mxu1 %v1056_v1 }
  0x23   : > { %v296_v11 = vsel %vm295_vm1, 0.0, %v293_v9  ;;  %v297_v12 = vsel %vm295_vm1, %v293_v9, 0.0 }
  0x24   : > { %v305_v13 = vpack.c.bf16 %v296_v11, %v296_v11  ;;  %v367_v14 = vpack.c.bf16 %v297_v12, %v296_v11  ;;  %970 = vmatpush3.bf16.msra.mxu1 %v1026_v30 }
  0x25   : > { %975 = vmatprep.subr.bf16.mxu1 %v1056_v1 }
  0x26   : > { %932 = vmatmul.mubr.msk.bf16.vlgmr.msra.gmra.mrb[0].mxu0 %vm322_vm3, %v305_v13  ;;  %v376_v15 = vshll.u32 %v367_v14, 16  ;;  %v374_v17 = vshrl.u32 %v367_v14, 16  ;;  %v442_v22 = vrot.slane %v367_v14, 1  ;;  %v900_v14 = vld [vmem:[%s1260_s7] ss:$0 sm:$0xff] }
  0x27   : > { %936 = vmatpush3.bf16.msra.mxu0 %v1015_v10  ;;  %939 = vmatprep.mubr.msk.bf16.mxu0 %vm1057_vm0, %v1056_v1 }
  0x28   : > { %937 = vmatprep.subr.bf16.mxu0 %v1056_v1  ;;  %v378_v18 = vrot.slane %v376_v15, 1 }
  0x2a   : > { %v379_v19 = vor.u32 %v378_v18, %v374_v17 }
  0x2b   : > { %938 = vmatpush3.bf16.msra.mxu0 %v1016_v16 }
  0x2c   : > { %943 = vmatprep.subr.bf16.mxu0 %v1056_v1 }
  0x32   : > { %940 = vmatmul.mubr.msk.bf16.vlgmr.msra.gmra.mrb[0].mxu0 %vm322_vm3, %v379_v19 }
  0x33   : > { %944 = vmatpush3.bf16.msra.mxu0 %v1017_v20  ;;  %947 = vmatprep.mubr.msk.bf16.mxu0 %vm1057_vm0, %v1056_v1 }
  0x34   : > { %945 = vmatprep.subr.bf16.mxu0 %v1056_v1 }
  0x37   : > { %946 = vmatpush3.bf16.msra.mxu0 %v1018_v21 }
  0x38   : > { %951 = vmatprep.subr.bf16.mxu0 %v1056_v1 }
  0x3e   : > { %948 = vmatmul.mubr.msk.bf16.vlgmr.msra.gmra.mrb[0].mxu0 %vm322_vm3, %v442_v22 }
  0x3f   : > { %952 = vmatpush3.bf16.msra.mxu0 %v1019_v23  ;;  %959 = vmatprep.mubr.msk.bf16.mxu0 %vm1057_vm0, %v1056_v1 }
  0x40   : > { %953 = vmatprep.subr.bf16.mxu0 %v1056_v1 }
  0x43   : > { %954 = vmatpush3.bf16.msra.mxu0 %v1020_v24 }
  0x44   : > { %955 = vmatprep.subr.bf16.mxu0 %v1056_v1 }
  0x47   : > { %956 = vmatpush3.bf16.msra.mxu0 %v1022_v26 }
  0x48   : > { %957 = vmatprep.subr.bf16.mxu0 %v1056_v1 }
  0x4b   : > { %958 = vmatpush3.bf16.msra.mxu0 %v1024_v28 }
 0x111   : > { %v492_v32 = vpop.f32.mrb[0].mxu0 }
 0x112   : > { %v987_v33 = vadd.f32 %v849_v31, %v492_v32  ;;  %v949_v34 = vpop.f32.mrb[1].mxu0 }
 0x113   : > { %v495_v35 = vpop.f32.mrb[2].mxu0 }
 0x114   : > { %v499_v36 = vmax.f32 %v987_v33, 0.0  ;;  %v950_v37 = vpop.f32.mrb[3].mxu0 }
 0x116   : > { %v500_v38 = vsel %vm1138_vm2, %v499_v36, 0.0 }
 0x117   : > { %v503_v39 = vrot.slane %v500_v38, 7 }
 0x119   : > { %v505_v40 = vsel %vm295_vm1, 0.0, %v503_v39  ;;  %v506_v41 = vsel %vm295_vm1, %v503_v39, 0.0 }
 0x11a   : > { %v514_v42 = vpack.c.bf16 %v505_v40, %v505_v40  ;;  %v592_v43 = vpack.c.bf16 %v506_v41, %v505_v40 }
 0x11c   : > { %960 = vmatmul.mubr.msk.bf16.vlgmr.msra.gmra.mrb[4].mxu0 %vm547_vm4, %v514_v42  ;;  %v605_v44 = vshll.u32 %v592_v43, 16  ;;  %v603_v45 = vshrl.u32 %v592_v43, 16  ;;  %v687_v52 = vrot.slane %v592_v43, 1 }
 0x11e   : > { %v607_v46 = vrot.slane %v605_v44, 1 }
 0x120   : > { %v608_v48 = vor.u32 %v607_v46, %v603_v45 }
 0x122   : > { %972 = vmatmul.mubr.msk.bf16.vlgmr.msra.gmra.mrb[0].mxu1 %vm547_vm4, %v608_v48 }
 0x123   : > { %976 = vmatpush3.bf16.msra.mxu1 %v1027_v47  ;;  %983 = vmatprep.mubr.msk.bf16.mxu1 %vm1057_vm0, %v1056_v1 }
 0x124   : > { %977 = vmatprep.subr.bf16.mxu1 %v1056_v1 }
 0x127   : > { %978 = vmatpush3.bf16.msra.mxu1 %v1028_v49 }
 0x128   : > { %979 = vmatprep.subr.bf16.mxu1 %v1056_v1 }
 0x12b   : > { %980 = vmatpush3.bf16.msra.mxu1 %v1029_v50 }
 0x12c   : > { %981 = vmatprep.subr.bf16.mxu1 %v1056_v1 }
 0x12f   : > { %982 = vmatpush3.bf16.msra.mxu1 %v1030_v51 }
 0x132   : > { %984 = vmatmul.mubr.msk.bf16.vlgmr.msra.gmra.mrb[0].mxu1 %vm547_vm4, %v687_v52 }
 0x1ef   : > { %v585_v53 = vpop.f32.mrb[4].mxu0 }
 0x1f0   : > { %v961_v54 = vpop.f32.mrb[5].mxu0  ;;  %v591_v58 = vadd.f32 %v867_v57, %v585_v53 }
 0x1f1   : > { %v588_v55 = vpop.f32.mrb[6].mxu0 }
 0x1f2   : > { %v962_v56 = vpop.f32.mrb[7].mxu0 }
 0x205   : > { %v749_v59 = vpop.f32.mrb[0].mxu1 }
 0x206   : > { %v989_v60 = vadd.f32 %v749_v59, %v591_v58  ;;  %v985_v61 = vpop.f32.mrb[1].mxu1 }
 0x207   : > { %v752_v62 = vpop.f32.mrb[2].mxu1 }
 0x208   : > { %v756_v63 = vsel %vm1138_vm2, %v989_v60, 0.0  ;;  %v986_v0 = vpop.f32.mrb[3].mxu1 }
 0x209   : > { %v757_v1 = vadd.f32 %v756_v63, %v1136_v6  ;;  %v899_v6 = vld [vmem:[%s1259_s6] ss:$0 sm:$0xff] }
 0x20b   : > { %v758_v2 = vsel %vm322_vm3, %v757_v1, 0.0 }
 0x20c   : > { %759 = vadd.xlane.f32.xlu0 %v758_v2 }
 0x299   : > { %v760_v3 = vpop.xlane.xlu0 %759 }
 0x29a   : > { %v762_v4 = vmul.f32 0.03125, %v760_v3 }
 0x29c   : > { %v763_v5 = vsub.f32 %v757_v1, %v762_v4 }
 0x29e   : > { %v764_v8 = vmul.f32 %v763_v5, %v763_v5 }
 0x2a0   : > { %v765_v9 = vsel %vm322_vm3, %v764_v8, 0.0 }
 0x2a1   : > { %766 = vadd.xlane.f32.xlu0 %v765_v9 }
 0x32e   : > { %v767_v10 = vpop.xlane.xlu0 %766 }
 0x32f   : > { %v768_v11 = vmul.f32 0.03125, %v767_v10 }
 0x331   : > { %v769_v12 = vadd.f32 1e-05, %v768_v11 }
 0x333   : > { %1031 = vrsqrt.f32 %v769_v12 }
 0x33d   : > { %v1032_v7 = vpop.eup %1031 }
 0x33e   : > { %v771_v13 = vmul.f32 %v1032_v7, %v763_v5 }
 0x340   : > { %v779_v15 = vmul.f32 %v899_v6, %v771_v13 }
 0x342   : > { %v787_v16 = vadd.f32 %v900_v14, %v779_v15 }
 0x344   : > { %788 = vst.msk [vmem:[%s280_s22] sm:$0xff] %vm322_vm3, %v787_v16 }
 0x345 PF: > { %s24_s10 = sadd.s32 1, %s1053_s10  }
 0x346   : > { %p21_p9 = scmp.ge.s32.totalorder %s24_s10, 4  }
 0x348   :  { %23 = sbr.rel (!%p21_p9) target bundleno = 16 (0x10), region = 82 }

// kernel: text_encoder_forward.5
= control target key start
LH: loop header
LB: loop body
LE: loop exit
PB: predicated region body
PF: predicated region fallthrough
CT: control target
= control target key end

     0   :  { %s1829_s0 = inlined_call_operand.vmem [shape: s32[2], index: 0, kind: input, shape index: {}]   ;;  %s1830_s1 = inlined_call_operand.vmem [shape: f32[2,8,32], index: 1, kind: input, shape index: {}]   ;;  %s1831_s2 = inlined_call_operand.vmem [shape: bf16[32,96], index: 2, kind: input, shape index: {}]   ;;  %s1832_s3 = inlined_call_operand.vmem [shape: f32[1,96], index: 3, kind: input, shape index: {}]   ;;  %s1833_s4 = inlined_call_operand.vmem [shape: bf16[2,16,32], index: 4, kind: input, shape index: {}]   ;;  %s1834_s5 = inlined_call_operand.vmem [shape: f32[1,32], index: 5, kind: input, shape index: {}]   ;;  %s1835_s6 = inlined_call_operand.vmem [shape: bf16[16,9], index: 6, kind: input, shape index: {}]   ;;  %s1836_s7 = inlined_call_operand.vmem [shape: bf16[9,16], index: 7, kind: input, shape index: {}]   ;;  %s1837_s8 = inlined_call_operand.vmem [shape: f32[1,32], index: 8, kind: input, shape index: {}]   ;;  %s1838_s9 = inlined_call_operand.vmem [shape: f32[1,32], index: 9, kind: input, shape index: {}]   ;;  %s1839_s10 = inlined_call_operand.vmem [shape: f32[2,8,32], index: 10, kind: output, shape index: {}]  }
   0x1   :  { %s15_s15 = sshll.u32 %s1829_s0, 4  ;;  %s16_s15 = int_to_ptr.vmem [resolvable:$true] %s15_s15 }
   0x2   :  { %s1422_s16 = scalar_lea.vmem %s16_s15, 16  ;;  %p1427_p1 = scmp.lt.s32.totalorder %s16_s15, %s16_s15 }
   0x3   :  { %p1423_p0 = scmp.ne.s32.totalorder %s16_s15, %s1422_s16  ;;  %p1428_p2 = scmp.lt.s32.totalorder %s1422_s16, %s1422_s16 }
   0x5   :  { %p1429_p3 = por %p1428_p2, %p1427_p1 }
   0x7   :  { %p1430_p4 = pnand %p1429_p3, %p1423_p0 }
   0x9   :  { %1433 = shalt.err (!%p1430_p4)  }
   0xa   :  { %s1444_s17 = smov [#allocation3]  }
   0xb   :  { %18 = dma.vmem_to_smem %s16_s15, 16, %s1444_s17, [#allocation2] }
   0xc   :  { %1438 = dma.done.wait [#allocation2], 16 }
   0xd   :  { %1439 = vsyncadd [#allocation2], 4294967280 }
   0xe   :  { %20 = sfence }
   0xf   :  { %s1520_s18 = smov 0  }
  0x10 LB: > { %s1230_s0 = sadd.s32 4294967295, %s1442_s18   ;;  %p1234_p5 = scmp.ge.s32.totalorder %s1442_s18, 1  ;;  %s1442_s18 = sphi %s1520_s18, %s26_s18  }
  0x11   : > { %p293_p6 = scmp.lt.s32.totalorder %s1442_s18, 3 }
  0x13   : > { %p294_p7 = pnand %p1234_p5, %p293_p6 }
  0x14   : > { %v1406_v0 = vld [vmem:[%s1831_s2] sm:$0xff] (!%p294_p7)   ;;  %v337_v1 = vlaneseq (!%p294_p7)  ;;  %v1445_v2 = vmov (!%p294_p7), 0.0   ;;  %v1407_v3 = vld [vmem:[%s1831_s2 + $0x8] sm:$0xff] (!%p294_p7)   ;;  %vm1446_vm0 = vmmov (!%p294_p7), 0   ;;  %p327_p8 = scmp.lt.s32.totalorder (!%p294_p7), %s1230_s0, 1  ;;  %s1538_s23 = sld [smem:[#allocation3 + %s1230_s0]] (!%p294_p7) }
  0x15   : > { %297 = sbr.rel (%p294_p7) target bundleno = 2003 (0x7d3), region = 56  ;;  %1285 = vmatprep.subr.bf16.mxu0 (!%p294_p7), %v1445_v2  ;;  %1293 = vmatprep.subr.bf16.mxu1 (!%p294_p7), %v1445_v2  ;;  %vm383_vm2 = vcmask (!%p294_p7), 261120   ;;  %v1408_v10 = vld [vmem:[%s1835_s6] sm:$0xff] (!%p294_p7)   ;;  %vm438_vm3 = vcmask (!%p294_p7), 130048   ;;  %s1447_s12 = smov (!%p294_p7), 80   ;;  %v1450_v20 = vmov (!%p294_p7), 1  }
  0x16   : > { %1286 = vmatpush3.bf16.msra.mxu0 (!%p294_p7), %v1406_v0  ;;  %1289 = vmatprep.mubr.msk.bf16.mxu0 (!%p294_p7), %vm1446_vm0, %v1445_v2  ;;  %v1546_v4 = vshrl.u32 (!%p294_p7), %v337_v1, 7  ;;  %v1237_v11 = vld [vmem:[%s1832_s3] ss:$0 sm:$0xff] (!%p294_p7)  ;;  %s1448_s13 = smov (!%p294_p7), 96   ;;  %s1449_s14 = smov (!%p294_p7), 112   ;;  %v1451_v21 = vmov (!%p294_p7), 0  }
  0x17   : > { %1287 = vmatprep.subr.bf16.mxu0 (!%p294_p7), %v1445_v2  ;;  %1295 = vmatprep.mubr.msk.bf16.mxu1 (!%p294_p7), %vm1446_vm0, %v1445_v2  ;;  %v1452_v31 = vmov (!%p294_p7), 4   ;;  %v1453_v32 = vmov (!%p294_p7), 2   ;;  %v1454_v33 = vmov (!%p294_p7), 7   ;;  %v1455_v34 = vmov (!%p294_p7), 3   ;;  %s1460_s17 = smov (!%p294_p7), 48   ;;  %s1461_s19 = smov (!%p294_p7), 64  }
  0x18   : > { %1294 = vmatpush3.bf16.msra.mxu1 (!%p294_p7), %v1408_v10  ;;  %1388 = vset.pattern.permute.xlu0 (!%p294_p7), %v1450_v20  ;;  %v1456_v35 = vmov (!%p294_p7), 5   ;;  %v1457_v36 = vmov (!%p294_p7), 6   ;;  %v1458_v37 = vmov (!%p294_p7), 8   ;;  %v340_v52 = vand.u32 (!%p294_p7), 127, %v337_v1 }
  0x19   : > { %1299 = vmatprep.subr.bf16.mxu1 (!%p294_p7), %v1445_v2  ;;  %1387 = vset.pattern.permute.xlu1 (!%p294_p7), %v1451_v21  ;;  %vm575_vm15 = vcmask (!%p294_p7), 64512  }
  0x1a   : > { %1288 = vmatpush3.bf16.msra.mxu0 (!%p294_p7), %v1407_v3  ;;  %v342_v5 = vstv (!%p294_p7), %s1538_s23  ;;  %v1604_v53 = vsub.s32 (!%p294_p7), %v340_v52, %v1546_v4 }
  0x1b   : > { %1305 = vmatprep.subr.bf16.mxu0 (!%p294_p7), %v1445_v2  ;;  %vm1559_vm1 = vcmp.lt.s32.totalorder (!%p294_p7), %v1546_v4, %v342_v5  ;;  %vm1635_vm13 = vcmp.lt.s32.totalorder (!%p294_p7), %v340_v52, %v342_v5 }
  0x1c   : > { %s1845_s0 = smov (!%p327_p8, %s1230_s0), 1  ;;  %vm346_vm4 = vcmp.eq.s32.totalorder %v1604_v53, 4294967292  ;;  %vm347_vm5 = vcmp.eq.s32.totalorder %v1604_v53, 4294967293  ;;  %vm348_vm6 = vcmp.eq.s32.totalorder %v1604_v53, 4294967294  ;;  %vm349_vm7 = vcmp.eq.s32.totalorder %v1604_v53, 4294967295  ;;  %vm345_vm14 = vmand %vm1559_vm1, %vm1635_vm13 }
  0x1d   : > { %s1235_s24 = sshll.u32 %s1845_s0, 3  ;;  %vm350_vm8 = vcmp.eq.s32.totalorder %v1604_v53, 0  ;;  %vm351_vm9 = vcmp.eq.s32.totalorder %v1604_v53, 1  ;;  %vm352_vm10 = vcmp.eq.s32.totalorder %v1604_v53, 2  ;;  %vm353_vm11 = vcmp.eq.s32.totalorder %v1604_v53, 3 }
  0x1e   : > { %s330_s27 = scalar_lea.vmem %s1830_s1, %s1235_s24  ;;  %vm354_vm12 = vcmp.eq.s32.totalorder %v1604_v53, 4  ;;  %vm652_vm13 = vcmask 1044480  }
  0x1f   : > { %v355_v6 = vld [vmem:[%s330_s27] sm:$0xff] }
  0x20   : > { %v1565_v8 = vsel %vm1559_vm1, %v355_v6, 0.0  ;;  %vm651_vm1 = vcmask 1043456  }
  0x21   : > { %v359_v9 = vpack.c.bf16 %v1565_v8, %v1565_v8 }
  0x23   : > { %1290 = vmatmul.mubr.msk.bf16.vlgmr.msra.gmra.mrb[0].mxu0 %vm383_vm2, %v359_v9 }
  0x24   : > { %1307 = vmatprep.mubr.msk.bf16.mxu0 %vm1446_vm0, %v1445_v2 }
  0xf6   : > { %v421_v12 = vpop.f32.mrb[0].mxu0 }
  0xf7   : > { %v422_v13 = vadd.f32 %v1237_v11, %v421_v12  ;;  %v1291_v14 = vpop.f32.mrb[1].mxu0 }
  0xf8   : > { %v424_v15 = vpop.f32.mrb[2].mxu0 }
  0xf9   : > { %v427_v16 = vmul.f32 0.25, %v422_v13  ;;  %v1579_v17 = vpack.c.bf16 %v422_v13, %v422_v13  ;;  %v1292_v18 = vpop.f32.mrb[3].mxu0 }
  0xfb   : > { %v428_v19 = vpack.c.bf16 %v427_v16, %v427_v16  ;;  %841 = vrot.lane.b32.xlu1 %v1579_v17, %s1447_s12  ;;  %529 = vrot.lane.b32.xlu0 %v1579_v17, %s1448_s13  ;;  %s334_s13 = scalar_lea.vmem %s1839_s10, %s1235_s24 }
  0xfd   : > { %1296 = vmatmul.mubr.msk.bf16.vlgmr.msra.gmra.mrb[0].mxu1 %vm438_vm3, %v428_v19 }
  0xfe   : > { %1301 = vmatprep.mubr.msk.bf16.mxu1 %vm1446_vm0, %v1445_v2 }
  0xff   : > { %750 = vrot.lane.b32.xlu0 %v428_v19, %s1449_s14 }
 0x16d   : > { %v530_v22 = vpop.permute.xlu0 %529  ;;  %v842_v24 = vpop.permute.xlu1 %841 }
 0x16e   : > { %v532_v23 = vsel %vm438_vm3, %v530_v22, 0  ;;  %v844_v26 = vsel %vm438_vm3, %v842_v24, 0 }
 0x16f   : > { %1300 = vmatpush3.bf16.xpose.msra.mxu1 %v532_v23 }
 0x170   : > { %1317 = vmatprep.subr.bf16.mxu1 %v1445_v2 }
 0x171   : > { %v751_v25 = vpop.permute.xlu0 %750 }
 0x176   : > { %1302 = vmatmul.mubr.msk.bf16.vlgmr.msra.gmra.mrb[4].mxu1 %vm438_vm3, %v428_v19 }
 0x177   : > { %1318 = vmatpush3.bf16.msra.mxu1 %v1408_v10  ;;  %1319 = vmatprep.mubr.msk.bf16.mxu1 %vm1446_vm0, %v1445_v2 }
 0x178   : > { %1323 = vmatprep.subr.bf16.mxu1 %v1445_v2 }
 0x17e   : > { %1320 = vmatmul.mubr.msk.bf16.vlgmr.msra.gmra.mrb[8].mxu1 %vm438_vm3, %v751_v25 }
 0x17f   : > { %1325 = vmatprep.mubr.msk.bf16.mxu1 %vm1446_vm0, %v1445_v2 }
 0x180   : > { %1324 = vmatpush3.bf16.xpose.msra.mxu1 %v844_v26 }
 0x181   : > { %1341 = vmatprep.subr.bf16.mxu1 %v1445_v2 }
 0x187   : > { %1326 = vmatmul.mubr.msk.bf16.vlgmr.msra.gmra.mrb[12].mxu1 %vm438_vm3, %v751_v25 }
 0x188   : > { %1343 = vmatprep.mubr.msk.bf16.mxu1 %vm1446_vm0, %v1445_v2 }
 0x1d0   : > { %v476_v27 = vpop.f32.mrb[0].mxu1 }
 0x1d1   : > { %489 = vperm.xlu0 %1388, %v476_v27   ;;  %484 = vperm.xlu1 %1387, %v476_v27   ;;  %v1297_v28 = vpop.f32.mrb[1].mxu1 }
 0x1d2   : > { %v479_v29 = vpop.f32.mrb[2].mxu1 }
 0x1d3   : > { %v1298_v30 = vpop.f32.mrb[3].mxu1 }
 0x1d5   : > { %1391 = vset.pattern.permute.xlu0 %v1452_v31  ;;  %1389 = vset.pattern.permute.xlu1 %v1453_v32 }
 0x1d6   : > { %504 = vperm.xlu0 %1391, %v476_v27   ;;  %494 = vperm.xlu1 %1389, %v476_v27  }
 0x1da   : > { %1394 = vset.pattern.permute.xlu0 %v1454_v33  ;;  %1390 = vset.pattern.permute.xlu1 %v1455_v34 }
 0x1db   : > { %519 = vperm.xlu0 %1394, %v476_v27   ;;  %499 = vperm.xlu1 %1390, %v476_v27  }
 0x1df   : > { %1392 = vset.pattern.permute.xlu1 %v1456_v35  ;;  %1397 = vset.pattern.permute.xlu0 %v1450_v20 }
 0x1e0   : > { %509 = vperm.xlu1 %1392, %v476_v27  }
 0x1e4   : > { %1393 = vset.pattern.permute.xlu1 %v1457_v36 }
 0x1e5   : > { %514 = vperm.xlu1 %1393, %v476_v27  }
 0x1e9   : > { %1395 = vset.pattern.permute.xlu1 %v1458_v37 }
 0x1ea   : > { %524 = vperm.xlu1 %1395, %v476_v27  }
 0x1ee   : > { %1396 = vset.pattern.permute.xlu1 %v1451_v21 }
 0x249   : > { %v568_v38 = vpop.f32.mrb[4].mxu1 }
 0x24a   : > { %v1303_v39 = vpop.f32.mrb[5].mxu1 }
 0x24b   : > { %v571_v40 = vpop.f32.mrb[6].mxu1 }
 0x24c   : > { %v1304_v41 = vpop.f32.mrb[7].mxu1 }
 0x250   : > { %v485_v50 = vpop.permute.xlu1 %484  ;;  %v490_v56 = vpop.permute.xlu0 %489 }
 0x251   : > { %v789_v42 = vpop.f32.mrb[8].mxu1  ;;  %v487_v57 = vsel %vm346_vm4, %v485_v50, 0.0 }
 0x252   : > { %802 = vperm.xlu0 %1397, %v789_v42   ;;  %797 = vperm.xlu1 %1396, %v789_v42   ;;  %v1321_v43 = vpop.f32.mrb[9].mxu1  ;;  %v492_v58 = vsel %vm347_vm5, %v490_v56, %v487_v57 }
 0x253   : > { %v792_v44 = vpop.f32.mrb[10].mxu1 }
 0x254   : > { %v1322_v45 = vpop.f32.mrb[11].mxu1 }
 0x255   : > { %v495_v51 = vpop.permute.xlu1 %494  ;;  %v505_v62 = vpop.permute.xlu0 %504 }
 0x256   : > { %1400 = vset.pattern.permute.xlu0 %v1452_v31  ;;  %1398 = vset.pattern.permute.xlu1 %v1453_v32  ;;  %v497_v59 = vsel %vm348_vm6, %v495_v51, %v492_v58 }
 0x257   : > { %817 = vperm.xlu0 %1400, %v789_v42   ;;  %807 = vperm.xlu1 %1398, %v789_v42  }
 0x25a   : > { %v1600_v46 = vpop.f32.mrb[12].mxu1  ;;  %v500_v54 = vpop.permute.xlu1 %499 }
 0x25b   : > { %1403 = vset.pattern.permute.xlu0 %v1454_v33  ;;  %1399 = vset.pattern.permute.xlu1 %v1455_v34  ;;  %v1327_v47 = vpop.f32.mrb[13].mxu1  ;;  %v502_v60 = vsel %vm349_vm7, %v500_v54, %v497_v59  ;;  %v520_v4 = vpop.permute.xlu0 %519 }
 0x25c   : > { %832 = vperm.xlu0 %1403, %v789_v42   ;;  %812 = vperm.xlu1 %1399, %v789_v42   ;;  %v883_v48 = vpop.f32.mrb[14].mxu1  ;;  %v507_v63 = vsel %vm350_vm8, %v505_v62, %v502_v60 }
 0x25d   : > { %v1328_v49 = vpop.f32.mrb[15].mxu1 }
 0x25f   : > { %v510_v55 = vpop.permute.xlu1 %509 }
 0x260   : > { %1401 = vset.pattern.permute.xlu1 %v1456_v35  ;;  %1405 = vset.pattern.permute.xlu0 %v1458_v37  ;;  %v512_v0 = vsel %vm351_vm9, %v510_v55, %v507_v63 }
 0x261   : > { %822 = vperm.xlu1 %1401, %v789_v42  }
 0x264   : > { %v515_v61 = vpop.permute.xlu1 %514 }
 0x265   : > { %1402 = vset.pattern.permute.xlu1 %v1457_v36  ;;  %v517_v1 = vsel %vm352_vm10, %v515_v61, %v512_v0 }
 0x266   : > { %827 = vperm.xlu1 %1402, %v789_v42   ;;  %v522_v6 = vsel %vm353_vm11, %v520_v4, %v517_v1  ;;  %v1459_v4 = vmov 65535  }
 0x269   : > { %v525_v3 = vpop.permute.xlu1 %524 }
 0x26a   : > { %1404 = vset.pattern.permute.xlu1 %v1458_v37  ;;  %v527_v9 = vsel %vm354_vm12, %v525_v3, %v522_v6  ;;  %v1409_v3 = vld [vmem:[%s1836_s7] sm:$0x1f]   ;;  %v653_v6 = vsel %vm651_vm1, 4294967295, %v1459_v4 }
 0x26b   : > { %837 = vperm.xlu1 %1404, %v789_v42   ;;  %v569_v11 = vadd.f32 %v568_v38, %v527_v9  ;;  %v654_v9 = vsel %vm652_vm13, %v653_v6, 0 }
 0x26c   : > { %v1718_v10 = vand.u32 %v1409_v3, %v654_v9 }
 0x26d   : > { %v574_v12 = vsel %vm345_vm14, %v569_v11, -10000.0 }
 0x26e   : > { %v576_v13 = vsel %vm575_vm15, %v574_v12, -inf  ;;  %1306 = vmatpush3.bf16.msra.mxu0 %v1718_v10 }
 0x26f   : > { %1311 = vmatprep.subr.bf16.mxu0 %v1445_v2 }
 0x28f   : > { %577 = vmax.xlane.f32.xlu1 %v576_v13 }
 0x2d1   : > { %v798_v5 = vpop.permute.xlu1 %797  ;;  %v803_v16 = vpop.permute.xlu0 %802 }
 0x2d2   : > { %v800_v18 = vsel %vm346_vm4, %v798_v5, 0.0 }
 0x2d3   : > { %v805_v19 = vsel %vm347_vm5, %v803_v16, %v800_v18 }
 0x2d6   : > { %v808_v14 = vpop.permute.xlu1 %807  ;;  %v818_v23 = vpop.permute.xlu0 %817 }
 0x2d7   : > { %v810_v21 = vsel %vm348_vm6, %v808_v14, %v805_v19 }
 0x2db   : > { %v813_v15 = vpop.permute.xlu1 %812  ;;  %v833_v28 = vpop.permute.xlu0 %832 }
 0x2dc   : > { %v815_v22 = vsel %vm349_vm7, %v813_v15, %v810_v21 }
 0x2dd   : > { %v820_v24 = vsel %vm350_vm8, %v818_v23, %v815_v22 }
 0x2e0   : > { %v823_v20 = vpop.permute.xlu1 %822 }
 0x2e1   : > { %v825_v26 = vsel %vm351_vm9, %v823_v20, %v820_v24 }
 0x2e5   : > { %v828_v25 = vpop.permute.xlu1 %827 }
 0x2e6   : > { %v830_v27 = vsel %vm352_vm10, %v828_v25, %v825_v26 }
 0x2e7   : > { %v835_v29 = vsel %vm353_vm11, %v833_v28, %v830_v27 }
 0x2ea   : > { %v838_v30 = vpop.permute.xlu1 %837 }
 0x2eb   : > { %v840_v31 = vsel %vm354_vm12, %v838_v30, %v835_v29 }
 0x2ec   : > { %v881_v32 = vadd.f32 %v1600_v46, %v840_v31 }
 0x2ee   : > { %v886_v33 = vsel %vm345_vm14, %v881_v32, -10000.0 }
 0x2ef   : > { %v887_v34 = vsel %vm575_vm15, %v886_v33, -inf }
 0x2f0   : > { %888 = vmax.xlane.f32.xlu0 %v887_v34 }
 0x31c   : > { %v578_v35 = vpop.xlane.xlu1 %577 }
 0x31d   : > { %v579_v36 = vsub.f32 %v574_v12, %v578_v35 }
 0x31f   : > { %v580_v37 = vmul.f32 1.442695, %v579_v36 }
 0x321   : > { %1412 = vpow2.f32 %v580_v37 }
 0x32b   : > { %v1413_v38 = vpop.eup %1412 }
 0x32c   : > { %v582_v39 = vsel %vm575_vm15, %v1413_v38, 0.0 }
 0x32d   : > { %583 = vadd.xlane.f32.xlu0 %v582_v39 }
 0x37d   : > { %v889_v40 = vpop.xlane.xlu0 %888 }
 0x37e   : > { %v890_v41 = vsub.f32 %v886_v33, %v889_v40 }
 0x380   : > { %v891_v42 = vmul.f32 1.442695, %v890_v41 }
 0x382   : > { %1414 = vpow2.f32 %v891_v42 }
 0x38c   : > { %v1415_v7 = vpop.eup %1414 }
 0x38d   : > { %v893_v43 = vsel %vm575_vm15, %v1415_v7, 0.0 }
 0x38e   : > { %894 = vadd.xlane.f32.xlu1 %v893_v43 }
 0x3ba   : > { %v584_v44 = vpop.xlane.xlu0 %583 }
 0x3bb   : > { %1416 = vrcp.f32 %v584_v44 }
 0x3c5   : > { %v1417_v45 = vpop.eup %1416 }
 0x3c6   : > { %v1676_v46 = vmul.f32 %v1417_v45, %v1413_v38 }
 0x3c8   : > { %v592_v47 = vsel %vm347_vm5, %v1676_v46, 0.0  ;;  %v588_v48 = vsel %vm346_vm4, %v1676_v46, 0.0  ;;  %v600_v51 = vsel %vm349_vm7, %v1676_v46, 0.0  ;;  %v596_v52 = vsel %vm348_vm6, %v1676_v46, 0.0 }
 0x3c9   : > { %v593_v49 = vsel %vm575_vm15, %v592_v47, 0.0  ;;  %v589_v50 = vsel %vm575_vm15, %v588_v48, 0.0  ;;  %v601_v54 = vsel %vm575_vm15, %v600_v51, 0.0  ;;  %v597_v55 = vsel %vm575_vm15, %v596_v52, 0.0 }
 0x3ca   : > { %594 = vadd.xlane.f32.xlu1 %v593_v49  ;;  %590 = vadd.xlane.f32.xlu0 %v589_v50  ;;  %v608_v56 = vsel %vm351_vm9, %v1676_v46, 0.0  ;;  %v604_v57 = vsel %vm350_vm8, %v1676_v46, 0.0  ;;  %v616_v60 = vsel %vm353_vm11, %v1676_v46, 0.0  ;;  %v612_v61 = vsel %vm352_vm10, %v1676_v46, 0.0 }
 0x3cb   : > { %v609_v58 = vsel %vm575_vm15, %v608_v56, 0.0  ;;  %v605_v59 = vsel %vm575_vm15, %v604_v57, 0.0  ;;  %v617_v62 = vsel %vm575_vm15, %v616_v60, 0.0  ;;  %v613_v63 = vsel %vm575_vm15, %v612_v61, 0.0 }
 0x3cc   : > { %v620_v0 = vsel %vm354_vm12, %v1676_v46, 0.0 }
 0x3cd   : > { %v621_v1 = vsel %vm575_vm15, %v620_v0, 0.0  ;;  %v587_v0 = vpack.c.bf16 %v1676_v46, %v1676_v46 }
 0x3ce   : > { %602 = vadd.xlane.f32.xlu1 %v601_v54  ;;  %598 = vadd.xlane.f32.xlu0 %v597_v55 }
 0x3d2   : > { %610 = vadd.xlane.f32.xlu1 %v609_v58  ;;  %606 = vadd.xlane.f32.xlu0 %v605_v59 }
 0x3d6   : > { %618 = vadd.xlane.f32.xlu1 %v617_v62  ;;  %614 = vadd.xlane.f32.xlu0 %v613_v63 }
 0x3da   : > { %622 = vadd.xlane.f32.xlu0 %v621_v1 }
 0x41b   : > { %v895_v11 = vpop.xlane.xlu1 %894 }
 0x41c   : > { %1418 = vrcp.f32 %v895_v11 }
 0x426   : > { %v1419_v12 = vpop.eup %1418 }
 0x427   : > { %v1722_v13 = vmul.f32 %v1419_v12, %v1415_v7  ;;  %v1410_v12 = vld [vmem:[%s1833_s4 + $0x8] sm:$0xff]  }
 0x428   : > { %1342 = vmatpush3.bf16.msra.mxu1 %v1410_v12 }
 0x429   : > { %v899_v5 = vsel %vm346_vm4, %v1722_v13, 0.0  ;;  %v903_v14 = vsel %vm347_vm5, %v1722_v13, 0.0  ;;  %v907_v18 = vsel %vm348_vm6, %v1722_v13, 0.0  ;;  %v911_v19 = vsel %vm349_vm7, %v1722_v13, 0.0  ;;  %1347 = vmatprep.subr.bf16.mxu1 %v1445_v2 }
 0x42a   : > { %v900_v15 = vsel %vm575_vm15, %v899_v5, 0.0  ;;  %v904_v16 = vsel %vm575_vm15, %v903_v14, 0.0  ;;  %v908_v20 = vsel %vm575_vm15, %v907_v18, 0.0  ;;  %v912_v21 = vsel %vm575_vm15, %v911_v19, 0.0  ;;  %v1411_v19 = vld [vmem:[%s1833_s4] sm:$0xff]  }
 0x42b   : > { %901 = vadd.xlane.f32.xlu1 %v900_v15  ;;  %905 = vadd.xlane.f32.xlu0 %v904_v16  ;;  %v915_v22 = vsel %vm350_vm8, %v1722_v13, 0.0  ;;  %v919_v23 = vsel %vm351_vm9, %v1722_v13, 0.0  ;;  %v923_v26 = vsel %vm352_vm10, %v1722_v13, 0.0  ;;  %v927_v27 = vsel %vm353_vm11, %v1722_v13, 0.0 }
 0x42c   : > { %v916_v24 = vsel %vm575_vm15, %v915_v22, 0.0  ;;  %v920_v25 = vsel %vm575_vm15, %v919_v23, 0.0  ;;  %v924_v28 = vsel %vm575_vm15, %v923_v26, 0.0  ;;  %v928_v29 = vsel %vm575_vm15, %v927_v27, 0.0 }
 0x42d   : > { %v931_v30 = vsel %vm354_vm12, %v1722_v13, 0.0  ;;  %vm624_vm4 = vcmask 7168   ;;  %vm626_vm5 = vcmask 15360   ;;  %vm628_vm6 = vcmask 23552  }
 0x42e   : > { %v932_v31 = vsel %vm575_vm15, %v931_v30, 0.0  ;;  %vm630_vm7 = vcmask 31744   ;;  %vm632_vm8 = vcmask 39936   ;;  %vm634_vm9 = vcmask 48128  }
 0x42f   : > { %909 = vadd.xlane.f32.xlu1 %v908_v20  ;;  %913 = vadd.xlane.f32.xlu0 %v912_v21  ;;  %vm636_vm10 = vcmask 56320   ;;  %vm647_vm11 = vcmask 72704  }
 0x433   : > { %917 = vadd.xlane.f32.xlu1 %v916_v24  ;;  %921 = vadd.xlane.f32.xlu0 %v920_v25 }
 0x437   : > { %925 = vadd.xlane.f32.xlu1 %v924_v28  ;;  %929 = vadd.xlane.f32.xlu0 %v928_v29  ;;  %v1257_v29 = vld [vmem:[%s1834_s5] ss:$0 sm:$0xff] }
 0x43b   : > { %933 = vadd.xlane.f32.xlu1 %v932_v31 }
 0x44c   : > { %987 = vrot.lane.b32.xlu1 %v1579_v17, %s1460_s17 }
 0x44d   : > { %698 = vrot.lane.b32.xlu0 %v1579_v17, %s1461_s19 }
 0x457   : > { %v595_v32 = vpop.xlane.xlu1 %594  ;;  %v591_v33 = vpop.xlane.xlu0 %590 }
 0x458   : > { %v625_v34 = vsel %vm624_vm4, %v591_v33, %v595_v32 }
 0x45b   : > { %v603_v35 = vpop.xlane.xlu1 %602  ;;  %v599_v36 = vpop.xlane.xlu0 %598 }
 0x45c   : > { %v627_v53 = vsel %vm626_vm5, %v625_v34, %v599_v36 }
 0x45d   : > { %v629_v38 = vsel %vm628_vm6, %v627_v53, %v603_v35 }
 0x45f   : > { %v611_v37 = vpop.xlane.xlu1 %610  ;;  %v607_v39 = vpop.xlane.xlu0 %606 }
 0x460   : > { %v631_v40 = vsel %vm630_vm7, %v629_v38, %v607_v39 }
 0x461   : > { %v633_v17 = vsel %vm632_vm8, %v631_v40, %v611_v37 }
 0x463   : > { %v615_v41 = vpop.xlane.xlu0 %614  ;;  %v619_v42 = vpop.xlane.xlu1 %618 }
 0x464   : > { %v635_v7 = vsel %vm634_vm9, %v633_v17, %v615_v41 }
 0x465   : > { %v637_v43 = vsel %vm636_vm10, %v635_v7, %v619_v42 }
 0x467   : > { %v623_v44 = vpop.xlane.xlu0 %622 }
 0x468   : > { %v638_v45 = vsel %vm575_vm15, %v637_v43, %v623_v44  ;;  %v1259_v43 = vld [vmem:[%s1838_s9] ss:$0 sm:$0xff] }
 0x469   : > { %v639_v47 = vpack.c.bf16 %v638_v45, %v638_v45 }
 0x46b   : > { %1308 = vmatmul.mubr.msk.bf16.vlgmr.msra.gmra.mrb[4].mxu0 %vm647_vm11, %v639_v47 }
 0x46c   : > { %1313 = vmatprep.mubr.msk.bf16.mxu0 %vm1446_vm0, %v1445_v2 }
 0x4b8   : > { %v902_v48 = vpop.xlane.xlu1 %901  ;;  %v906_v49 = vpop.xlane.xlu0 %905 }
 0x4b9   : > { %v935_v55 = vsel %vm624_vm4, %v902_v48, %v906_v49 }
 0x4bc   : > { %v910_v50 = vpop.xlane.xlu1 %909  ;;  %v914_v51 = vpop.xlane.xlu0 %913 }
 0x4bd   : > { %v936_v56 = vsel %vm626_vm5, %v935_v55, %v910_v50 }
 0x4be   : > { %v937_v59 = vsel %vm628_vm6, %v936_v56, %v914_v51 }
 0x4c0   : > { %v918_v52 = vpop.xlane.xlu1 %917  ;;  %v922_v54 = vpop.xlane.xlu0 %921 }
 0x4c1   : > { %v938_v60 = vsel %vm630_vm7, %v937_v59, %v918_v52 }
 0x4c2   : > { %v939_v63 = vsel %vm632_vm8, %v938_v60, %v922_v54 }
 0x4c4   : > { %v930_v57 = vpop.xlane.xlu0 %929  ;;  %v926_v58 = vpop.xlane.xlu1 %925 }
 0x4c5   : > { %v940_v1 = vsel %vm634_vm9, %v939_v63, %v926_v58 }
 0x4c6   : > { %v941_v4 = vsel %vm636_vm10, %v940_v1, %v930_v57 }
 0x4c8   : > { %v699_v61 = vpop.permute.xlu0 %698  ;;  %v934_v3 = vpop.xlane.xlu1 %933 }
 0x4c9   : > { %v704_v62 = vsel %vm651_vm1, %v699_v61, 0  ;;  %v942_v6 = vsel %vm575_vm15, %v941_v4, %v934_v3 }
 0x4ca   : > { %1312 = vmatpush3.bf16.msra.mxu0 %v704_v62  ;;  %v943_v46 = vpack.c.bf16 %v942_v6, %v942_v6 }
 0x4cb   : > { %1329 = vmatprep.subr.bf16.mxu0 %v1445_v2 }
 0x4cc   : > { %v988_v9 = vpop.permute.xlu1 %987 }
 0x4cd   : > { %1314 = vmatmul.mubr.msk.bf16.vlgmr.msra.gmra.mrb[4].mxu0 %vm575_vm15, %v587_v0  ;;  %v993_v11 = vsel %vm651_vm1, %v988_v9, 0 }
 0x4ce   : > { %1330 = vmatpush3.bf16.msra.mxu0 %v1718_v10  ;;  %1331 = vmatprep.mubr.msk.bf16.mxu0 %vm1446_vm0, %v1445_v2  ;;  %v898_v10 = vpack.c.bf16 %v1722_v13, %v1722_v13 }
 0x4cf   : > { %1335 = vmatprep.subr.bf16.mxu0 %v1445_v2 }
 0x4d5   : > { %1332 = vmatmul.mubr.msk.bf16.vlgmr.msra.gmra.mrb[8].mxu0 %vm647_vm11, %v943_v46 }
 0x4d6   : > { %1336 = vmatpush3.bf16.msra.mxu0 %v993_v11  ;;  %1337 = vmatprep.mubr.msk.bf16.mxu0 %vm1446_vm0, %v1445_v2 }
 0x4e1   : > { %1338 = vmatmul.mubr.msk.bf16.vlgmr.msra.gmra.mrb[8].mxu0 %vm575_vm15, %v898_v10 }
 0x5a0   : > { %v740_v5 = vpop.f32.mrb[4].mxu0 }
 0x5a1   : > { %v1315_v14 = vpop.f32.mrb[5].mxu0  ;;  %v746_v23 = vpack.c.bf16 %v740_v5, %v740_v5 }
 0x5a2   : > { %v743_v15 = vpop.f32.mrb[6].mxu0 }
 0x5a3   : > { %v1316_v16 = vpop.f32.mrb[7].mxu0 }
 0x5b4   : > { %v1029_v18 = vpop.f32.mrb[8].mxu0 }
 0x5b5   : > { %v1035_v20 = vpack.c.bf16 %v1029_v18, %v1029_v18  ;;  %v1339_v13 = vpop.f32.mrb[9].mxu0 }
 0x5b6   : > { %v1032_v21 = vpop.f32.mrb[10].mxu0 }
 0x5b7   : > { %v1340_v22 = vpop.f32.mrb[11].mxu0  ;;  %1344 = vmatmul.mubr.msk.bf16.vlgmr.msra.gmra.mrb[16].mxu1 %vm438_vm3, %v1035_v20 }
 0x5b8   : > { %1348 = vmatpush3.bf16.msra.mxu1 %v1411_v19  ;;  %1349 = vmatprep.mubr.msk.bf16.mxu1 %vm1446_vm0, %v1445_v2 }
 0x5bf   : > { %1350 = vmatmul.mubr.msk.bf16.vlgmr.msra.gmra.mrb[20].mxu1 %vm438_vm3, %v746_v23 }
 0x68a   : > { %v1082_v24 = vpop.f32.mrb[16].mxu1 }
 0x68b   : > { %v1345_v25 = vpop.f32.mrb[17].mxu1 }
 0x68c   : > { %v1085_v26 = vpop.f32.mrb[18].mxu1 }
 0x68d   : > { %v1346_v27 = vpop.f32.mrb[19].mxu1 }
 0x692   : > { %v1131_v28 = vpop.f32.mrb[20].mxu1 }
 0x693   : > { %v1132_v30 = vadd.f32 %v1131_v28, %v1082_v24  ;;  %v1351_v31 = vpop.f32.mrb[21].mxu1 }
 0x694   : > { %v1134_v32 = vpop.f32.mrb[22].mxu1 }
 0x695   : > { %v1144_v33 = vadd.f32 %v1257_v29, %v1132_v30  ;;  %v1352_v34 = vpop.f32.mrb[23].mxu1 }
 0x697   : > { %v1145_v35 = vadd.f32 %v1144_v33, %v1565_v8  ;;  %v1258_v8 = vld [vmem:[%s1837_s8] ss:$0 sm:$0xff] }
 0x699   : > { %v1146_v2 = vsel %vm383_vm2, %v1145_v35, 0.0 }
 0x69a   : > { %1147 = vadd.xlane.f32.xlu1 %v1146_v2 }
 0x727   : > { %v1148_v36 = vpop.xlane.xlu1 %1147 }
 0x728   : > { %v1150_v53 = vmul.f32 0.03125, %v1148_v36 }
 0x72a   : > { %v1151_v37 = vsub.f32 %v1145_v35, %v1150_v53 }
 0x72c   : > { %v1152_v38 = vmul.f32 %v1151_v37, %v1151_v37 }
 0x72e   : > { %v1153_v39 = vsel %vm383_vm2, %v1152_v38, 0.0 }
 0x72f   : > { %1154 = vadd.xlane.f32.xlu0 %v1153_v39 }
 0x7bc   : > { %v1155_v40 = vpop.xlane.xlu0 %1154 }
 0x7bd   : > { %v1156_v17 = vmul.f32 0.03125, %v1155_v40 }
 0x7bf   : > { %v1157_v41 = vadd.f32 1e-05, %v1156_v17 }
 0x7c1   : > { %1420 = vrsqrt.f32 %v1157_v41 }
 0x7cb   : > { %v1421_v42 = vpop.eup %1420 }
 0x7cc   : > { %v1159_v7 = vmul.f32 %v1421_v42, %v1151_v37 }
 0x7ce   : > { %v1167_v44 = vmul.f32 %v1258_v8, %v1159_v7 }
 0x7d0   : > { %v1175_v45 = vadd.f32 %v1259_v43, %v1167_v44 }
 0x7d2   : > { %1176 = vst.msk [vmem:[%s334_s13] sm:$0xff] %vm383_vm2, %v1175_v45 }
 0x7d3 PF: > { %s26_s18 = sadd.s32 1, %s1442_s18  }
 0x7d4   : > { %p23_p9 = scmp.ge.s32.totalorder %s26_s18, 4  }
 0x7d6   :  { %25 = sbr.rel (!%p23_p9) target bundleno = 16 (0x10), region = 87 }

// kernel: text_encoder_forward.7
= control target key start
LH: loop header
LB: loop body
LE: loop exit
PB: predicated region body
PF: predicated region fallthrough
CT: control target
= control target key end

     0   :  { %s1819_s0 = inlined_call_operand.vmem [shape: s32[2], index: 0, kind: input, shape index: {}]   ;;  %s1820_s1 = inlined_call_operand.vmem [shape: f32[2,8,32], index: 1, kind: input, shape index: {}]   ;;  %s1821_s2 = inlined_call_operand.vmem [shape: bf16[32,96], index: 2, kind: input, shape index: {}]   ;;  %s1822_s3 = inlined_call_operand.vmem [shape: f32[1,96], index: 3, kind: input, shape index: {}]   ;;  %s1823_s4 = inlined_call_operand.vmem [shape: bf16[2,16,32], index: 4, kind: input, shape index: {}]   ;;  %s1824_s5 = inlined_call_operand.vmem [shape: f32[1,32], index: 5, kind: input, shape index: {}]   ;;  %s1825_s6 = inlined_call_operand.vmem [shape: bf16[16,9], index: 6, kind: input, shape index: {}]   ;;  %s1826_s7 = inlined_call_operand.vmem [shape: bf16[9,16], index: 7, kind: input, shape index: {}]   ;;  %s1827_s8 = inlined_call_operand.vmem [shape: f32[1,32], index: 8, kind: input, shape index: {}]   ;;  %s1828_s9 = inlined_call_operand.vmem [shape: f32[1,32], index: 9, kind: input, shape index: {}]   ;;  %s1829_s10 = inlined_call_operand.vmem [shape: f32[2,8,32], index: 10, kind: output, shape index: {}]  }
   0x1   :  { %s15_s15 = sshll.u32 %s1819_s0, 4  ;;  %s16_s15 = int_to_ptr.vmem [resolvable:$true] %s15_s15 }
   0x2   :  { %s1419_s16 = scalar_lea.vmem %s16_s15, 16  ;;  %p1424_p1 = scmp.lt.s32.totalorder %s16_s15, %s16_s15 }
   0x3   :  { %p1420_p0 = scmp.ne.s32.totalorder %s16_s15, %s1419_s16  ;;  %p1425_p2 = scmp.lt.s32.totalorder %s1419_s16, %s1419_s16 }
   0x5   :  { %p1426_p3 = por %p1425_p2, %p1424_p1 }
   0x7   :  { %p1427_p4 = pnand %p1426_p3, %p1420_p0 }
   0x9   :  { %1430 = shalt.err (!%p1427_p4)  }
   0xa   :  { %s1441_s17 = smov [#allocation3]  }
   0xb   :  { %18 = dma.vmem_to_smem %s16_s15, 16, %s1441_s17, [#allocation2] }
   0xc   :  { %1435 = dma.done.wait [#allocation2], 16 }
   0xd   :  { %1436 = vsyncadd [#allocation2], 4294967280 }
   0xe   :  { %20 = sfence }
   0xf   :  { %s1517_s18 = smov 0  }
  0x10 LB: > { %s1523_s0 = sadd.s32 4294967295, %s1439_s18   ;;  %p1231_p5 = scmp.ge.s32.totalorder %s1439_s18, 1  ;;  %s1439_s18 = sphi %s1517_s18, %s26_s18  }
  0x11   : > { %p293_p6 = scmp.lt.s32.totalorder %s1439_s18, 3 }
  0x13   : > { %p294_p7 = pnand %p1231_p5, %p293_p6 }
  0x14   : > { %v1403_v0 = vld [vmem:[%s1821_s2] sm:$0xff] (!%p294_p7)   ;;  %v1442_v1 = vmov (!%p294_p7), 0.0   ;;  %v1404_v2 = vld [vmem:[%s1821_s2 + $0x8] sm:$0xff] (!%p294_p7)   ;;  %vm1443_vm0 = vmmov (!%p294_p7), 0   ;;  %p327_p8 = scmp.lt.s32.totalorder (!%p294_p7), %s1523_s0, 1  ;;  %vm380_vm1 = vcmask (!%p294_p7), 261120   ;;  %v337_v46 = vlaneseq (!%p294_p7) }
  0x15   : > { %297 = sbr.rel (%p294_p7) target bundleno = 2003 (0x7d3), region = 56  ;;  %1282 = vmatprep.subr.bf16.mxu0 (!%p294_p7), %v1442_v1  ;;  %1290 = vmatprep.subr.bf16.mxu1 (!%p294_p7), %v1442_v1  ;;  %v1405_v5 = vld [vmem:[%s1825_s6] sm:$0xff] (!%p294_p7)   ;;  %vm435_vm2 = vcmask (!%p294_p7), 130048   ;;  %s1444_s12 = smov (!%p294_p7), 80   ;;  %v1447_v15 = vmov (!%p294_p7), 1   ;;  %v1448_v16 = vmov (!%p294_p7), 0  }
  0x16   : > { %1283 = vmatpush3.bf16.msra.mxu0 (!%p294_p7), %v1403_v0  ;;  %1286 = vmatprep.mubr.msk.bf16.mxu0 (!%p294_p7), %vm1443_vm0, %v1442_v1  ;;  %v1234_v6 = vld [vmem:[%s1822_s3] ss:$0 sm:$0xff] (!%p294_p7)  ;;  %s1445_s13 = smov (!%p294_p7), 96   ;;  %s1446_s14 = smov (!%p294_p7), 112   ;;  %v1449_v26 = vmov (!%p294_p7), 4   ;;  %v1450_v27 = vmov (!%p294_p7), 2  }
  0x17   : > { %1284 = vmatprep.subr.bf16.mxu0 (!%p294_p7), %v1442_v1  ;;  %1292 = vmatprep.mubr.msk.bf16.mxu1 (!%p294_p7), %vm1443_vm0, %v1442_v1  ;;  %v1451_v28 = vmov (!%p294_p7), 7   ;;  %v1452_v29 = vmov (!%p294_p7), 3   ;;  %v1453_v30 = vmov (!%p294_p7), 5   ;;  %v1454_v31 = vmov (!%p294_p7), 6   ;;  %s336_s15 = sld [smem:[#allocation3 + %s1523_s0]] (!%p294_p7)  ;;  %s1458_s19 = smov (!%p294_p7), 64  }
  0x18   : > { %1291 = vmatpush3.bf16.msra.mxu1 (!%p294_p7), %v1405_v5  ;;  %1385 = vset.pattern.permute.xlu0 (!%p294_p7), %v1447_v15  ;;  %v1455_v32 = vmov (!%p294_p7), 8   ;;  %v338_v48 = vshrl.u32 (!%p294_p7), %v337_v46, 7  ;;  %v340_v49 = vand.u32 (!%p294_p7), 127, %v337_v46  ;;  %vm572_vm15 = vcmask (!%p294_p7), 64512  }
  0x19   : > { %1296 = vmatprep.subr.bf16.mxu1 (!%p294_p7), %v1442_v1  ;;  %1384 = vset.pattern.permute.xlu1 (!%p294_p7), %v1448_v16 }
  0x1a   : > { %1285 = vmatpush3.bf16.msra.mxu0 (!%p294_p7), %v1404_v2  ;;  %v1590_v50 = vsub.s32 (!%p294_p7), %v340_v49, %v338_v48 }
  0x1b   : > { %1302 = vmatprep.subr.bf16.mxu0 (!%p294_p7), %v1442_v1 }
  0x1c   : > { %s1542_s23 = scalar_select %p327_p8, %s1523_s0, 1  ;;  %vm346_vm3 = vcmp.eq.s32.totalorder %v1590_v50, 4294967292  ;;  %vm347_vm4 = vcmp.eq.s32.totalorder %v1590_v50, 4294967293  ;;  %vm348_vm5 = vcmp.eq.s32.totalorder %v1590_v50, 4294967294  ;;  %vm349_vm6 = vcmp.eq.s32.totalorder %v1590_v50, 4294967295 }
  0x1d   : > { %vm350_vm7 = vcmp.eq.s32.totalorder %v1590_v50, 0  ;;  %vm351_vm8 = vcmp.eq.s32.totalorder %v1590_v50, 1  ;;  %vm352_vm9 = vcmp.eq.s32.totalorder %v1590_v50, 2  ;;  %vm353_vm10 = vcmp.eq.s32.totalorder %v1590_v50, 3  ;;  %s1457_s0 = smov 48  }
  0x1e   : > { %s1232_s24 = sshll.u32 %s1542_s23, 3  ;;  %vm354_vm11 = vcmp.eq.s32.totalorder %v1590_v50, 4  ;;  %v342_v2 = vstv %s336_s15 }
  0x1f   : > { %s330_s27 = scalar_lea.vmem %s1820_s1, %s1232_s24  ;;  %vm1620_vm12 = vcmp.lt.s32.totalorder %v338_v48, %v342_v2  ;;  %vm1624_vm13 = vcmp.lt.s32.totalorder %v340_v49, %v342_v2  ;;  %v1406_v2 = vld [vmem:[%s1826_s7] sm:$0x1f]  }
  0x20   : > { %v1551_v3 = vld [vmem:[%s330_s27] sm:$0xff]  ;;  %vm345_vm14 = vmand %vm1620_vm12, %vm1624_vm13  ;;  %vm648_vm12 = vcmask 1043456   ;;  %vm649_vm13 = vcmask 1044480  }
  0x21   : > { %v356_v4 = vpack.c.bf16 %v1551_v3, %v1551_v3 }
  0x23   : > { %1287 = vmatmul.mubr.msk.bf16.vlgmr.msra.gmra.mrb[0].mxu0 %vm380_vm1, %v356_v4 }
  0x24   : > { %1304 = vmatprep.mubr.msk.bf16.mxu0 %vm1443_vm0, %v1442_v1 }
  0xf6   : > { %v418_v7 = vpop.f32.mrb[0].mxu0 }
  0xf7   : > { %v419_v8 = vadd.f32 %v1234_v6, %v418_v7  ;;  %v1288_v9 = vpop.f32.mrb[1].mxu0 }
  0xf8   : > { %v421_v10 = vpop.f32.mrb[2].mxu0 }
  0xf9   : > { %v424_v11 = vmul.f32 0.25, %v419_v8  ;;  %v1565_v12 = vpack.c.bf16 %v419_v8, %v419_v8  ;;  %v1289_v13 = vpop.f32.mrb[3].mxu0 }
  0xfb   : > { %v425_v14 = vpack.c.bf16 %v424_v11, %v424_v11  ;;  %838 = vrot.lane.b32.xlu1 %v1565_v12, %s1444_s12  ;;  %526 = vrot.lane.b32.xlu0 %v1565_v12, %s1445_s13 }
  0xfd   : > { %1293 = vmatmul.mubr.msk.bf16.vlgmr.msra.gmra.mrb[0].mxu1 %vm435_vm2, %v425_v14 }
  0xfe   : > { %1298 = vmatprep.mubr.msk.bf16.mxu1 %vm1443_vm0, %v1442_v1 }
  0xff   : > { %747 = vrot.lane.b32.xlu0 %v425_v14, %s1446_s14  ;;  %s334_s14 = scalar_lea.vmem %s1829_s10, %s1232_s24 }
 0x16d   : > { %v527_v17 = vpop.permute.xlu0 %526  ;;  %v839_v19 = vpop.permute.xlu1 %838 }
 0x16e   : > { %v529_v18 = vsel %vm435_vm2, %v527_v17, 0  ;;  %v841_v21 = vsel %vm435_vm2, %v839_v19, 0 }
 0x16f   : > { %1297 = vmatpush3.bf16.xpose.msra.mxu1 %v529_v18 }
 0x170   : > { %1314 = vmatprep.subr.bf16.mxu1 %v1442_v1 }
 0x171   : > { %v748_v20 = vpop.permute.xlu0 %747 }
 0x176   : > { %1299 = vmatmul.mubr.msk.bf16.vlgmr.msra.gmra.mrb[4].mxu1 %vm435_vm2, %v425_v14 }
 0x177   : > { %1315 = vmatpush3.bf16.msra.mxu1 %v1405_v5  ;;  %1316 = vmatprep.mubr.msk.bf16.mxu1 %vm1443_vm0, %v1442_v1 }
 0x178   : > { %1320 = vmatprep.subr.bf16.mxu1 %v1442_v1 }
 0x17e   : > { %1317 = vmatmul.mubr.msk.bf16.vlgmr.msra.gmra.mrb[8].mxu1 %vm435_vm2, %v748_v20 }
 0x17f   : > { %1322 = vmatprep.mubr.msk.bf16.mxu1 %vm1443_vm0, %v1442_v1 }
 0x180   : > { %1321 = vmatpush3.bf16.xpose.msra.mxu1 %v841_v21 }
 0x181   : > { %1338 = vmatprep.subr.bf16.mxu1 %v1442_v1 }
 0x187   : > { %1323 = vmatmul.mubr.msk.bf16.vlgmr.msra.gmra.mrb[12].mxu1 %vm435_vm2, %v748_v20 }
 0x188   : > { %1340 = vmatprep.mubr.msk.bf16.mxu1 %vm1443_vm0, %v1442_v1 }
 0x1d0   : > { %v473_v22 = vpop.f32.mrb[0].mxu1 }
 0x1d1   : > { %486 = vperm.xlu0 %1385, %v473_v22   ;;  %481 = vperm.xlu1 %1384, %v473_v22   ;;  %v1294_v23 = vpop.f32.mrb[1].mxu1 }
 0x1d2   : > { %v476_v24 = vpop.f32.mrb[2].mxu1 }
 0x1d3   : > { %v1295_v25 = vpop.f32.mrb[3].mxu1 }
 0x1d5   : > { %1388 = vset.pattern.permute.xlu0 %v1449_v26  ;;  %1386 = vset.pattern.permute.xlu1 %v1450_v27 }
 0x1d6   : > { %501 = vperm.xlu0 %1388, %v473_v22   ;;  %491 = vperm.xlu1 %1386, %v473_v22  }
 0x1da   : > { %1391 = vset.pattern.permute.xlu0 %v1451_v28  ;;  %1387 = vset.pattern.permute.xlu1 %v1452_v29 }
 0x1db   : > { %516 = vperm.xlu0 %1391, %v473_v22   ;;  %496 = vperm.xlu1 %1387, %v473_v22  }
 0x1df   : > { %1389 = vset.pattern.permute.xlu1 %v1453_v30  ;;  %1394 = vset.pattern.permute.xlu0 %v1447_v15 }
 0x1e0   : > { %506 = vperm.xlu1 %1389, %v473_v22  }
 0x1e4   : > { %1390 = vset.pattern.permute.xlu1 %v1454_v31 }
 0x1e5   : > { %511 = vperm.xlu1 %1390, %v473_v22  }
 0x1e9   : > { %1392 = vset.pattern.permute.xlu1 %v1455_v32 }
 0x1ea   : > { %521 = vperm.xlu1 %1392, %v473_v22  }
 0x1ee   : > { %1393 = vset.pattern.permute.xlu1 %v1448_v16 }
 0x249   : > { %v1586_v33 = vpop.f32.mrb[4].mxu1 }
 0x24a   : > { %v1300_v34 = vpop.f32.mrb[5].mxu1 }
 0x24b   : > { %v568_v35 = vpop.f32.mrb[6].mxu1 }
 0x24c   : > { %v1301_v36 = vpop.f32.mrb[7].mxu1 }
 0x250   : > { %v482_v45 = vpop.permute.xlu1 %481  ;;  %v487_v53 = vpop.permute.xlu0 %486 }
 0x251   : > { %v786_v37 = vpop.f32.mrb[8].mxu1  ;;  %v484_v54 = vsel %vm346_vm3, %v482_v45, 0.0 }
 0x252   : > { %799 = vperm.xlu0 %1394, %v786_v37   ;;  %794 = vperm.xlu1 %1393, %v786_v37   ;;  %v1318_v38 = vpop.f32.mrb[9].mxu1  ;;  %v489_v55 = vsel %vm347_vm4, %v487_v53, %v484_v54 }
 0x253   : > { %v789_v39 = vpop.f32.mrb[10].mxu1 }
 0x254   : > { %v1319_v40 = vpop.f32.mrb[11].mxu1 }
 0x255   : > { %v492_v47 = vpop.permute.xlu1 %491  ;;  %v502_v59 = vpop.permute.xlu0 %501 }
 0x256   : > { %1397 = vset.pattern.permute.xlu0 %v1449_v26  ;;  %1395 = vset.pattern.permute.xlu1 %v1450_v27  ;;  %v494_v56 = vsel %vm348_vm5, %v492_v47, %v489_v55 }
 0x257   : > { %814 = vperm.xlu0 %1397, %v786_v37   ;;  %804 = vperm.xlu1 %1395, %v786_v37  }
 0x25a   : > { %v1588_v41 = vpop.f32.mrb[12].mxu1  ;;  %v497_v51 = vpop.permute.xlu1 %496 }
 0x25b   : > { %1400 = vset.pattern.permute.xlu0 %v1451_v28  ;;  %1396 = vset.pattern.permute.xlu1 %v1452_v29  ;;  %v1324_v42 = vpop.f32.mrb[13].mxu1  ;;  %v499_v57 = vsel %vm349_vm6, %v497_v51, %v494_v56  ;;  %v517_v0 = vpop.permute.xlu0 %516 }
 0x25c   : > { %829 = vperm.xlu0 %1400, %v786_v37   ;;  %809 = vperm.xlu1 %1396, %v786_v37   ;;  %v880_v43 = vpop.f32.mrb[14].mxu1  ;;  %v504_v60 = vsel %vm350_vm7, %v502_v59, %v499_v57 }
 0x25d   : > { %v1325_v44 = vpop.f32.mrb[15].mxu1 }
 0x25f   : > { %v507_v52 = vpop.permute.xlu1 %506 }
 0x260   : > { %1398 = vset.pattern.permute.xlu1 %v1453_v30  ;;  %1402 = vset.pattern.permute.xlu0 %v1455_v32  ;;  %v509_v61 = vsel %vm351_vm8, %v507_v52, %v504_v60 }
 0x261   : > { %819 = vperm.xlu1 %1398, %v786_v37  }
 0x264   : > { %v512_v58 = vpop.permute.xlu1 %511 }
 0x265   : > { %1399 = vset.pattern.permute.xlu1 %v1454_v31  ;;  %v514_v62 = vsel %vm352_vm9, %v512_v58, %v509_v61 }
 0x266   : > { %824 = vperm.xlu1 %1399, %v786_v37   ;;  %v519_v4 = vsel %vm353_vm10, %v517_v0, %v514_v62 }
 0x269   : > { %v522_v63 = vpop.permute.xlu1 %521 }
 0x26a   : > { %1401 = vset.pattern.permute.xlu1 %v1455_v32  ;;  %v524_v5 = vsel %vm354_vm11, %v522_v63, %v519_v4  ;;  %v1456_v4 = vmov 65535  }
 0x26b   : > { %834 = vperm.xlu1 %1401, %v786_v37   ;;  %v566_v8 = vadd.f32 %v1586_v33, %v524_v5  ;;  %v650_v5 = vsel %vm648_vm12, 4294967295, %v1456_v4 }
 0x26c   : > { %v651_v6 = vsel %vm649_vm13, %v650_v5, 0 }
 0x26d   : > { %v571_v9 = vsel %vm345_vm14, %v566_v8, -10000.0  ;;  %v1708_v7 = vand.u32 %v1406_v2, %v651_v6 }
 0x26e   : > { %v573_v10 = vsel %vm572_vm15, %v571_v9, -inf }
 0x26f   : > { %1303 = vmatpush3.bf16.msra.mxu0 %v1708_v7 }
 0x270   : > { %1308 = vmatprep.subr.bf16.mxu0 %v1442_v1 }
 0x28f   : > { %574 = vmax.xlane.f32.xlu1 %v573_v10 }
 0x2d1   : > { %v795_v11 = vpop.permute.xlu1 %794  ;;  %v800_v15 = vpop.permute.xlu0 %799 }
 0x2d2   : > { %v797_v16 = vsel %vm346_vm3, %v795_v11, 0.0 }
 0x2d3   : > { %v802_v17 = vsel %vm347_vm4, %v800_v15, %v797_v16 }
 0x2d6   : > { %v805_v13 = vpop.permute.xlu1 %804  ;;  %v815_v21 = vpop.permute.xlu0 %814 }
 0x2d7   : > { %v807_v19 = vsel %vm348_vm5, %v805_v13, %v802_v17 }
 0x2db   : > { %v810_v14 = vpop.permute.xlu1 %809  ;;  %v830_v26 = vpop.permute.xlu0 %829 }
 0x2dc   : > { %v812_v20 = vsel %vm349_vm6, %v810_v14, %v807_v19 }
 0x2dd   : > { %v817_v22 = vsel %vm350_vm7, %v815_v21, %v812_v20 }
 0x2e0   : > { %v820_v18 = vpop.permute.xlu1 %819 }
 0x2e1   : > { %v822_v24 = vsel %vm351_vm8, %v820_v18, %v817_v22 }
 0x2e5   : > { %v825_v23 = vpop.permute.xlu1 %824 }
 0x2e6   : > { %v827_v25 = vsel %vm352_vm9, %v825_v23, %v822_v24 }
 0x2e7   : > { %v832_v27 = vsel %vm353_vm10, %v830_v26, %v827_v25 }
 0x2ea   : > { %v835_v28 = vpop.permute.xlu1 %834 }
 0x2eb   : > { %v837_v29 = vsel %vm354_vm11, %v835_v28, %v832_v27 }
 0x2ec   : > { %v878_v30 = vadd.f32 %v1588_v41, %v837_v29 }
 0x2ee   : > { %v883_v31 = vsel %vm345_vm14, %v878_v30, -10000.0 }
 0x2ef   : > { %v884_v32 = vsel %vm572_vm15, %v883_v31, -inf }
 0x2f0   : > { %885 = vmax.xlane.f32.xlu0 %v884_v32 }
 0x31c   : > { %v575_v33 = vpop.xlane.xlu1 %574 }
 0x31d   : > { %v576_v34 = vsub.f32 %v571_v9, %v575_v33 }
 0x31f   : > { %v577_v35 = vmul.f32 1.442695, %v576_v34 }
 0x321   : > { %1409 = vpow2.f32 %v577_v35 }
 0x32b   : > { %v1410_v36 = vpop.eup %1409 }
 0x32c   : > { %v579_v37 = vsel %vm572_vm15, %v1410_v36, 0.0 }
 0x32d   : > { %580 = vadd.xlane.f32.xlu0 %v579_v37 }
 0x37d   : > { %v886_v38 = vpop.xlane.xlu0 %885 }
 0x37e   : > { %v887_v39 = vsub.f32 %v883_v31, %v886_v38 }
 0x380   : > { %v888_v40 = vmul.f32 1.442695, %v887_v39 }
 0x382   : > { %1411 = vpow2.f32 %v888_v40 }
 0x38c   : > { %v1412_v41 = vpop.eup %1411 }
 0x38d   : > { %v890_v42 = vsel %vm572_vm15, %v1412_v41, 0.0 }
 0x38e   : > { %891 = vadd.xlane.f32.xlu1 %v890_v42 }
 0x3ba   : > { %v581_v43 = vpop.xlane.xlu0 %580 }
 0x3bb   : > { %1413 = vrcp.f32 %v581_v43 }
 0x3c5   : > { %v1414_v44 = vpop.eup %1413 }
 0x3c6   : > { %v1666_v45 = vmul.f32 %v1414_v44, %v1410_v36 }
 0x3c8   : > { %v589_v46 = vsel %vm347_vm4, %v1666_v45, 0.0  ;;  %v585_v47 = vsel %vm346_vm3, %v1666_v45, 0.0  ;;  %v597_v51 = vsel %vm349_vm6, %v1666_v45, 0.0  ;;  %v593_v52 = vsel %vm348_vm5, %v1666_v45, 0.0 }
 0x3c9   : > { %v590_v48 = vsel %vm572_vm15, %v589_v46, 0.0  ;;  %v586_v49 = vsel %vm572_vm15, %v585_v47, 0.0  ;;  %v598_v53 = vsel %vm572_vm15, %v597_v51, 0.0  ;;  %v594_v54 = vsel %vm572_vm15, %v593_v52, 0.0 }
 0x3ca   : > { %591 = vadd.xlane.f32.xlu1 %v590_v48  ;;  %587 = vadd.xlane.f32.xlu0 %v586_v49  ;;  %v605_v55 = vsel %vm351_vm8, %v1666_v45, 0.0  ;;  %v601_v56 = vsel %vm350_vm7, %v1666_v45, 0.0  ;;  %v613_v59 = vsel %vm353_vm10, %v1666_v45, 0.0  ;;  %v609_v60 = vsel %vm352_vm9, %v1666_v45, 0.0 }
 0x3cb   : > { %v606_v57 = vsel %vm572_vm15, %v605_v55, 0.0  ;;  %v602_v58 = vsel %vm572_vm15, %v601_v56, 0.0  ;;  %v614_v61 = vsel %vm572_vm15, %v613_v59, 0.0  ;;  %v610_v62 = vsel %vm572_vm15, %v609_v60, 0.0 }
 0x3cc   : > { %v617_v63 = vsel %vm354_vm11, %v1666_v45, 0.0 }
 0x3cd   : > { %v618_v0 = vsel %vm572_vm15, %v617_v63, 0.0  ;;  %v584_v63 = vpack.c.bf16 %v1666_v45, %v1666_v45 }
 0x3ce   : > { %599 = vadd.xlane.f32.xlu1 %v598_v53  ;;  %595 = vadd.xlane.f32.xlu0 %v594_v54 }
 0x3d2   : > { %607 = vadd.xlane.f32.xlu1 %v606_v57  ;;  %603 = vadd.xlane.f32.xlu0 %v602_v58 }
 0x3d6   : > { %615 = vadd.xlane.f32.xlu1 %v614_v61  ;;  %611 = vadd.xlane.f32.xlu0 %v610_v62 }
 0x3da   : > { %619 = vadd.xlane.f32.xlu0 %v618_v0 }
 0x41b   : > { %v892_v8 = vpop.xlane.xlu1 %891 }
 0x41c   : > { %1415 = vrcp.f32 %v892_v8 }
 0x426   : > { %v1416_v9 = vpop.eup %1415 }
 0x427   : > { %v1712_v10 = vmul.f32 %v1416_v9, %v1412_v41  ;;  %v1407_v9 = vld [vmem:[%s1823_s4 + $0x8] sm:$0xff]  }
 0x428   : > { %1339 = vmatpush3.bf16.msra.mxu1 %v1407_v9 }
 0x429   : > { %v896_v11 = vsel %vm346_vm3, %v1712_v10, 0.0  ;;  %v900_v13 = vsel %vm347_vm4, %v1712_v10, 0.0  ;;  %v904_v16 = vsel %vm348_vm5, %v1712_v10, 0.0  ;;  %v908_v17 = vsel %vm349_vm6, %v1712_v10, 0.0  ;;  %1344 = vmatprep.subr.bf16.mxu1 %v1442_v1 }
 0x42a   : > { %v897_v14 = vsel %vm572_vm15, %v896_v11, 0.0  ;;  %v901_v15 = vsel %vm572_vm15, %v900_v13, 0.0  ;;  %v905_v18 = vsel %vm572_vm15, %v904_v16, 0.0  ;;  %v909_v19 = vsel %vm572_vm15, %v908_v17, 0.0  ;;  %v1408_v17 = vld [vmem:[%s1823_s4] sm:$0xff]  }
 0x42b   : > { %898 = vadd.xlane.f32.xlu1 %v897_v14  ;;  %902 = vadd.xlane.f32.xlu0 %v901_v15  ;;  %v912_v20 = vsel %vm350_vm7, %v1712_v10, 0.0  ;;  %v916_v21 = vsel %vm351_vm8, %v1712_v10, 0.0  ;;  %v920_v24 = vsel %vm352_vm9, %v1712_v10, 0.0  ;;  %v924_v25 = vsel %vm353_vm10, %v1712_v10, 0.0 }
 0x42c   : > { %v913_v22 = vsel %vm572_vm15, %v912_v20, 0.0  ;;  %v917_v23 = vsel %vm572_vm15, %v916_v21, 0.0  ;;  %v921_v26 = vsel %vm572_vm15, %v920_v24, 0.0  ;;  %v925_v27 = vsel %vm572_vm15, %v924_v25, 0.0 }
 0x42d   : > { %v928_v28 = vsel %vm354_vm11, %v1712_v10, 0.0  ;;  %vm621_vm3 = vcmask 7168   ;;  %vm623_vm4 = vcmask 15360   ;;  %vm625_vm5 = vcmask 23552  }
 0x42e   : > { %v929_v29 = vsel %vm572_vm15, %v928_v28, 0.0  ;;  %vm627_vm6 = vcmask 31744   ;;  %vm629_vm7 = vcmask 39936   ;;  %vm631_vm8 = vcmask 48128  }
 0x42f   : > { %906 = vadd.xlane.f32.xlu1 %v905_v18  ;;  %910 = vadd.xlane.f32.xlu0 %v909_v19  ;;  %vm633_vm9 = vcmask 56320   ;;  %vm644_vm10 = vcmask 72704  }
 0x433   : > { %914 = vadd.xlane.f32.xlu1 %v913_v22  ;;  %918 = vadd.xlane.f32.xlu0 %v917_v23 }
 0x437   : > { %922 = vadd.xlane.f32.xlu1 %v921_v26  ;;  %926 = vadd.xlane.f32.xlu0 %v925_v27  ;;  %v1254_v27 = vld [vmem:[%s1824_s5] ss:$0 sm:$0xff] }
 0x43b   : > { %930 = vadd.xlane.f32.xlu1 %v929_v29 }
 0x44c   : > { %984 = vrot.lane.b32.xlu1 %v1565_v12, %s1457_s0 }
 0x44d   : > { %695 = vrot.lane.b32.xlu0 %v1565_v12, %s1458_s19 }
 0x457   : > { %v592_v30 = vpop.xlane.xlu1 %591  ;;  %v588_v31 = vpop.xlane.xlu0 %587 }
 0x458   : > { %v622_v32 = vsel %vm621_vm3, %v588_v31, %v592_v30 }
 0x45b   : > { %v600_v33 = vpop.xlane.xlu1 %599  ;;  %v596_v34 = vpop.xlane.xlu0 %595 }
 0x45c   : > { %v624_v50 = vsel %vm623_vm4, %v622_v32, %v596_v34 }
 0x45d   : > { %v626_v36 = vsel %vm625_vm5, %v624_v50, %v600_v33 }
 0x45f   : > { %v608_v35 = vpop.xlane.xlu1 %607  ;;  %v604_v37 = vpop.xlane.xlu0 %603 }
 0x460   : > { %v628_v38 = vsel %vm627_vm6, %v626_v36, %v604_v37 }
 0x461   : > { %v630_v12 = vsel %vm629_vm7, %v628_v38, %v608_v35 }
 0x463   : > { %v612_v39 = vpop.xlane.xlu0 %611  ;;  %v616_v40 = vpop.xlane.xlu1 %615 }
 0x464   : > { %v632_v41 = vsel %vm631_vm8, %v630_v12, %v612_v39 }
 0x465   : > { %v634_v42 = vsel %vm633_vm9, %v632_v41, %v616_v40 }
 0x467   : > { %v620_v43 = vpop.xlane.xlu0 %619 }
 0x468   : > { %v635_v44 = vsel %vm572_vm15, %v634_v42, %v620_v43  ;;  %v1256_v42 = vld [vmem:[%s1828_s9] ss:$0 sm:$0xff] }
 0x469   : > { %v636_v46 = vpack.c.bf16 %v635_v44, %v635_v44 }
 0x46b   : > { %1305 = vmatmul.mubr.msk.bf16.vlgmr.msra.gmra.mrb[4].mxu0 %vm644_vm10, %v636_v46 }
 0x46c   : > { %1310 = vmatprep.mubr.msk.bf16.mxu0 %vm1443_vm0, %v1442_v1 }
 0x4b8   : > { %v899_v47 = vpop.xlane.xlu1 %898  ;;  %v903_v48 = vpop.xlane.xlu0 %902 }
 0x4b9   : > { %v932_v54 = vsel %vm621_vm3, %v899_v47, %v903_v48 }
 0x4bc   : > { %v907_v49 = vpop.xlane.xlu1 %906  ;;  %v911_v51 = vpop.xlane.xlu0 %910 }
 0x4bd   : > { %v933_v55 = vsel %vm623_vm4, %v932_v54, %v907_v49 }
 0x4be   : > { %v934_v58 = vsel %vm625_vm5, %v933_v55, %v911_v51 }
 0x4c0   : > { %v915_v52 = vpop.xlane.xlu1 %914  ;;  %v919_v53 = vpop.xlane.xlu0 %918 }
 0x4c1   : > { %v935_v59 = vsel %vm627_vm6, %v934_v58, %v915_v52 }
 0x4c2   : > { %v936_v62 = vsel %vm629_vm7, %v935_v59, %v919_v53 }
 0x4c4   : > { %v927_v56 = vpop.xlane.xlu0 %926  ;;  %v923_v57 = vpop.xlane.xlu1 %922 }
 0x4c5   : > { %v937_v0 = vsel %vm631_vm8, %v936_v62, %v923_v57 }
 0x4c6   : > { %v938_v4 = vsel %vm633_vm9, %v937_v0, %v927_v56 }
 0x4c8   : > { %v696_v60 = vpop.permute.xlu0 %695  ;;  %v931_v2 = vpop.xlane.xlu1 %930 }
 0x4c9   : > { %v701_v61 = vsel %vm648_vm12, %v696_v60, 0  ;;  %v939_v5 = vsel %vm572_vm15, %v938_v4, %v931_v2 }
 0x4ca   : > { %1309 = vmatpush3.bf16.msra.mxu0 %v701_v61  ;;  %v940_v45 = vpack.c.bf16 %v939_v5, %v939_v5 }
 0x4cb   : > { %1326 = vmatprep.subr.bf16.mxu0 %v1442_v1 }
 0x4cc   : > { %v985_v6 = vpop.permute.xlu1 %984 }
 0x4cd   : > { %1311 = vmatmul.mubr.msk.bf16.vlgmr.msra.gmra.mrb[4].mxu0 %vm572_vm15, %v584_v63  ;;  %v990_v8 = vsel %vm648_vm12, %v985_v6, 0 }
 0x4ce   : > { %1327 = vmatpush3.bf16.msra.mxu0 %v1708_v7  ;;  %1328 = vmatprep.mubr.msk.bf16.mxu0 %vm1443_vm0, %v1442_v1  ;;  %v895_v7 = vpack.c.bf16 %v1712_v10, %v1712_v10 }
 0x4cf   : > { %1332 = vmatprep.subr.bf16.mxu0 %v1442_v1 }
 0x4d5   : > { %1329 = vmatmul.mubr.msk.bf16.vlgmr.msra.gmra.mrb[8].mxu0 %vm644_vm10, %v940_v45 }
 0x4d6   : > { %1333 = vmatpush3.bf16.msra.mxu0 %v990_v8  ;;  %1334 = vmatprep.mubr.msk.bf16.mxu0 %vm1443_vm0, %v1442_v1 }
 0x4e1   : > { %1335 = vmatmul.mubr.msk.bf16.vlgmr.msra.gmra.mrb[8].mxu0 %vm572_vm15, %v895_v7 }
 0x5a0   : > { %v737_v11 = vpop.f32.mrb[4].mxu0 }
 0x5a1   : > { %v1312_v13 = vpop.f32.mrb[5].mxu0  ;;  %v743_v21 = vpack.c.bf16 %v737_v11, %v737_v11 }
 0x5a2   : > { %v740_v14 = vpop.f32.mrb[6].mxu0 }
 0x5a3   : > { %v1313_v15 = vpop.f32.mrb[7].mxu0 }
 0x5b4   : > { %v1026_v16 = vpop.f32.mrb[8].mxu0 }
 0x5b5   : > { %v1032_v18 = vpack.c.bf16 %v1026_v16, %v1026_v16  ;;  %v1336_v10 = vpop.f32.mrb[9].mxu0 }
 0x5b6   : > { %v1029_v19 = vpop.f32.mrb[10].mxu0 }
 0x5b7   : > { %v1337_v20 = vpop.f32.mrb[11].mxu0  ;;  %1341 = vmatmul.mubr.msk.bf16.vlgmr.msra.gmra.mrb[16].mxu1 %vm435_vm2, %v1032_v18 }
 0x5b8   : > { %1345 = vmatpush3.bf16.msra.mxu1 %v1408_v17  ;;  %1346 = vmatprep.mubr.msk.bf16.mxu1 %vm1443_vm0, %v1442_v1 }
 0x5bf   : > { %1347 = vmatmul.mubr.msk.bf16.vlgmr.msra.gmra.mrb[20].mxu1 %vm435_vm2, %v743_v21 }
 0x68a   : > { %v1079_v22 = vpop.f32.mrb[16].mxu1 }
 0x68b   : > { %v1342_v23 = vpop.f32.mrb[17].mxu1 }
 0x68c   : > { %v1082_v24 = vpop.f32.mrb[18].mxu1 }
 0x68d   : > { %v1343_v25 = vpop.f32.mrb[19].mxu1 }
 0x692   : > { %v1128_v26 = vpop.f32.mrb[20].mxu1 }
 0x693   : > { %v1129_v28 = vadd.f32 %v1128_v26, %v1079_v22  ;;  %v1348_v29 = vpop.f32.mrb[21].mxu1 }
 0x694   : > { %v1131_v30 = vpop.f32.mrb[22].mxu1 }
 0x695   : > { %v1141_v31 = vadd.f32 %v1254_v27, %v1129_v28  ;;  %v1349_v32 = vpop.f32.mrb[23].mxu1 }
 0x697   : > { %v1142_v33 = vadd.f32 %v1141_v31, %v1551_v3  ;;  %v1255_v3 = vld [vmem:[%s1827_s8] ss:$0 sm:$0xff] }
 0x699   : > { %v1143_v1 = vsel %vm380_vm1, %v1142_v33, 0.0 }
 0x69a   : > { %1144 = vadd.xlane.f32.xlu1 %v1143_v1 }
 0x727   : > { %v1145_v34 = vpop.xlane.xlu1 %1144 }
 0x728   : > { %v1147_v50 = vmul.f32 0.03125, %v1145_v34 }
 0x72a   : > { %v1148_v35 = vsub.f32 %v1142_v33, %v1147_v50 }
 0x72c   : > { %v1149_v36 = vmul.f32 %v1148_v35, %v1148_v35 }
 0x72e   : > { %v1150_v37 = vsel %vm380_vm1, %v1149_v36, 0.0 }
 0x72f   : > { %1151 = vadd.xlane.f32.xlu0 %v1150_v37 }
 0x7bc   : > { %v1152_v38 = vpop.xlane.xlu0 %1151 }
 0x7bd   : > { %v1153_v12 = vmul.f32 0.03125, %v1152_v38 }
 0x7bf   : > { %v1154_v39 = vadd.f32 1e-05, %v1153_v12 }
 0x7c1   : > { %1417 = vrsqrt.f32 %v1154_v39 }
 0x7cb   : > { %v1418_v40 = vpop.eup %1417 }
 0x7cc   : > { %v1156_v41 = vmul.f32 %v1418_v40, %v1148_v35 }
 0x7ce   : > { %v1164_v43 = vmul.f32 %v1255_v3, %v1156_v41 }
 0x7d0   : > { %v1172_v44 = vadd.f32 %v1256_v42, %v1164_v43 }
 0x7d2   : > { %1173 = vst.msk [vmem:[%s334_s14] sm:$0xff] %vm380_vm1, %v1172_v44 }
 0x7d3 PF: > { %s26_s18 = sadd.s32 1, %s1439_s18  }
 0x7d4   : > { %p23_p9 = scmp.ge.s32.totalorder %s26_s18, 4  }
 0x7d6   :  { %25 = sbr.rel (!%p23_p9) target bundleno = 16 (0x10), region = 87 }

</bundles_post_ra>
